<compile_context>
chip_gen: v6e
topology: v6e:2x2x1
jax: 0.10.0
libtpu: 0.0.40
codegen_flags: <defaults>
</compile_context>

<pallas_src>
import jax
import jax.numpy as jnp
from jax.experimental import pallas as pl
from jax.experimental.pallas import tpu as pltpu


def _round_up(x, m):
    return ((x + m - 1) // m) * m


# ----------------------------------------------------------------------------
# Fused kernel: all layers + linear head, single invocation, everything in VMEM
# ----------------------------------------------------------------------------
def _make_fused_lstm_kernel(T, Bp, Hp, L):
    """Builds the kernel for static (T, padded batch Bp, padded hidden Hp, L layers).

    Ref layout (positional):
      x (T*Bp, E), h0 (L, Bp, Hp), c0 (L, Bp, Hp),
      [w_ih_t (in,4Hp), w_hh_t (Hp,4Hp), b (1,4Hp)] * L,
      lin_w_t (Hp, O), lin_b (1, O),
      out (Bp, O)                      <- output
      seq_scr (T*Bp, Hp)               <- VMEM scratch (inter-layer hidden seq)
    """

    def kernel(*refs):
        x_ref, h0_ref, c0_ref = refs[0], refs[1], refs[2]
        layer_refs = refs[3:3 + 3 * L]
        lw_ref = refs[3 + 3 * L]
        lb_ref = refs[4 + 3 * L]
        out_ref = refs[5 + 3 * L]
        seq_scr = refs[6 + 3 * L]

        h = None
        for l in range(L):
            wih_ref = layer_refs[3 * l + 0]
            whh_ref = layer_refs[3 * l + 1]
            b_ref = layer_refs[3 * l + 2]

            # Layer input for ALL timesteps as one (T*Bp, in_dim) slab.
            layer_in = x_ref[...] if l == 0 else seq_scr[...]

            # Hoisted input projection + fused bias: one big MXU matmul.
            gates_x = (
                jnp.dot(layer_in, wih_ref[...],
                        preferred_element_type=jnp.float32)
                + b_ref[...]
            )                                            # (T*Bp, 4*Hp)

            w_hh = whh_ref[...]                          # (Hp, 4*Hp)
            h = h0_ref[l]                                # (Bp, Hp)
            c = c0_ref[l]                                # (Bp, Hp)

            # Serial recurrence (fully unrolled, static T): only h @ W_hh and
            # the gate nonlinearities remain on the critical path.
            for t in range(T):
                g = gates_x[t * Bp:(t + 1) * Bp, :] + jnp.dot(
                    h, w_hh, preferred_element_type=jnp.float32)
                i_g = jax.nn.sigmoid(g[:, 0 * Hp:1 * Hp])   # lane-aligned slices
                f_g = jax.nn.sigmoid(g[:, 1 * Hp:2 * Hp])
                g_g = jnp.tanh(g[:, 2 * Hp:3 * Hp])
                o_g = jax.nn.sigmoid(g[:, 3 * Hp:4 * Hp])
                c = f_g * c + i_g * g_g
                h = o_g * jnp.tanh(c)
                if l < L - 1:
                    # Hidden sequence for the next layer stays in VMEM scratch.
                    seq_scr[t * Bp:(t + 1) * Bp, :] = h

        # Fused linear head on the last timestep of the last layer only.
        out_ref[...] = (
            jnp.dot(h, lw_ref[...], preferred_element_type=jnp.float32)
            + lb_ref[...]
        )

    return kernel


# ----------------------------------------------------------------------------
# Forward wrapper
# ----------------------------------------------------------------------------
def lstm_glove_forward(kparams, x_tokens, h0, c0):
    """kparams: kernel-layout params (see prepare_kernel_params).
    x_tokens: (B, T) int32; h0/c0: (L, B, H). Returns (B, out_len) f32."""
    B, T = x_tokens.shape
    L, _, H = h0.shape
    Hp = kparams["w_hh_t_0"].shape[0]
    Bp = _round_up(max(B, 8), 8)
    O = kparams["lin_w_t"].shape[-1]

    # Embedding gather, directly time-major (avoids a transposed HBM copy).
    emb_seq = kparams["emb"][x_tokens.T]                       # (T, B, E)
    E = emb_seq.shape[-1]

    # Zero-pad batch -> Bp sublanes, hidden -> Hp lanes (exact; undone below).
    x_p = jnp.zeros((T, Bp, E), jnp.float32).at[:, :B, :].set(emb_seq)
    x_p = x_p.reshape(T * Bp, E)
    h0_p = jnp.zeros((L, Bp, Hp), jnp.float32).at[:, :B, :H].set(h0)
    c0_p = jnp.zeros((L, Bp, Hp), jnp.float32).at[:, :B, :H].set(c0)

    layer_args = []
    for l in range(L):
        layer_args += [kparams[f"w_ih_t_{l}"], kparams[f"w_hh_t_{l}"],
                       kparams[f"b_{l}"]]

    out_p = pl.pallas_call(
        _make_fused_lstm_kernel(T, Bp, Hp, L),
        out_shape=jax.ShapeDtypeStruct((Bp, O), jnp.float32),
        # No grid: single invocation, whole (tiny) problem resident in VMEM.
        scratch_shapes=[pltpu.VMEM((T * Bp, Hp), jnp.float32)],
        compiler_params=pltpu.CompilerParams(
            vmem_limit_bytes=32 * 1024 * 1024),
    )(x_p, h0_p, c0_p, *layer_args, kparams["lin_w_t"], kparams["lin_b"])

    return out_p[:B]


# ----------------------------------------------------------------------------
# Parameters: PyTorch-layout ("raw") and padded kernel layout
# ----------------------------------------------------------------------------
def make_raw_params(key, vocab, emb_dim, hidden_dim, n_layers, out_len):
    """Same shapes / init style as the PyTorch module (gate order i,f,g,o)."""
    ks = iter(jax.random.split(key, 1 + 4 * n_layers + 2))
    p = {"emb": jax.random.normal(next(ks), (vocab, emb_dim), jnp.float32)}
    bound = 1.0 / float(hidden_dim) ** 0.5
    for l in range(n_layers):
        in_dim = emb_dim if l == 0 else hidden_dim
        p[f"w_ih_{l}"] = jax.random.uniform(next(ks), (4 * hidden_dim, in_dim),
                                            jnp.float32, -bound, bound)
        p[f"w_hh_{l}"] = jax.random.uniform(next(ks), (4 * hidden_dim, hidden_dim),
                                            jnp.float32, -bound, bound)
        p[f"b_ih_{l}"] = jax.random.uniform(next(ks), (4 * hidden_dim,),
                                            jnp.float32, -bound, bound)
        p[f"b_hh_{l}"] = jax.random.uniform(next(ks), (4 * hidden_dim,),
                                            jnp.float32, -bound, bound)
    p["lin_w"] = jax.random.uniform(next(ks), (out_len, hidden_dim),
                                    jnp.float32, -bound, bound)
    p["lin_b"] = jax.random.uniform(next(ks), (out_len,),
                                    jnp.float32, -bound, bound)
    return p


def prepare_kernel_params(raw, emb_dim, hidden_dim, n_layers, lane=128):
    """Transpose to (in, 4H) layout, fuse the two biases, and zero-pad EACH gate
    block of H to Hp (multiple of 128 lanes). Zero padding is exact: padded
    gate pre-activations are 0 -> i=f=o=0.5, g=0, and with zero-padded h0/c0
    the padded state stays exactly 0 for all timesteps."""
    H = hidden_dim
    Hp = _round_up(H, lane)
    kp = {"emb": raw["emb"]}
    for l in range(n_layers):
        in_dim = emb_dim if l == 0 else hidden_dim
        in_dim_p = emb_dim if l == 0 else Hp        # layers > 0 consume padded h
        w_ih_t = raw[f"w_ih_{l}"].T                 # (in_dim, 4H)
        w_hh_t = raw[f"w_hh_{l}"].T                 # (H, 4H)
        b = (raw[f"b_ih_{l}"] + raw[f"b_hh_{l}"])[None, :]   # (1, 4H)
        wih_p = jnp.zeros((in_dim_p, 4 * Hp), jnp.float32)
        whh_p = jnp.zeros((Hp, 4 * Hp), jnp.float32)
        b_p = jnp.zeros((1, 4 * Hp), jnp.float32)
        for g in range(4):                          # i, f, g, o gate blocks
            wih_p = wih_p.at[:in_dim, g * Hp:g * Hp + H].set(
                w_ih_t[:, g * H:(g + 1) * H])
            whh_p = whh_p.at[:H, g * Hp:g * Hp + H].set(
                w_hh_t[:, g * H:(g + 1) * H])
            b_p = b_p.at[:, g * Hp:g * Hp + H].set(b[:, g * H:(g + 1) * H])
        kp[f"w_ih_t_{l}"] = wih_p
        kp[f"w_hh_t_{l}"] = whh_p
        kp[f"b_{l}"] = b_p
    kp["lin_w_t"] = (jnp.zeros((Hp, raw["lin_w"].shape[0]), jnp.float32)
                     .at[:H, :].set(raw["lin_w"].T))
    kp["lin_b"] = raw["lin_b"][None, :]
    return kp


# ----------------------------------------------------------------------------
# Pure-JAX replica of the PyTorch forward (sanity check only)
# ----------------------------------------------------------------------------
def reference_forward(raw, x_tokens, h0, c0):
    emb = raw["emb"][x_tokens]                     # (B, T, E)
    _, T, _ = emb.shape
    L, _, H = h0.shape
    seq = emb
    for l in range(L):
        w_ih, w_hh = raw[f"w_ih_{l}"], raw[f"w_hh_{l}"]
        b = raw[f"b_ih_{l}"] + raw[f"b_hh_{l}"]
        h, c = h0[l], c0[l]
        outs = []
        for t in range(T):
            g = seq[:, t, :] @ w_ih.T + h @ w_hh.T + b
            i_g = jax.nn.sigmoid(g[:, 0 * H:1 * H])
            f_g = jax.nn.sigmoid(g[:, 1 * H:2 * H])
            g_g = jnp.tanh(g[:, 2 * H:3 * H])
            o_g = jax.nn.sigmoid(g[:, 3 * H:4 * H])
            c = f_g * c + i_g * g_g
            h = o_g * jnp.tanh(c)
            outs.append(h)
        seq = jnp.stack(outs, axis=1)              # (B, T, H)
    return seq[:, -1, :] @ raw["lin_w"].T + raw["lin_b"]


if __name__ == "__main__":
    # Small shapes consistent with the module.
    B, T = 2, 8          # batch, sequence length
    V, E = 20, 32        # vocab size, glove embedding dim
    H, L = 32, 2         # hidden dim, num LSTM layers
    OUT = 4              # out_len

    key = jax.random.PRNGKey(0)
    k_par, k_tok, k_h0, k_c0 = jax.random.split(key, 4)

    raw = make_raw_params(k_par, V, E, H, L, OUT)
    kparams = prepare_kernel_params(raw, E, H, L)

    x_tokens = jax.random.randint(k_tok, (B, T), 0, V, dtype=jnp.int32)
    # torch.rand equivalents for the initial states (deterministic here).
    h0 = jax.random.uniform(k_h0, (L, B, H), jnp.float32)
    c0 = jax.random.uniform(k_c0, (L, B, H), jnp.float32)

    fwd = jax.jit(lstm_glove_forward)
    out = fwd(kparams, x_tokens, h0, c0)
    jax.block_until_ready(out)

    assert out.shape == (B, OUT), out.shape
    assert bool(jnp.all(jnp.isfinite(out)))

    # Sanity check against the pure-JAX replica of the PyTorch forward.
    ref = jax.jit(reference_forward)(raw, x_tokens, h0, c0)
    max_err = float(jnp.max(jnp.abs(out - ref)))
    assert max_err < 5e-2, f"kernel vs reference max abs err {max_err}"

    print("KERNEL_OK")
</pallas_src>

<mosaic_0001>
module attributes {stable_mosaic.version = 11 : i64} {
  func.func @kernel(%arg0: memref<64x32xf32, #tpu.memory_space<vmem>>, %arg1: memref<2x8x128xf32, #tpu.memory_space<vmem>>, %arg2: memref<2x8x128xf32, #tpu.memory_space<vmem>>, %arg3: memref<32x512xf32, #tpu.memory_space<vmem>>, %arg4: memref<128x512xf32, #tpu.memory_space<vmem>>, %arg5: memref<1x512xf32, #tpu.memory_space<vmem>>, %arg6: memref<128x512xf32, #tpu.memory_space<vmem>>, %arg7: memref<128x512xf32, #tpu.memory_space<vmem>>, %arg8: memref<1x512xf32, #tpu.memory_space<vmem>>, %arg9: memref<128x4xf32, #tpu.memory_space<vmem>>, %arg10: memref<1x4xf32, #tpu.memory_space<vmem>>, %arg11: memref<8x4xf32, #tpu.memory_space<vmem>>, %arg12: memref<64x128xf32, #tpu.memory_space<vmem>>) attributes {dimension_semantics = [], scalar_prefetch = 0 : i64, scratch_operands = 1 : i64, tpu.core_type = #tpu.core_type<tc>} {
    %c0 = arith.constant 0 : index
    %c0_0 = arith.constant 0 : index
    %0 = vector.load %arg0[%c0, %c0_0] : memref<64x32xf32, #tpu.memory_space<vmem>>, vector<64x32xf32>
    %c0_1 = arith.constant 0 : index
    %c0_2 = arith.constant 0 : index
    %1 = vector.load %arg3[%c0_1, %c0_2] : memref<32x512xf32, #tpu.memory_space<vmem>>, vector<32x512xf32>
    %cst = arith.constant dense<0.000000e+00> : vector<64x512xf32>
    %2 = tpu.matmul %0, %1, %cst {dimension_numbers = #tpu.dot_dimension_numbers<[1], [0], [0], [1], [0, 0, 1, 1], [], []>} : vector<64x32xf32>, vector<32x512xf32>, vector<64x512xf32> -> vector<64x512xf32>
    %c0_3 = arith.constant 0 : index
    %c0_4 = arith.constant 0 : index
    %3 = vector.load %arg5[%c0_3, %c0_4] : memref<1x512xf32, #tpu.memory_space<vmem>>, vector<1x512xf32>
    %4 = vector.broadcast %3 : vector<1x512xf32> to vector<64x512xf32>
    %5 = arith.addf %2, %4 : vector<64x512xf32>
    %c0_5 = arith.constant 0 : index
    %c0_6 = arith.constant 0 : index
    %6 = vector.load %arg4[%c0_5, %c0_6] : memref<128x512xf32, #tpu.memory_space<vmem>>, vector<128x512xf32>
    %c0_7 = arith.constant 0 : index
    %c0_8 = arith.constant 0 : index
    %c0_9 = arith.constant 0 : index
    %7 = vector.load %arg1[%c0_7, %c0_8, %c0_9] : memref<2x8x128xf32, #tpu.memory_space<vmem>>, vector<1x8x128xf32>
    %8 = vector.shape_cast %7 : vector<1x8x128xf32> to vector<8x128xf32>
    %c0_10 = arith.constant 0 : index
    %c0_11 = arith.constant 0 : index
    %c0_12 = arith.constant 0 : index
    %9 = vector.load %arg2[%c0_10, %c0_11, %c0_12] : memref<2x8x128xf32, #tpu.memory_space<vmem>>, vector<1x8x128xf32>
    %10 = vector.shape_cast %9 : vector<1x8x128xf32> to vector<8x128xf32>
    %11 = vector.extract_strided_slice %5 {offsets = [0, 0], sizes = [8, 512], strides = [1, 1]} : vector<64x512xf32> to vector<8x512xf32>
    %cst_13 = arith.constant dense<0.000000e+00> : vector<8x512xf32>
    %12 = tpu.matmul %8, %6, %cst_13 {dimension_numbers = #tpu.dot_dimension_numbers<[1], [0], [0], [1], [0, 0, 1, 1], [], []>} : vector<8x128xf32>, vector<128x512xf32>, vector<8x512xf32> -> vector<8x512xf32>
    %13 = arith.addf %11, %12 : vector<8x512xf32>
    %14 = vector.extract_strided_slice %13 {offsets = [0, 0], sizes = [8, 128], strides = [1, 1]} : vector<8x512xf32> to vector<8x128xf32>
    %15 = arith.negf %14 : vector<8x128xf32>
    %16 = math.exp %15 : vector<8x128xf32>
    %cst_14 = arith.constant 1.000000e+00 : f32
    %17 = vector.broadcast %cst_14 : f32 to vector<8x128xf32>
    %18 = arith.addf %17, %16 : vector<8x128xf32>
    %19 = arith.divf %17, %18 : vector<8x128xf32>
    %20 = vector.extract_strided_slice %13 {offsets = [0, 128], sizes = [8, 128], strides = [1, 1]} : vector<8x512xf32> to vector<8x128xf32>
    %21 = arith.negf %20 : vector<8x128xf32>
    %22 = math.exp %21 : vector<8x128xf32>
    %cst_15 = arith.constant 1.000000e+00 : f32
    %23 = vector.broadcast %cst_15 : f32 to vector<8x128xf32>
    %24 = arith.addf %23, %22 : vector<8x128xf32>
    %25 = arith.divf %23, %24 : vector<8x128xf32>
    %26 = vector.extract_strided_slice %13 {offsets = [0, 256], sizes = [8, 128], strides = [1, 1]} : vector<8x512xf32> to vector<8x128xf32>
    %27 = math.tanh %26 : vector<8x128xf32>
    %28 = vector.extract_strided_slice %13 {offsets = [0, 384], sizes = [8, 128], strides = [1, 1]} : vector<8x512xf32> to vector<8x128xf32>
    %29 = arith.negf %28 : vector<8x128xf32>
    %30 = math.exp %29 : vector<8x128xf32>
    %cst_16 = arith.constant 1.000000e+00 : f32
    %31 = vector.broadcast %cst_16 : f32 to vector<8x128xf32>
    %32 = arith.addf %31, %30 : vector<8x128xf32>
    %33 = arith.divf %31, %32 : vector<8x128xf32>
    %34 = arith.mulf %25, %10 : vector<8x128xf32>
    %35 = arith.mulf %19, %27 : vector<8x128xf32>
    %36 = arith.addf %34, %35 : vector<8x128xf32>
    %37 = math.tanh %36 : vector<8x128xf32>
    %38 = arith.mulf %33, %37 : vector<8x128xf32>
    %c0_17 = arith.constant 0 : index
    %c0_18 = arith.constant 0 : index
    %39 = vector.load %arg12[%c0_17, %c0_18] : memref<64x128xf32, #tpu.memory_space<vmem>>, vector<8x128xf32>
    tpu.vector_store %arg12[%c0_17, %c0_18], %38 {strides = array<i32>} : memref<64x128xf32, #tpu.memory_space<vmem>>, vector<8x128xf32>,
    %40 = vector.extract_strided_slice %5 {offsets = [8, 0], sizes = [8, 512], strides = [1, 1]} : vector<64x512xf32> to vector<8x512xf32>
    %cst_19 = arith.constant dense<0.000000e+00> : vector<8x512xf32>
    %41 = tpu.matmul %38, %6, %cst_19 {dimension_numbers = #tpu.dot_dimension_numbers<[1], [0], [0], [1], [0, 0, 1, 1], [], []>} : vector<8x128xf32>, vector<128x512xf32>, vector<8x512xf32> -> vector<8x512xf32>
    %42 = arith.addf %40, %41 : vector<8x512xf32>
    %43 = vector.extract_strided_slice %42 {offsets = [0, 0], sizes = [8, 128], strides = [1, 1]} : vector<8x512xf32> to vector<8x128xf32>
    %44 = arith.negf %43 : vector<8x128xf32>
    %45 = math.exp %44 : vector<8x128xf32>
    %cst_20 = arith.constant 1.000000e+00 : f32
    %46 = vector.broadcast %cst_20 : f32 to vector<8x128xf32>
    %47 = arith.addf %46, %45 : vector<8x128xf32>
    %48 = arith.divf %46, %47 : vector<8x128xf32>
    %49 = vector.extract_strided_slice %42 {offsets = [0, 128], sizes = [8, 128], strides = [1, 1]} : vector<8x512xf32> to vector<8x128xf32>
    %50 = arith.negf %49 : vector<8x128xf32>
    %51 = math.exp %50 : vector<8x128xf32>
    %cst_21 = arith.constant 1.000000e+00 : f32
    %52 = vector.broadcast %cst_21 : f32 to vector<8x128xf32>
    %53 = arith.addf %52, %51 : vector<8x128xf32>
    %54 = arith.divf %52, %53 : vector<8x128xf32>
    %55 = vector.extract_strided_slice %42 {offsets = [0, 256], sizes = [8, 128], strides = [1, 1]} : vector<8x512xf32> to vector<8x128xf32>
    %56 = math.tanh %55 : vector<8x128xf32>
    %57 = vector.extract_strided_slice %42 {offsets = [0, 384], sizes = [8, 128], strides = [1, 1]} : vector<8x512xf32> to vector<8x128xf32>
    %58 = arith.negf %57 : vector<8x128xf32>
    %59 = math.exp %58 : vector<8x128xf32>
    %cst_22 = arith.constant 1.000000e+00 : f32
    %60 = vector.broadcast %cst_22 : f32 to vector<8x128xf32>
    %61 = arith.addf %60, %59 : vector<8x128xf32>
    %62 = arith.divf %60, %61 : vector<8x128xf32>
    %63 = arith.mulf %54, %36 : vector<8x128xf32>
    %64 = arith.mulf %48, %56 : vector<8x128xf32>
    %65 = arith.addf %63, %64 : vector<8x128xf32>
    %66 = math.tanh %65 : vector<8x128xf32>
    %67 = arith.mulf %62, %66 : vector<8x128xf32>
    %c8 = arith.constant 8 : index
    %c0_23 = arith.constant 0 : index
    %68 = vector.load %arg12[%c8, %c0_23] : memref<64x128xf32, #tpu.memory_space<vmem>>, vector<8x128xf32>
    tpu.vector_store %arg12[%c8, %c0_23], %67 {strides = array<i32>} : memref<64x128xf32, #tpu.memory_space<vmem>>, vector<8x128xf32>,
    %69 = vector.extract_strided_slice %5 {offsets = [16, 0], sizes = [8, 512], strides = [1, 1]} : vector<64x512xf32> to vector<8x512xf32>
    %cst_24 = arith.constant dense<0.000000e+00> : vector<8x512xf32>
    %70 = tpu.matmul %67, %6, %cst_24 {dimension_numbers = #tpu.dot_dimension_numbers<[1], [0], [0], [1], [0, 0, 1, 1], [], []>} : vector<8x128xf32>, vector<128x512xf32>, vector<8x512xf32> -> vector<8x512xf32>
    %71 = arith.addf %69, %70 : vector<8x512xf32>
    %72 = vector.extract_strided_slice %71 {offsets = [0, 0], sizes = [8, 128], strides = [1, 1]} : vector<8x512xf32> to vector<8x128xf32>
    %73 = arith.negf %72 : vector<8x128xf32>
    %74 = math.exp %73 : vector<8x128xf32>
    %cst_25 = arith.constant 1.000000e+00 : f32
    %75 = vector.broadcast %cst_25 : f32 to vector<8x128xf32>
    %76 = arith.addf %75, %74 : vector<8x128xf32>
    %77 = arith.divf %75, %76 : vector<8x128xf32>
    %78 = vector.extract_strided_slice %71 {offsets = [0, 128], sizes = [8, 128], strides = [1, 1]} : vector<8x512xf32> to vector<8x128xf32>
    %79 = arith.negf %78 : vector<8x128xf32>
    %80 = math.exp %79 : vector<8x128xf32>
    %cst_26 = arith.constant 1.000000e+00 : f32
    %81 = vector.broadcast %cst_26 : f32 to vector<8x128xf32>
    %82 = arith.addf %81, %80 : vector<8x128xf32>
    %83 = arith.divf %81, %82 : vector<8x128xf32>
    %84 = vector.extract_strided_slice %71 {offsets = [0, 256], sizes = [8, 128], strides = [1, 1]} : vector<8x512xf32> to vector<8x128xf32>
    %85 = math.tanh %84 : vector<8x128xf32>
    %86 = vector.extract_strided_slice %71 {offsets = [0, 384], sizes = [8, 128], strides = [1, 1]} : vector<8x512xf32> to vector<8x128xf32>
    %87 = arith.negf %86 : vector<8x128xf32>
    %88 = math.exp %87 : vector<8x128xf32>
    %cst_27 = arith.constant 1.000000e+00 : f32
    %89 = vector.broadcast %cst_27 : f32 to vector<8x128xf32>
    %90 = arith.addf %89, %88 : vector<8x128xf32>
    %91 = arith.divf %89, %90 : vector<8x128xf32>
    %92 = arith.mulf %83, %65 : vector<8x128xf32>
    %93 = arith.mulf %77, %85 : vector<8x128xf32>
    %94 = arith.addf %92, %93 : vector<8x128xf32>
    %95 = math.tanh %94 : vector<8x128xf32>
    %96 = arith.mulf %91, %95 : vector<8x128xf32>
    %c16 = arith.constant 16 : index
    %c0_28 = arith.constant 0 : index
    %97 = vector.load %arg12[%c16, %c0_28] : memref<64x128xf32, #tpu.memory_space<vmem>>, vector<8x128xf32>
    tpu.vector_store %arg12[%c16, %c0_28], %96 {strides = array<i32>} : memref<64x128xf32, #tpu.memory_space<vmem>>, vector<8x128xf32>,
    %98 = vector.extract_strided_slice %5 {offsets = [24, 0], sizes = [8, 512], strides = [1, 1]} : vector<64x512xf32> to vector<8x512xf32>
    %cst_29 = arith.constant dense<0.000000e+00> : vector<8x512xf32>
    %99 = tpu.matmul %96, %6, %cst_29 {dimension_numbers = #tpu.dot_dimension_numbers<[1], [0], [0], [1], [0, 0, 1, 1], [], []>} : vector<8x128xf32>, vector<128x512xf32>, vector<8x512xf32> -> vector<8x512xf32>
    %100 = arith.addf %98, %99 : vector<8x512xf32>
    %101 = vector.extract_strided_slice %100 {offsets = [0, 0], sizes = [8, 128], strides = [1, 1]} : vector<8x512xf32> to vector<8x128xf32>
    %102 = arith.negf %101 : vector<8x128xf32>
    %103 = math.exp %102 : vector<8x128xf32>
    %cst_30 = arith.constant 1.000000e+00 : f32
    %104 = vector.broadcast %cst_30 : f32 to vector<8x128xf32>
    %105 = arith.addf %104, %103 : vector<8x128xf32>
    %106 = arith.divf %104, %105 : vector<8x128xf32>
    %107 = vector.extract_strided_slice %100 {offsets = [0, 128], sizes = [8, 128], strides = [1, 1]} : vector<8x512xf32> to vector<8x128xf32>
    %108 = arith.negf %107 : vector<8x128xf32>
    %109 = math.exp %108 : vector<8x128xf32>
    %cst_31 = arith.constant 1.000000e+00 : f32
    %110 = vector.broadcast %cst_31 : f32 to vector<8x128xf32>
    %111 = arith.addf %110, %109 : vector<8x128xf32>
    %112 = arith.divf %110, %111 : vector<8x128xf32>
    %113 = vector.extract_strided_slice %100 {offsets = [0, 256], sizes = [8, 128], strides = [1, 1]} : vector<8x512xf32> to vector<8x128xf32>
    %114 = math.tanh %113 : vector<8x128xf32>
    %115 = vector.extract_strided_slice %100 {offsets = [0, 384], sizes = [8, 128], strides = [1, 1]} : vector<8x512xf32> to vector<8x128xf32>
    %116 = arith.negf %115 : vector<8x128xf32>
    %117 = math.exp %116 : vector<8x128xf32>
    %cst_32 = arith.constant 1.000000e+00 : f32
    %118 = vector.broadcast %cst_32 : f32 to vector<8x128xf32>
    %119 = arith.addf %118, %117 : vector<8x128xf32>
    %120 = arith.divf %118, %119 : vector<8x128xf32>
    %121 = arith.mulf %112, %94 : vector<8x128xf32>
    %122 = arith.mulf %106, %114 : vector<8x128xf32>
    %123 = arith.addf %121, %122 : vector<8x128xf32>
    %124 = math.tanh %123 : vector<8x128xf32>
    %125 = arith.mulf %120, %124 : vector<8x128xf32>
    %c24 = arith.constant 24 : index
    %c0_33 = arith.constant 0 : index
    %126 = vector.load %arg12[%c24, %c0_33] : memref<64x128xf32, #tpu.memory_space<vmem>>, vector<8x128xf32>
    tpu.vector_store %arg12[%c24, %c0_33], %125 {strides = array<i32>} : memref<64x128xf32, #tpu.memory_space<vmem>>, vector<8x128xf32>,
    %127 = vector.extract_strided_slice %5 {offsets = [32, 0], sizes = [8, 512], strides = [1, 1]} : vector<64x512xf32> to vector<8x512xf32>
    %cst_34 = arith.constant dense<0.000000e+00> : vector<8x512xf32>
    %128 = tpu.matmul %125, %6, %cst_34 {dimension_numbers = #tpu.dot_dimension_numbers<[1], [0], [0], [1], [0, 0, 1, 1], [], []>} : vector<8x128xf32>, vector<128x512xf32>, vector<8x512xf32> -> vector<8x512xf32>
    %129 = arith.addf %127, %128 : vector<8x512xf32>
    %130 = vector.extract_strided_slice %129 {offsets = [0, 0], sizes = [8, 128], strides = [1, 1]} : vector<8x512xf32> to vector<8x128xf32>
    %131 = arith.negf %130 : vector<8x128xf32>
    %132 = math.exp %131 : vector<8x128xf32>
    %cst_35 = arith.constant 1.000000e+00 : f32
    %133 = vector.broadcast %cst_35 : f32 to vector<8x128xf32>
    %134 = arith.addf %133, %132 : vector<8x128xf32>
    %135 = arith.divf %133, %134 : vector<8x128xf32>
    %136 = vector.extract_strided_slice %129 {offsets = [0, 128], sizes = [8, 128], strides = [1, 1]} : vector<8x512xf32> to vector<8x128xf32>
    %137 = arith.negf %136 : vector<8x128xf32>
    %138 = math.exp %137 : vector<8x128xf32>
    %cst_36 = arith.constant 1.000000e+00 : f32
    %139 = vector.broadcast %cst_36 : f32 to vector<8x128xf32>
    %140 = arith.addf %139, %138 : vector<8x128xf32>
    %141 = arith.divf %139, %140 : vector<8x128xf32>
    %142 = vector.extract_strided_slice %129 {offsets = [0, 256], sizes = [8, 128], strides = [1, 1]} : vector<8x512xf32> to vector<8x128xf32>
    %143 = math.tanh %142 : vector<8x128xf32>
    %144 = vector.extract_strided_slice %129 {offsets = [0, 384], sizes = [8, 128], strides = [1, 1]} : vector<8x512xf32> to vector<8x128xf32>
    %145 = arith.negf %144 : vector<8x128xf32>
    %146 = math.exp %145 : vector<8x128xf32>
    %cst_37 = arith.constant 1.000000e+00 : f32
    %147 = vector.broadcast %cst_37 : f32 to vector<8x128xf32>
    %148 = arith.addf %147, %146 : vector<8x128xf32>
    %149 = arith.divf %147, %148 : vector<8x128xf32>
    %150 = arith.mulf %141, %123 : vector<8x128xf32>
    %151 = arith.mulf %135, %143 : vector<8x128xf32>
    %152 = arith.addf %150, %151 : vector<8x128xf32>
    %153 = math.tanh %152 : vector<8x128xf32>
    %154 = arith.mulf %149, %153 : vector<8x128xf32>
    %c32 = arith.constant 32 : index
    %c0_38 = arith.constant 0 : index
    %155 = vector.load %arg12[%c32, %c0_38] : memref<64x128xf32, #tpu.memory_space<vmem>>, vector<8x128xf32>
    tpu.vector_store %arg12[%c32, %c0_38], %154 {strides = array<i32>} : memref<64x128xf32, #tpu.memory_space<vmem>>, vector<8x128xf32>,
    %156 = vector.extract_strided_slice %5 {offsets = [40, 0], sizes = [8, 512], strides = [1, 1]} : vector<64x512xf32> to vector<8x512xf32>
    %cst_39 = arith.constant dense<0.000000e+00> : vector<8x512xf32>
    %157 = tpu.matmul %154, %6, %cst_39 {dimension_numbers = #tpu.dot_dimension_numbers<[1], [0], [0], [1], [0, 0, 1, 1], [], []>} : vector<8x128xf32>, vector<128x512xf32>, vector<8x512xf32> -> vector<8x512xf32>
    %158 = arith.addf %156, %157 : vector<8x512xf32>
    %159 = vector.extract_strided_slice %158 {offsets = [0, 0], sizes = [8, 128], strides = [1, 1]} : vector<8x512xf32> to vector<8x128xf32>
    %160 = arith.negf %159 : vector<8x128xf32>
    %161 = math.exp %160 : vector<8x128xf32>
    %cst_40 = arith.constant 1.000000e+00 : f32
    %162 = vector.broadcast %cst_40 : f32 to vector<8x128xf32>
    %163 = arith.addf %162, %161 : vector<8x128xf32>
    %164 = arith.divf %162, %163 : vector<8x128xf32>
    %165 = vector.extract_strided_slice %158 {offsets = [0, 128], sizes = [8, 128], strides = [1, 1]} : vector<8x512xf32> to vector<8x128xf32>
    %166 = arith.negf %165 : vector<8x128xf32>
    %167 = math.exp %166 : vector<8x128xf32>
    %cst_41 = arith.constant 1.000000e+00 : f32
    %168 = vector.broadcast %cst_41 : f32 to vector<8x128xf32>
    %169 = arith.addf %168, %167 : vector<8x128xf32>
    %170 = arith.divf %168, %169 : vector<8x128xf32>
    %171 = vector.extract_strided_slice %158 {offsets = [0, 256], sizes = [8, 128], strides = [1, 1]} : vector<8x512xf32> to vector<8x128xf32>
    %172 = math.tanh %171 : vector<8x128xf32>
    %173 = vector.extract_strided_slice %158 {offsets = [0, 384], sizes = [8, 128], strides = [1, 1]} : vector<8x512xf32> to vector<8x128xf32>
    %174 = arith.negf %173 : vector<8x128xf32>
    %175 = math.exp %174 : vector<8x128xf32>
    %cst_42 = arith.constant 1.000000e+00 : f32
    %176 = vector.broadcast %cst_42 : f32 to vector<8x128xf32>
    %177 = arith.addf %176, %175 : vector<8x128xf32>
    %178 = arith.divf %176, %177 : vector<8x128xf32>
    %179 = arith.mulf %170, %152 : vector<8x128xf32>
    %180 = arith.mulf %164, %172 : vector<8x128xf32>
    %181 = arith.addf %179, %180 : vector<8x128xf32>
    %182 = math.tanh %181 : vector<8x128xf32>
    %183 = arith.mulf %178, %182 : vector<8x128xf32>
    %c40 = arith.constant 40 : index
    %c0_43 = arith.constant 0 : index
    %184 = vector.load %arg12[%c40, %c0_43] : memref<64x128xf32, #tpu.memory_space<vmem>>, vector<8x128xf32>
    tpu.vector_store %arg12[%c40, %c0_43], %183 {strides = array<i32>} : memref<64x128xf32, #tpu.memory_space<vmem>>, vector<8x128xf32>,
    %185 = vector.extract_strided_slice %5 {offsets = [48, 0], sizes = [8, 512], strides = [1, 1]} : vector<64x512xf32> to vector<8x512xf32>
    %cst_44 = arith.constant dense<0.000000e+00> : vector<8x512xf32>
    %186 = tpu.matmul %183, %6, %cst_44 {dimension_numbers = #tpu.dot_dimension_numbers<[1], [0], [0], [1], [0, 0, 1, 1], [], []>} : vector<8x128xf32>, vector<128x512xf32>, vector<8x512xf32> -> vector<8x512xf32>
    %187 = arith.addf %185, %186 : vector<8x512xf32>
    %188 = vector.extract_strided_slice %187 {offsets = [0, 0], sizes = [8, 128], strides = [1, 1]} : vector<8x512xf32> to vector<8x128xf32>
    %189 = arith.negf %188 : vector<8x128xf32>
    %190 = math.exp %189 : vector<8x128xf32>
    %cst_45 = arith.constant 1.000000e+00 : f32
    %191 = vector.broadcast %cst_45 : f32 to vector<8x128xf32>
    %192 = arith.addf %191, %190 : vector<8x128xf32>
    %193 = arith.divf %191, %192 : vector<8x128xf32>
    %194 = vector.extract_strided_slice %187 {offsets = [0, 128], sizes = [8, 128], strides = [1, 1]} : vector<8x512xf32> to vector<8x128xf32>
    %195 = arith.negf %194 : vector<8x128xf32>
    %196 = math.exp %195 : vector<8x128xf32>
    %cst_46 = arith.constant 1.000000e+00 : f32
    %197 = vector.broadcast %cst_46 : f32 to vector<8x128xf32>
    %198 = arith.addf %197, %196 : vector<8x128xf32>
    %199 = arith.divf %197, %198 : vector<8x128xf32>
    %200 = vector.extract_strided_slice %187 {offsets = [0, 256], sizes = [8, 128], strides = [1, 1]} : vector<8x512xf32> to vector<8x128xf32>
    %201 = math.tanh %200 : vector<8x128xf32>
    %202 = vector.extract_strided_slice %187 {offsets = [0, 384], sizes = [8, 128], strides = [1, 1]} : vector<8x512xf32> to vector<8x128xf32>
    %203 = arith.negf %202 : vector<8x128xf32>
    %204 = math.exp %203 : vector<8x128xf32>
    %cst_47 = arith.constant 1.000000e+00 : f32
    %205 = vector.broadcast %cst_47 : f32 to vector<8x128xf32>
    %206 = arith.addf %205, %204 : vector<8x128xf32>
    %207 = arith.divf %205, %206 : vector<8x128xf32>
    %208 = arith.mulf %199, %181 : vector<8x128xf32>
    %209 = arith.mulf %193, %201 : vector<8x128xf32>
    %210 = arith.addf %208, %209 : vector<8x128xf32>
    %211 = math.tanh %210 : vector<8x128xf32>
    %212 = arith.mulf %207, %211 : vector<8x128xf32>
    %c48 = arith.constant 48 : index
    %c0_48 = arith.constant 0 : index
    %213 = vector.load %arg12[%c48, %c0_48] : memref<64x128xf32, #tpu.memory_space<vmem>>, vector<8x128xf32>
    tpu.vector_store %arg12[%c48, %c0_48], %212 {strides = array<i32>} : memref<64x128xf32, #tpu.memory_space<vmem>>, vector<8x128xf32>,
    %214 = vector.extract_strided_slice %5 {offsets = [56, 0], sizes = [8, 512], strides = [1, 1]} : vector<64x512xf32> to vector<8x512xf32>
    %cst_49 = arith.constant dense<0.000000e+00> : vector<8x512xf32>
    %215 = tpu.matmul %212, %6, %cst_49 {dimension_numbers = #tpu.dot_dimension_numbers<[1], [0], [0], [1], [0, 0, 1, 1], [], []>} : vector<8x128xf32>, vector<128x512xf32>, vector<8x512xf32> -> vector<8x512xf32>
    %216 = arith.addf %214, %215 : vector<8x512xf32>
    %217 = vector.extract_strided_slice %216 {offsets = [0, 0], sizes = [8, 128], strides = [1, 1]} : vector<8x512xf32> to vector<8x128xf32>
    %218 = arith.negf %217 : vector<8x128xf32>
    %219 = math.exp %218 : vector<8x128xf32>
    %cst_50 = arith.constant 1.000000e+00 : f32
    %220 = vector.broadcast %cst_50 : f32 to vector<8x128xf32>
    %221 = arith.addf %220, %219 : vector<8x128xf32>
    %222 = arith.divf %220, %221 : vector<8x128xf32>
    %223 = vector.extract_strided_slice %216 {offsets = [0, 128], sizes = [8, 128], strides = [1, 1]} : vector<8x512xf32> to vector<8x128xf32>
    %224 = arith.negf %223 : vector<8x128xf32>
    %225 = math.exp %224 : vector<8x128xf32>
    %cst_51 = arith.constant 1.000000e+00 : f32
    %226 = vector.broadcast %cst_51 : f32 to vector<8x128xf32>
    %227 = arith.addf %226, %225 : vector<8x128xf32>
    %228 = arith.divf %226, %227 : vector<8x128xf32>
    %229 = vector.extract_strided_slice %216 {offsets = [0, 256], sizes = [8, 128], strides = [1, 1]} : vector<8x512xf32> to vector<8x128xf32>
    %230 = math.tanh %229 : vector<8x128xf32>
    %231 = vector.extract_strided_slice %216 {offsets = [0, 384], sizes = [8, 128], strides = [1, 1]} : vector<8x512xf32> to vector<8x128xf32>
    %232 = arith.negf %231 : vector<8x128xf32>
    %233 = math.exp %232 : vector<8x128xf32>
    %cst_52 = arith.constant 1.000000e+00 : f32
    %234 = vector.broadcast %cst_52 : f32 to vector<8x128xf32>
    %235 = arith.addf %234, %233 : vector<8x128xf32>
    %236 = arith.divf %234, %235 : vector<8x128xf32>
    %237 = arith.mulf %228, %210 : vector<8x128xf32>
    %238 = arith.mulf %222, %230 : vector<8x128xf32>
    %239 = arith.addf %237, %238 : vector<8x128xf32>
    %240 = math.tanh %239 : vector<8x128xf32>
    %241 = arith.mulf %236, %240 : vector<8x128xf32>
    %c56 = arith.constant 56 : index
    %c0_53 = arith.constant 0 : index
    %242 = vector.load %arg12[%c56, %c0_53] : memref<64x128xf32, #tpu.memory_space<vmem>>, vector<8x128xf32>
    tpu.vector_store %arg12[%c56, %c0_53], %241 {strides = array<i32>} : memref<64x128xf32, #tpu.memory_space<vmem>>, vector<8x128xf32>,
    %c0_54 = arith.constant 0 : index
    %c0_55 = arith.constant 0 : index
    %243 = vector.load %arg12[%c0_54, %c0_55] : memref<64x128xf32, #tpu.memory_space<vmem>>, vector<64x128xf32>
    %c0_56 = arith.constant 0 : index
    %c0_57 = arith.constant 0 : index
    %244 = vector.load %arg6[%c0_56, %c0_57] : memref<128x512xf32, #tpu.memory_space<vmem>>, vector<128x512xf32>
    %cst_58 = arith.constant dense<0.000000e+00> : vector<64x512xf32>
    %245 = tpu.matmul %243, %244, %cst_58 {dimension_numbers = #tpu.dot_dimension_numbers<[1], [0], [0], [1], [0, 0, 1, 1], [], []>} : vector<64x128xf32>, vector<128x512xf32>, vector<64x512xf32> -> vector<64x512xf32>
    %c0_59 = arith.constant 0 : index
    %c0_60 = arith.constant 0 : index
    %246 = vector.load %arg8[%c0_59, %c0_60] : memref<1x512xf32, #tpu.memory_space<vmem>>, vector<1x512xf32>
    %247 = vector.broadcast %246 : vector<1x512xf32> to vector<64x512xf32>
    %248 = arith.addf %245, %247 : vector<64x512xf32>
    %c0_61 = arith.constant 0 : index
    %c0_62 = arith.constant 0 : index
    %249 = vector.load %arg7[%c0_61, %c0_62] : memref<128x512xf32, #tpu.memory_space<vmem>>, vector<128x512xf32>
    %c1 = arith.constant 1 : index
    %c0_63 = arith.constant 0 : index
    %c0_64 = arith.constant 0 : index
    %250 = vector.load %arg1[%c1, %c0_63, %c0_64] : memref<2x8x128xf32, #tpu.memory_space<vmem>>, vector<1x8x128xf32>
    %251 = vector.shape_cast %250 : vector<1x8x128xf32> to vector<8x128xf32>
    %c1_65 = arith.constant 1 : index
    %c0_66 = arith.constant 0 : index
    %c0_67 = arith.constant 0 : index
    %252 = vector.load %arg2[%c1_65, %c0_66, %c0_67] : memref<2x8x128xf32, #tpu.memory_space<vmem>>, vector<1x8x128xf32>
    %253 = vector.shape_cast %252 : vector<1x8x128xf32> to vector<8x128xf32>
    %254 = vector.extract_strided_slice %248 {offsets = [0, 0], sizes = [8, 512], strides = [1, 1]} : vector<64x512xf32> to vector<8x512xf32>
    %cst_68 = arith.constant dense<0.000000e+00> : vector<8x512xf32>
    %255 = tpu.matmul %251, %249, %cst_68 {dimension_numbers = #tpu.dot_dimension_numbers<[1], [0], [0], [1], [0, 0, 1, 1], [], []>} : vector<8x128xf32>, vector<128x512xf32>, vector<8x512xf32> -> vector<8x512xf32>
    %256 = arith.addf %254, %255 : vector<8x512xf32>
    %257 = vector.extract_strided_slice %256 {offsets = [0, 0], sizes = [8, 128], strides = [1, 1]} : vector<8x512xf32> to vector<8x128xf32>
    %258 = arith.negf %257 : vector<8x128xf32>
    %259 = math.exp %258 : vector<8x128xf32>
    %cst_69 = arith.constant 1.000000e+00 : f32
    %260 = vector.broadcast %cst_69 : f32 to vector<8x128xf32>
    %261 = arith.addf %260, %259 : vector<8x128xf32>
    %262 = arith.divf %260, %261 : vector<8x128xf32>
    %263 = vector.extract_strided_slice %256 {offsets = [0, 128], sizes = [8, 128], strides = [1, 1]} : vector<8x512xf32> to vector<8x128xf32>
    %264 = arith.negf %263 : vector<8x128xf32>
    %265 = math.exp %264 : vector<8x128xf32>
    %cst_70 = arith.constant 1.000000e+00 : f32
    %266 = vector.broadcast %cst_70 : f32 to vector<8x128xf32>
    %267 = arith.addf %266, %265 : vector<8x128xf32>
    %268 = arith.divf %266, %267 : vector<8x128xf32>
    %269 = vector.extract_strided_slice %256 {offsets = [0, 256], sizes = [8, 128], strides = [1, 1]} : vector<8x512xf32> to vector<8x128xf32>
    %270 = math.tanh %269 : vector<8x128xf32>
    %271 = vector.extract_strided_slice %256 {offsets = [0, 384], sizes = [8, 128], strides = [1, 1]} : vector<8x512xf32> to vector<8x128xf32>
    %272 = arith.negf %271 : vector<8x128xf32>
    %273 = math.exp %272 : vector<8x128xf32>
    %cst_71 = arith.constant 1.000000e+00 : f32
    %274 = vector.broadcast %cst_71 : f32 to vector<8x128xf32>
    %275 = arith.addf %274, %273 : vector<8x128xf32>
    %276 = arith.divf %274, %275 : vector<8x128xf32>
    %277 = arith.mulf %268, %253 : vector<8x128xf32>
    %278 = arith.mulf %262, %270 : vector<8x128xf32>
    %279 = arith.addf %277, %278 : vector<8x128xf32>
    %280 = math.tanh %279 : vector<8x128xf32>
    %281 = arith.mulf %276, %280 : vector<8x128xf32>
    %282 = vector.extract_strided_slice %248 {offsets = [8, 0], sizes = [8, 512], strides = [1, 1]} : vector<64x512xf32> to vector<8x512xf32>
    %cst_72 = arith.constant dense<0.000000e+00> : vector<8x512xf32>
    %283 = tpu.matmul %281, %249, %cst_72 {dimension_numbers = #tpu.dot_dimension_numbers<[1], [0], [0], [1], [0, 0, 1, 1], [], []>} : vector<8x128xf32>, vector<128x512xf32>, vector<8x512xf32> -> vector<8x512xf32>
    %284 = arith.addf %282, %283 : vector<8x512xf32>
    %285 = vector.extract_strided_slice %284 {offsets = [0, 0], sizes = [8, 128], strides = [1, 1]} : vector<8x512xf32> to vector<8x128xf32>
    %286 = arith.negf %285 : vector<8x128xf32>
    %287 = math.exp %286 : vector<8x128xf32>
    %cst_73 = arith.constant 1.000000e+00 : f32
    %288 = vector.broadcast %cst_73 : f32 to vector<8x128xf32>
    %289 = arith.addf %288, %287 : vector<8x128xf32>
    %290 = arith.divf %288, %289 : vector<8x128xf32>
    %291 = vector.extract_strided_slice %284 {offsets = [0, 128], sizes = [8, 128], strides = [1, 1]} : vector<8x512xf32> to vector<8x128xf32>
    %292 = arith.negf %291 : vector<8x128xf32>
    %293 = math.exp %292 : vector<8x128xf32>
    %cst_74 = arith.constant 1.000000e+00 : f32
    %294 = vector.broadcast %cst_74 : f32 to vector<8x128xf32>
    %295 = arith.addf %294, %293 : vector<8x128xf32>
    %296 = arith.divf %294, %295 : vector<8x128xf32>
    %297 = vector.extract_strided_slice %284 {offsets = [0, 256], sizes = [8, 128], strides = [1, 1]} : vector<8x512xf32> to vector<8x128xf32>
    %298 = math.tanh %297 : vector<8x128xf32>
    %299 = vector.extract_strided_slice %284 {offsets = [0, 384], sizes = [8, 128], strides = [1, 1]} : vector<8x512xf32> to vector<8x128xf32>
    %300 = arith.negf %299 : vector<8x128xf32>
    %301 = math.exp %300 : vector<8x128xf32>
    %cst_75 = arith.constant 1.000000e+00 : f32
    %302 = vector.broadcast %cst_75 : f32 to vector<8x128xf32>
    %303 = arith.addf %302, %301 : vector<8x128xf32>
    %304 = arith.divf %302, %303 : vector<8x128xf32>
    %305 = arith.mulf %296, %279 : vector<8x128xf32>
    %306 = arith.mulf %290, %298 : vector<8x128xf32>
    %307 = arith.addf %305, %306 : vector<8x128xf32>
    %308 = math.tanh %307 : vector<8x128xf32>
    %309 = arith.mulf %304, %308 : vector<8x128xf32>
    %310 = vector.extract_strided_slice %248 {offsets = [16, 0], sizes = [8, 512], strides = [1, 1]} : vector<64x512xf32> to vector<8x512xf32>
    %cst_76 = arith.constant dense<0.000000e+00> : vector<8x512xf32>
    %311 = tpu.matmul %309, %249, %cst_76 {dimension_numbers = #tpu.dot_dimension_numbers<[1], [0], [0], [1], [0, 0, 1, 1], [], []>} : vector<8x128xf32>, vector<128x512xf32>, vector<8x512xf32> -> vector<8x512xf32>
    %312 = arith.addf %310, %311 : vector<8x512xf32>
    %313 = vector.extract_strided_slice %312 {offsets = [0, 0], sizes = [8, 128], strides = [1, 1]} : vector<8x512xf32> to vector<8x128xf32>
    %314 = arith.negf %313 : vector<8x128xf32>
    %315 = math.exp %314 : vector<8x128xf32>
    %cst_77 = arith.constant 1.000000e+00 : f32
    %316 = vector.broadcast %cst_77 : f32 to vector<8x128xf32>
    %317 = arith.addf %316, %315 : vector<8x128xf32>
    %318 = arith.divf %316, %317 : vector<8x128xf32>
    %319 = vector.extract_strided_slice %312 {offsets = [0, 128], sizes = [8, 128], strides = [1, 1]} : vector<8x512xf32> to vector<8x128xf32>
    %320 = arith.negf %319 : vector<8x128xf32>
    %321 = math.exp %320 : vector<8x128xf32>
    %cst_78 = arith.constant 1.000000e+00 : f32
    %322 = vector.broadcast %cst_78 : f32 to vector<8x128xf32>
    %323 = arith.addf %322, %321 : vector<8x128xf32>
    %324 = arith.divf %322, %323 : vector<8x128xf32>
    %325 = vector.extract_strided_slice %312 {offsets = [0, 256], sizes = [8, 128], strides = [1, 1]} : vector<8x512xf32> to vector<8x128xf32>
    %326 = math.tanh %325 : vector<8x128xf32>
    %327 = vector.extract_strided_slice %312 {offsets = [0, 384], sizes = [8, 128], strides = [1, 1]} : vector<8x512xf32> to vector<8x128xf32>
    %328 = arith.negf %327 : vector<8x128xf32>
    %329 = math.exp %328 : vector<8x128xf32>
    %cst_79 = arith.constant 1.000000e+00 : f32
    %330 = vector.broadcast %cst_79 : f32 to vector<8x128xf32>
    %331 = arith.addf %330, %329 : vector<8x128xf32>
    %332 = arith.divf %330, %331 : vector<8x128xf32>
    %333 = arith.mulf %324, %307 : vector<8x128xf32>
    %334 = arith.mulf %318, %326 : vector<8x128xf32>
    %335 = arith.addf %333, %334 : vector<8x128xf32>
    %336 = math.tanh %335 : vector<8x128xf32>
    %337 = arith.mulf %332, %336 : vector<8x128xf32>
    %338 = vector.extract_strided_slice %248 {offsets = [24, 0], sizes = [8, 512], strides = [1, 1]} : vector<64x512xf32> to vector<8x512xf32>
    %cst_80 = arith.constant dense<0.000000e+00> : vector<8x512xf32>
    %339 = tpu.matmul %337, %249, %cst_80 {dimension_numbers = #tpu.dot_dimension_numbers<[1], [0], [0], [1], [0, 0, 1, 1], [], []>} : vector<8x128xf32>, vector<128x512xf32>, vector<8x512xf32> -> vector<8x512xf32>
    %340 = arith.addf %338, %339 : vector<8x512xf32>
    %341 = vector.extract_strided_slice %340 {offsets = [0, 0], sizes = [8, 128], strides = [1, 1]} : vector<8x512xf32> to vector<8x128xf32>
    %342 = arith.negf %341 : vector<8x128xf32>
    %343 = math.exp %342 : vector<8x128xf32>
    %cst_81 = arith.constant 1.000000e+00 : f32
    %344 = vector.broadcast %cst_81 : f32 to vector<8x128xf32>
    %345 = arith.addf %344, %343 : vector<8x128xf32>
    %346 = arith.divf %344, %345 : vector<8x128xf32>
    %347 = vector.extract_strided_slice %340 {offsets = [0, 128], sizes = [8, 128], strides = [1, 1]} : vector<8x512xf32> to vector<8x128xf32>
    %348 = arith.negf %347 : vector<8x128xf32>
    %349 = math.exp %348 : vector<8x128xf32>
    %cst_82 = arith.constant 1.000000e+00 : f32
    %350 = vector.broadcast %cst_82 : f32 to vector<8x128xf32>
    %351 = arith.addf %350, %349 : vector<8x128xf32>
    %352 = arith.divf %350, %351 : vector<8x128xf32>
    %353 = vector.extract_strided_slice %340 {offsets = [0, 256], sizes = [8, 128], strides = [1, 1]} : vector<8x512xf32> to vector<8x128xf32>
    %354 = math.tanh %353 : vector<8x128xf32>
    %355 = vector.extract_strided_slice %340 {offsets = [0, 384], sizes = [8, 128], strides = [1, 1]} : vector<8x512xf32> to vector<8x128xf32>
    %356 = arith.negf %355 : vector<8x128xf32>
    %357 = math.exp %356 : vector<8x128xf32>
    %cst_83 = arith.constant 1.000000e+00 : f32
    %358 = vector.broadcast %cst_83 : f32 to vector<8x128xf32>
    %359 = arith.addf %358, %357 : vector<8x128xf32>
    %360 = arith.divf %358, %359 : vector<8x128xf32>
    %361 = arith.mulf %352, %335 : vector<8x128xf32>
    %362 = arith.mulf %346, %354 : vector<8x128xf32>
    %363 = arith.addf %361, %362 : vector<8x128xf32>
    %364 = math.tanh %363 : vector<8x128xf32>
    %365 = arith.mulf %360, %364 : vector<8x128xf32>
    %366 = vector.extract_strided_slice %248 {offsets = [32, 0], sizes = [8, 512], strides = [1, 1]} : vector<64x512xf32> to vector<8x512xf32>
    %cst_84 = arith.constant dense<0.000000e+00> : vector<8x512xf32>
    %367 = tpu.matmul %365, %249, %cst_84 {dimension_numbers = #tpu.dot_dimension_numbers<[1], [0], [0], [1], [0, 0, 1, 1], [], []>} : vector<8x128xf32>, vector<128x512xf32>, vector<8x512xf32> -> vector<8x512xf32>
    %368 = arith.addf %366, %367 : vector<8x512xf32>
    %369 = vector.extract_strided_slice %368 {offsets = [0, 0], sizes = [8, 128], strides = [1, 1]} : vector<8x512xf32> to vector<8x128xf32>
    %370 = arith.negf %369 : vector<8x128xf32>
    %371 = math.exp %370 : vector<8x128xf32>
    %cst_85 = arith.constant 1.000000e+00 : f32
    %372 = vector.broadcast %cst_85 : f32 to vector<8x128xf32>
    %373 = arith.addf %372, %371 : vector<8x128xf32>
    %374 = arith.divf %372, %373 : vector<8x128xf32>
    %375 = vector.extract_strided_slice %368 {offsets = [0, 128], sizes = [8, 128], strides = [1, 1]} : vector<8x512xf32> to vector<8x128xf32>
    %376 = arith.negf %375 : vector<8x128xf32>
    %377 = math.exp %376 : vector<8x128xf32>
    %cst_86 = arith.constant 1.000000e+00 : f32
    %378 = vector.broadcast %cst_86 : f32 to vector<8x128xf32>
    %379 = arith.addf %378, %377 : vector<8x128xf32>
    %380 = arith.divf %378, %379 : vector<8x128xf32>
    %381 = vector.extract_strided_slice %368 {offsets = [0, 256], sizes = [8, 128], strides = [1, 1]} : vector<8x512xf32> to vector<8x128xf32>
    %382 = math.tanh %381 : vector<8x128xf32>
    %383 = vector.extract_strided_slice %368 {offsets = [0, 384], sizes = [8, 128], strides = [1, 1]} : vector<8x512xf32> to vector<8x128xf32>
    %384 = arith.negf %383 : vector<8x128xf32>
    %385 = math.exp %384 : vector<8x128xf32>
    %cst_87 = arith.constant 1.000000e+00 : f32
    %386 = vector.broadcast %cst_87 : f32 to vector<8x128xf32>
    %387 = arith.addf %386, %385 : vector<8x128xf32>
    %388 = arith.divf %386, %387 : vector<8x128xf32>
    %389 = arith.mulf %380, %363 : vector<8x128xf32>
    %390 = arith.mulf %374, %382 : vector<8x128xf32>
    %391 = arith.addf %389, %390 : vector<8x128xf32>
    %392 = math.tanh %391 : vector<8x128xf32>
    %393 = arith.mulf %388, %392 : vector<8x128xf32>
    %394 = vector.extract_strided_slice %248 {offsets = [40, 0], sizes = [8, 512], strides = [1, 1]} : vector<64x512xf32> to vector<8x512xf32>
    %cst_88 = arith.constant dense<0.000000e+00> : vector<8x512xf32>
    %395 = tpu.matmul %393, %249, %cst_88 {dimension_numbers = #tpu.dot_dimension_numbers<[1], [0], [0], [1], [0, 0, 1, 1], [], []>} : vector<8x128xf32>, vector<128x512xf32>, vector<8x512xf32> -> vector<8x512xf32>
    %396 = arith.addf %394, %395 : vector<8x512xf32>
    %397 = vector.extract_strided_slice %396 {offsets = [0, 0], sizes = [8, 128], strides = [1, 1]} : vector<8x512xf32> to vector<8x128xf32>
    %398 = arith.negf %397 : vector<8x128xf32>
    %399 = math.exp %398 : vector<8x128xf32>
    %cst_89 = arith.constant 1.000000e+00 : f32
    %400 = vector.broadcast %cst_89 : f32 to vector<8x128xf32>
    %401 = arith.addf %400, %399 : vector<8x128xf32>
    %402 = arith.divf %400, %401 : vector<8x128xf32>
    %403 = vector.extract_strided_slice %396 {offsets = [0, 128], sizes = [8, 128], strides = [1, 1]} : vector<8x512xf32> to vector<8x128xf32>
    %404 = arith.negf %403 : vector<8x128xf32>
    %405 = math.exp %404 : vector<8x128xf32>
    %cst_90 = arith.constant 1.000000e+00 : f32
    %406 = vector.broadcast %cst_90 : f32 to vector<8x128xf32>
    %407 = arith.addf %406, %405 : vector<8x128xf32>
    %408 = arith.divf %406, %407 : vector<8x128xf32>
    %409 = vector.extract_strided_slice %396 {offsets = [0, 256], sizes = [8, 128], strides = [1, 1]} : vector<8x512xf32> to vector<8x128xf32>
    %410 = math.tanh %409 : vector<8x128xf32>
    %411 = vector.extract_strided_slice %396 {offsets = [0, 384], sizes = [8, 128], strides = [1, 1]} : vector<8x512xf32> to vector<8x128xf32>
    %412 = arith.negf %411 : vector<8x128xf32>
    %413 = math.exp %412 : vector<8x128xf32>
    %cst_91 = arith.constant 1.000000e+00 : f32
    %414 = vector.broadcast %cst_91 : f32 to vector<8x128xf32>
    %415 = arith.addf %414, %413 : vector<8x128xf32>
    %416 = arith.divf %414, %415 : vector<8x128xf32>
    %417 = arith.mulf %408, %391 : vector<8x128xf32>
    %418 = arith.mulf %402, %410 : vector<8x128xf32>
    %419 = arith.addf %417, %418 : vector<8x128xf32>
    %420 = math.tanh %419 : vector<8x128xf32>
    %421 = arith.mulf %416, %420 : vector<8x128xf32>
    %422 = vector.extract_strided_slice %248 {offsets = [48, 0], sizes = [8, 512], strides = [1, 1]} : vector<64x512xf32> to vector<8x512xf32>
    %cst_92 = arith.constant dense<0.000000e+00> : vector<8x512xf32>
    %423 = tpu.matmul %421, %249, %cst_92 {dimension_numbers = #tpu.dot_dimension_numbers<[1], [0], [0], [1], [0, 0, 1, 1], [], []>} : vector<8x128xf32>, vector<128x512xf32>, vector<8x512xf32> -> vector<8x512xf32>
    %424 = arith.addf %422, %423 : vector<8x512xf32>
    %425 = vector.extract_strided_slice %424 {offsets = [0, 0], sizes = [8, 128], strides = [1, 1]} : vector<8x512xf32> to vector<8x128xf32>
    %426 = arith.negf %425 : vector<8x128xf32>
    %427 = math.exp %426 : vector<8x128xf32>
    %cst_93 = arith.constant 1.000000e+00 : f32
    %428 = vector.broadcast %cst_93 : f32 to vector<8x128xf32>
    %429 = arith.addf %428, %427 : vector<8x128xf32>
    %430 = arith.divf %428, %429 : vector<8x128xf32>
    %431 = vector.extract_strided_slice %424 {offsets = [0, 128], sizes = [8, 128], strides = [1, 1]} : vector<8x512xf32> to vector<8x128xf32>
    %432 = arith.negf %431 : vector<8x128xf32>
    %433 = math.exp %432 : vector<8x128xf32>
    %cst_94 = arith.constant 1.000000e+00 : f32
    %434 = vector.broadcast %cst_94 : f32 to vector<8x128xf32>
    %435 = arith.addf %434, %433 : vector<8x128xf32>
    %436 = arith.divf %434, %435 : vector<8x128xf32>
    %437 = vector.extract_strided_slice %424 {offsets = [0, 256], sizes = [8, 128], strides = [1, 1]} : vector<8x512xf32> to vector<8x128xf32>
    %438 = math.tanh %437 : vector<8x128xf32>
    %439 = vector.extract_strided_slice %424 {offsets = [0, 384], sizes = [8, 128], strides = [1, 1]} : vector<8x512xf32> to vector<8x128xf32>
    %440 = arith.negf %439 : vector<8x128xf32>
    %441 = math.exp %440 : vector<8x128xf32>
    %cst_95 = arith.constant 1.000000e+00 : f32
    %442 = vector.broadcast %cst_95 : f32 to vector<8x128xf32>
    %443 = arith.addf %442, %441 : vector<8x128xf32>
    %444 = arith.divf %442, %443 : vector<8x128xf32>
    %445 = arith.mulf %436, %419 : vector<8x128xf32>
    %446 = arith.mulf %430, %438 : vector<8x128xf32>
    %447 = arith.addf %445, %446 : vector<8x128xf32>
    %448 = math.tanh %447 : vector<8x128xf32>
    %449 = arith.mulf %444, %448 : vector<8x128xf32>
    %450 = vector.extract_strided_slice %248 {offsets = [56, 0], sizes = [8, 512], strides = [1, 1]} : vector<64x512xf32> to vector<8x512xf32>
    %cst_96 = arith.constant dense<0.000000e+00> : vector<8x512xf32>
    %451 = tpu.matmul %449, %249, %cst_96 {dimension_numbers = #tpu.dot_dimension_numbers<[1], [0], [0], [1], [0, 0, 1, 1], [], []>} : vector<8x128xf32>, vector<128x512xf32>, vector<8x512xf32> -> vector<8x512xf32>
    %452 = arith.addf %450, %451 : vector<8x512xf32>
    %453 = vector.extract_strided_slice %452 {offsets = [0, 0], sizes = [8, 128], strides = [1, 1]} : vector<8x512xf32> to vector<8x128xf32>
    %454 = arith.negf %453 : vector<8x128xf32>
    %455 = math.exp %454 : vector<8x128xf32>
    %cst_97 = arith.constant 1.000000e+00 : f32
    %456 = vector.broadcast %cst_97 : f32 to vector<8x128xf32>
    %457 = arith.addf %456, %455 : vector<8x128xf32>
    %458 = arith.divf %456, %457 : vector<8x128xf32>
    %459 = vector.extract_strided_slice %452 {offsets = [0, 128], sizes = [8, 128], strides = [1, 1]} : vector<8x512xf32> to vector<8x128xf32>
    %460 = arith.negf %459 : vector<8x128xf32>
    %461 = math.exp %460 : vector<8x128xf32>
    %cst_98 = arith.constant 1.000000e+00 : f32
    %462 = vector.broadcast %cst_98 : f32 to vector<8x128xf32>
    %463 = arith.addf %462, %461 : vector<8x128xf32>
    %464 = arith.divf %462, %463 : vector<8x128xf32>
    %465 = vector.extract_strided_slice %452 {offsets = [0, 256], sizes = [8, 128], strides = [1, 1]} : vector<8x512xf32> to vector<8x128xf32>
    %466 = math.tanh %465 : vector<8x128xf32>
    %467 = vector.extract_strided_slice %452 {offsets = [0, 384], sizes = [8, 128], strides = [1, 1]} : vector<8x512xf32> to vector<8x128xf32>
    %468 = arith.negf %467 : vector<8x128xf32>
    %469 = math.exp %468 : vector<8x128xf32>
    %cst_99 = arith.constant 1.000000e+00 : f32
    %470 = vector.broadcast %cst_99 : f32 to vector<8x128xf32>
    %471 = arith.addf %470, %469 : vector<8x128xf32>
    %472 = arith.divf %470, %471 : vector<8x128xf32>
    %473 = arith.mulf %464, %447 : vector<8x128xf32>
    %474 = arith.mulf %458, %466 : vector<8x128xf32>
    %475 = arith.addf %473, %474 : vector<8x128xf32>
    %476 = math.tanh %475 : vector<8x128xf32>
    %477 = arith.mulf %472, %476 : vector<8x128xf32>
    %c0_100 = arith.constant 0 : index
    %c0_101 = arith.constant 0 : index
    %478 = vector.load %arg9[%c0_100, %c0_101] : memref<128x4xf32, #tpu.memory_space<vmem>>, vector<128x4xf32>
    %cst_102 = arith.constant dense<0.000000e+00> : vector<8x4xf32>
    %479 = tpu.matmul %477, %478, %cst_102 {dimension_numbers = #tpu.dot_dimension_numbers<[1], [0], [0], [1], [0, 0, 1, 1], [], []>} : vector<8x128xf32>, vector<128x4xf32>, vector<8x4xf32> -> vector<8x4xf32>
    %c0_103 = arith.constant 0 : index
    %c0_104 = arith.constant 0 : index
    %480 = vector.load %arg10[%c0_103, %c0_104] : memref<1x4xf32, #tpu.memory_space<vmem>>, vector<1x4xf32>
    %481 = vector.broadcast %480 : vector<1x4xf32> to vector<8x4xf32>
    %482 = arith.addf %479, %481 : vector<8x4xf32>
    %c0_105 = arith.constant 0 : index
    %c0_106 = arith.constant 0 : index
    %483 = vector.load %arg11[%c0_105, %c0_106] : memref<8x4xf32, #tpu.memory_space<vmem>>, vector<8x4xf32>
    tpu.vector_store %arg11[%c0_105, %c0_106], %482 {strides = array<i32>} : memref<8x4xf32, #tpu.memory_space<vmem>>, vector<8x4xf32>,
    return
  }
}

</mosaic_0001>

<bundles_post_ra>
// kernel: lstm_glove_forward.1
= control target key start
LH: loop header
LB: loop body
LE: loop exit
PB: predicated region body
PF: predicated region fallthrough
CT: control target
= control target key end

     0   :  { %16 = vsyncpa [#allocation4], 0  ;;  %s6446_s0 = inlined_call_operand.vmem [shape: f32[64,32], index: 0, kind: input, shape index: {}]   ;;  %s6447_s1 = inlined_call_operand.vmem [shape: f32[2,8,128], index: 1, kind: input, shape index: {}]   ;;  %s6448_s2 = inlined_call_operand.vmem [shape: f32[2,8,128], index: 2, kind: input, shape index: {}]   ;;  %s6449_s3 = inlined_call_operand.vmem [shape: f32[32,512], index: 3, kind: input, shape index: {}]   ;;  %s6450_s4 = inlined_call_operand.hbm [shape: f32[128,512], index: 4, kind: input, shape index: {}]   ;;  %s6451_s5 = inlined_call_operand.vmem [shape: f32[1,512], index: 5, kind: input, shape index: {}]   ;;  %s6452_s6 = inlined_call_operand.hbm [shape: f32[128,512], index: 6, kind: input, shape index: {}]   ;;  %s6453_s7 = inlined_call_operand.hbm [shape: f32[128,512], index: 7, kind: input, shape index: {}]   ;;  %s6454_s8 = inlined_call_operand.vmem [shape: f32[1,512], index: 8, kind: input, shape index: {}]   ;;  %s6455_s9 = inlined_call_operand.vmem [shape: f32[128,4], index: 9, kind: input, shape index: {}]   ;;  %s6456_s10 = inlined_call_operand.vmem [shape: f32[1,4], index: 10, kind: input, shape index: {}]   ;;  %s6457_s11 = inlined_call_operand.vmem [shape: f32[8,4], index: 11, kind: output, shape index: {}]  }
   0x1   :  { %17 = vsyncpa [#allocation6], 0  ;;  %s4233_s17 = smov [#allocation5]   ;;  %s4234_s19 = smov [#allocation3]  }
   0x2   :  { %s45_s18 = sshll.u32 %s4233_s17, 4  ;;  %s31_s20 = sshll.u32 %s4234_s19, 4  ;;  %s46_s18 = int_to_ptr.vmem [resolvable:$true] %s45_s18  ;;  %s32_s20 = int_to_ptr.vmem [resolvable:$true] %s31_s20 }
   0x3   :  { %s4177_s21 = scalar_lea.vmem %s46_s18, 8192  ;;  %p4182_p1 = scmp.lt.s32.totalorder %s46_s18, %s46_s18 }
   0x4   :  { %p4178_p0 = scmp.ne.s32.totalorder %s46_s18, %s4177_s21  ;;  %p4183_p2 = scmp.lt.s32.totalorder %s4177_s21, %s4177_s21 }
   0x6   :  { %p4184_p3 = por %p4183_p2, %p4182_p1 }
   0x8   :  { %p4185_p4 = pnand %p4184_p3, %p4178_p0 }
   0xa   :  { %4188 = shalt.err (!%p4185_p4)
}
   0xb   :  { %s4235_s22 = smov 512   ;;  %s4236_s23 = smov 32  }
   0xc   :  { %51 = dma.hbm_to_vmem [thread:$0]  %s6452_s6, 8192, %s46_s18, [#allocation6], %s4235_s22, %s4235_s22, %s4236_s23  }
   0xd   :  { %s4197_s26 = scalar_lea.vmem %s32_s20, 8192  ;;  %p4202_p6 = scmp.lt.s32.totalorder %s32_s20, %s32_s20 }
   0xe   :  { %p4198_p5 = scmp.ne.s32.totalorder %s32_s20, %s4197_s26  ;;  %p4203_p7 = scmp.lt.s32.totalorder %s4197_s26, %s4197_s26 }
  0x10   :  { %p4204_p8 = por %p4203_p7, %p4202_p6 }
  0x12   :  { %p4205_p9 = pnand %p4204_p8, %p4198_p5 }
  0x14   :  { %4208 = shalt.err (!%p4205_p9)
}
  0x15   :  { %37 = dma.hbm_to_vmem [thread:$0]  %s6450_s4, 8192, %s32_s20, [#allocation4], %s4235_s22, %s4235_s22, %s4236_s23  }
  0x16   :  { %s4237_s29 = smov [#allocation7]  }
  0x17   :  { %s57_s30 = sshll.u32 %s4237_s29, 4  ;;  %s58_s30 = int_to_ptr.vmem [resolvable:$true] %s57_s30 }
  0x18   :  { %s4217_s12 = scalar_lea.vmem %s58_s30, 8192  ;;  %p4222_p11 = scmp.lt.s32.totalorder %s58_s30, %s58_s30 }
  0x19   :  { %p4218_p10 = scmp.ne.s32.totalorder %s58_s30, %s4217_s12  ;;  %p4223_p12 = scmp.lt.s32.totalorder %s4217_s12, %s4217_s12 }
  0x1b   :  { %p4224_p13 = por %p4223_p12, %p4222_p11 }
  0x1d   :  { %p4225_p0 = pnand %p4224_p13, %p4218_p10 }
  0x1f   :  { %4228 = shalt.err (!%p4225_p0)
}
  0x20   :  { %63 = dma.hbm_to_vmem [thread:$0]  %s6453_s7, 8192, %s58_s30, [#allocation6], %s4235_s22, %s4235_s22, %s4236_s23  }
  0x21   :  { %4229 = dma.done.wait [#allocation4], 8192  }
  0x22   :  { %4230 = vsyncadd [#allocation4], 4294959104 }
  0x23   :  { %4231 = dma.done.wait [#allocation6], 16384  }
  0x24   :  { %4232 = vsyncadd [#allocation6], 4294950912  ;;  %v6458_v0 = vmov 0.0   ;;  %v100_v1 = vld [vmem:[%s6449_s3 + $0x68] sm:$0xff]  ;;  %v102_v2 = vld [vmem:[%s6449_s3 + $0x78] sm:$0xff]  ;;  %vm125_vm0 = vcmask 261120  }
  0x25   :  { %214 = vmatprep.mubr.f32.mxu0 %v6458_v0  ;;  %327 = vmatprep.mubr.f32.mxu1 %v6458_v0  ;;  %v99_v3 = vld [vmem:[%s6449_s3 + $0x60] sm:$0xff]  ;;  %v101_v4 = vld [vmem:[%s6449_s3 + $0x70] sm:$0xff]  ;;  %v96_v5 = vld [vmem:[%s6449_s3 + $0x48] sm:$0xff]  ;;  %vm4239_vm1 = vmmov 0   ;;  %vm3651_vm2 = vcmask 31744  }
  0x26   :  { %174 = vmatprep.subr.mxu0 %v100_v1  ;;  %287 = vmatprep.subr.mxu1 %v102_v2  ;;  %v98_v6 = vld [vmem:[%s6449_s3 + $0x58] sm:$0xff]  ;;  %v95_v7 = vld [vmem:[%s6449_s3 + $0x40] sm:$0xff]  ;;  %v97_v8 = vld [vmem:[%s6449_s3 + $0x50] sm:$0xff] }
  0x27   :  { %175 = vmatpush1.msra.mxu0 %v99_v3  ;;  %288 = vmatpush1.msra.mxu1 %v101_v4  ;;  %v92_v9 = vld [vmem:[%s6449_s3 + $0x28] sm:$0xff]  ;;  %v94_v10 = vld [vmem:[%s6449_s3 + $0x38] sm:$0xff]  ;;  %v91_v11 = vld [vmem:[%s6449_s3 + $0x20] sm:$0xff] }
  0x28   :  { %176 = vmatprep.subr.mxu0 %v96_v5  ;;  %289 = vmatprep.subr.mxu1 %v98_v6  ;;  %v93_v12 = vld [vmem:[%s6449_s3 + $0x30] sm:$0xff]  ;;  %v88_v13 = vld [vmem:[%s6449_s3 + $0x8] sm:$0xff]  ;;  %v90_v14 = vld [vmem:[%s6449_s3 + $0x18] sm:$0xff] }
  0x29   :  { %177 = vmatpush1.msra.mxu0 %v95_v7  ;;  %290 = vmatpush1.msra.mxu1 %v97_v8  ;;  %v87_v15 = vld [vmem:[%s6449_s3] sm:$0xff]  ;;  %v89_v16 = vld [vmem:[%s6449_s3 + $0x10] sm:$0xff]  ;;  %v4362_v18 = vld [vmem:[#allocation3 + $0x1e8] sm:$0xff] }
  0x2a   :  { %178 = vmatprep.subr.mxu0 %v92_v9  ;;  %291 = vmatprep.subr.mxu1 %v94_v10  ;;  %v79_v17 = vld [vmem:[%s6446_s0] sm:$0xff]  ;;  %6662 = vst [vmem:[#allocation10_spill] sm:$0xff] %v4362_v18  ;;  %v4364_v19 = vld [vmem:[#allocation3 + $0x1f8] sm:$0xff]  ;;  %v4368_v21 = vld [vmem:[#allocation3 + $0x1f0] sm:$0xff] }
  0x2b   :  { %179 = vmatpush1.msra.mxu0 %v91_v11  ;;  %292 = vmatpush1.msra.mxu1 %v93_v12  ;;  %6663 = vst [vmem:[#allocation11_spill] sm:$0xff] %v4364_v19  ;;  %v4366_v20 = vld [vmem:[#allocation3 + $0x1e0] sm:$0xff]  ;;  %v4372_v22 = vld [vmem:[#allocation3 + $0x1c8] sm:$0xff]  ;;  %v4374_v23 = vld [vmem:[#allocation3 + $0x1d8] sm:$0xff] }
  0x2c   :  { %180 = vmatprep.subr.mxu0 %v88_v13  ;;  %293 = vmatprep.subr.mxu1 %v90_v14  ;;  %v4380_v24 = vld [vmem:[#allocation3 + $0x1c0] sm:$0xff]  ;;  %v4382_v25 = vld [vmem:[#allocation3 + $0x1d0] sm:$0xff]  ;;  %v80_v26 = vld [vmem:[%s6446_s0 + $0x8] sm:$0xff] }
  0x2d   :  { %181 = vmatpush1.msra.mxu0 %v87_v15  ;;  %294 = vmatpush1.msra.mxu1 %v89_v16  ;;  %v4391_v27 = vld [vmem:[#allocation3 + $0x1a8] sm:$0xff]  ;;  %v4393_v28 = vld [vmem:[#allocation3 + $0x1b8] sm:$0xff]  ;;  %v4397_v29 = vld [vmem:[#allocation3 + $0x1a0] sm:$0xff] }
  0x2e   :  { %3659 = vmatmul.mubr.msk.f32.vlgmr.msra.gmra.mxu0 %vm125_vm0, %v79_v17  ;;  %3667 = vmatmul.mubr.msk.f32.vlgmr.msra.gmra.mxu1 %vm125_vm0, %v79_v17  ;;  %v4399_v30 = vld [vmem:[#allocation3 + $0x1b0] sm:$0xff]  ;;  %v4403_v31 = vld [vmem:[#allocation3 + $0x188] sm:$0xff]  ;;  %v4405_v32 = vld [vmem:[#allocation3 + $0x198] sm:$0xff] }
  0x2f   :  { %442 = vmatprep.subr.mxu0 %v4362_v18  ;;  %513 = vmatprep.subr.mxu1 %v4364_v19  ;;  %v4411_v33 = vld [vmem:[#allocation3 + $0x180] sm:$0xff]  ;;  %v4413_v34 = vld [vmem:[#allocation3 + $0x190] sm:$0xff]  ;;  %v4422_v36 = vld [vmem:[#allocation3 + $0x168] sm:$0xff] }
  0x30   :  { %443 = vmatpush1.msra.mxu0 %v4366_v20  ;;  %514 = vmatpush1.msra.mxu1 %v4368_v21  ;;  %v81_v35 = vld [vmem:[%s6446_s0 + $0x10] sm:$0xff]  ;;  %v4424_v37 = vld [vmem:[#allocation3 + $0x178] sm:$0xff]  ;;  %v4428_v38 = vld [vmem:[#allocation3 + $0x160] sm:$0xff] }
  0x31   :  { %444 = vmatprep.subr.mxu0 %v4372_v22  ;;  %515 = vmatprep.subr.mxu1 %v4374_v23  ;;  %v4430_v39 = vld [vmem:[#allocation3 + $0x170] sm:$0xff]  ;;  %v4434_v40 = vld [vmem:[#allocation3 + $0x148] sm:$0xff]  ;;  %v4436_v41 = vld [vmem:[#allocation3 + $0x158] sm:$0xff] }
  0x32   :  { %220 = vmatprep.mubr.f32.mxu0 %v6458_v0  ;;  %333 = vmatprep.mubr.f32.mxu1 %v6458_v0  ;;  %v4442_v42 = vld [vmem:[#allocation3 + $0x140] sm:$0xff]  ;;  %v4444_v43 = vld [vmem:[#allocation3 + $0x150] sm:$0xff]  ;;  %v82_v44 = vld [vmem:[%s6446_s0 + $0x18] sm:$0xff] }
  0x33   :  { %445 = vmatpush1.msra.mxu0 %v4380_v24  ;;  %516 = vmatpush1.msra.mxu1 %v4382_v25  ;;  %v4453_v45 = vld [vmem:[#allocation3 + $0x128] sm:$0xff]  ;;  %v4455_v46 = vld [vmem:[#allocation3 + $0x138] sm:$0xff]  ;;  %v4459_v47 = vld [vmem:[#allocation3 + $0x120] sm:$0xff] }
  0x34   :  { %3660 = vmatmul.mubr.msk.f32.gmra.mxu0 %vm125_vm0, %v80_v26  ;;  %3668 = vmatmul.mubr.msk.f32.gmra.mxu1 %vm125_vm0, %v80_v26  ;;  %v4461_v48 = vld [vmem:[#allocation3 + $0x130] sm:$0xff]  ;;  %v4465_v49 = vld [vmem:[#allocation3 + $0x108] sm:$0xff]  ;;  %v4467_v50 = vld [vmem:[#allocation3 + $0x118] sm:$0xff] }
  0x35   :  { %446 = vmatprep.subr.mxu0 %v4391_v27  ;;  %517 = vmatprep.subr.mxu1 %v4393_v28  ;;  %v4473_v51 = vld [vmem:[#allocation3 + $0x100] sm:$0xff]  ;;  %v4475_v52 = vld [vmem:[#allocation3 + $0x110] sm:$0xff]  ;;  %v4484_v54 = vld [vmem:[#allocation3 + $0xe8] sm:$0xff] }
  0x36   :  { %447 = vmatpush1.msra.mxu0 %v4397_v29  ;;  %518 = vmatpush1.msra.mxu1 %v4399_v30  ;;  %v83_v53 = vld [vmem:[%s6446_s0 + $0x20] sm:$0xff]  ;;  %v4486_v55 = vld [vmem:[#allocation3 + $0xf8] sm:$0xff]  ;;  %v4492_v57 = vld [vmem:[#allocation3 + $0xf0] sm:$0xff] }
  0x37   :  { %448 = vmatprep.subr.mxu0 %v4403_v31  ;;  %519 = vmatprep.subr.mxu1 %v4405_v32  ;;  %v4490_v56 = vld [vmem:[#allocation3 + $0xe0] sm:$0xff]  ;;  %v4496_v58 = vld [vmem:[#allocation3 + $0xc8] sm:$0xff]  ;;  %v4498_v59 = vld [vmem:[#allocation3 + $0xd8] sm:$0xff] }
  0x38   :  { %226 = vmatprep.mubr.f32.mxu0 %v6458_v0  ;;  %339 = vmatprep.mubr.f32.mxu1 %v6458_v0  ;;  %v4504_v60 = vld [vmem:[#allocation3 + $0xc0] sm:$0xff]  ;;  %v4506_v61 = vld [vmem:[#allocation3 + $0xd0] sm:$0xff]  ;;  %v84_v62 = vld [vmem:[%s6446_s0 + $0x28] sm:$0xff] }
  0x39   :  { %449 = vmatpush1.msra.mxu0 %v4411_v33  ;;  %520 = vmatpush1.msra.mxu1 %v4413_v34  ;;  %v4515_v63 = vld [vmem:[#allocation3 + $0xa8] sm:$0xff]  ;;  %v4517_v1 = vld [vmem:[#allocation3 + $0xb8] sm:$0xff]  ;;  %v4521_v2 = vld [vmem:[#allocation3 + $0xa0] sm:$0xff] }
  0x3a   :  { %3661 = vmatmul.mubr.msk.f32.gmra.mxu0 %vm125_vm0, %v81_v35  ;;  %3669 = vmatmul.mubr.msk.f32.gmra.mxu1 %vm125_vm0, %v81_v35  ;;  %v4523_v3 = vld [vmem:[#allocation3 + $0xb0] sm:$0xff]  ;;  %v4527_v4 = vld [vmem:[#allocation3 + $0x88] sm:$0xff]  ;;  %v4529_v5 = vld [vmem:[#allocation3 + $0x98] sm:$0xff] }
  0x3b   :  { %450 = vmatprep.subr.mxu0 %v4422_v36  ;;  %521 = vmatprep.subr.mxu1 %v4424_v37  ;;  %6664 = vst [vmem:[#allocation12_spill] sm:$0xff] %v4523_v3  ;;  %6665 = vst [vmem:[#allocation13_spill] sm:$0xff] %v4527_v4  ;;  %v4535_v6 = vld [vmem:[#allocation3 + $0x80] sm:$0xff]  ;;  %v4537_v7 = vld [vmem:[#allocation3 + $0x90] sm:$0xff] }
  0x3c   :  { %451 = vmatpush1.msra.mxu0 %v4428_v38  ;;  %522 = vmatpush1.msra.mxu1 %v4430_v39  ;;  %6666 = vst [vmem:[#allocation14_spill] sm:$0xff] %v4529_v5  ;;  %6667 = vst [vmem:[#allocation15_spill] sm:$0xff] %v4535_v6  ;;  %v85_v8 = vld [vmem:[%s6446_s0 + $0x30] sm:$0xff]  ;;  %v4546_v9 = vld [vmem:[#allocation3 + $0x68] sm:$0xff] }
  0x3d   :  { %452 = vmatprep.subr.mxu0 %v4434_v40  ;;  %523 = vmatprep.subr.mxu1 %v4436_v41  ;;  %6668 = vst [vmem:[#allocation16_spill] sm:$0xff] %v4537_v7  ;;  %6669 = vst [vmem:[#allocation17_spill] sm:$0xff] %v4546_v9  ;;  %v4548_v10 = vld [vmem:[#allocation3 + $0x78] sm:$0xff]  ;;  %v4552_v11 = vld [vmem:[#allocation3 + $0x60] sm:$0xff] }
  0x3e   :  { %232 = vmatprep.mubr.f32.mxu0 %v6458_v0  ;;  %345 = vmatprep.mubr.f32.mxu1 %v6458_v0  ;;  %6670 = vst [vmem:[#allocation18_spill] sm:$0xff] %v4548_v10  ;;  %6671 = vst [vmem:[#allocation19_spill] sm:$0xff] %v4552_v11  ;;  %v4554_v12 = vld [vmem:[#allocation3 + $0x70] sm:$0xff]  ;;  %v4558_v13 = vld [vmem:[#allocation3 + $0x48] sm:$0xff] }
  0x3f   :  { %453 = vmatpush1.msra.mxu0 %v4442_v42  ;;  %524 = vmatpush1.msra.mxu1 %v4444_v43  ;;  %6672 = vst [vmem:[#allocation20_spill] sm:$0xff] %v4554_v12  ;;  %6673 = vst [vmem:[#allocation21_spill] sm:$0xff] %v4558_v13  ;;  %v4560_v14 = vld [vmem:[#allocation3 + $0x58] sm:$0xff]  ;;  %v4566_v15 = vld [vmem:[#allocation3 + $0x40] sm:$0xff] }
  0x40   :  { %3662 = vmatmul.mubr.msk.f32.gmra.mxu0 %vm125_vm0, %v82_v44  ;;  %3670 = vmatmul.mubr.msk.f32.gmra.mxu1 %vm125_vm0, %v82_v44  ;;  %6674 = vst [vmem:[#allocation22_spill] sm:$0xff] %v4560_v14  ;;  %6675 = vst [vmem:[#allocation23_spill] sm:$0xff] %v4566_v15  ;;  %v4568_v16 = vld [vmem:[#allocation3 + $0x50] sm:$0xff]  ;;  %v86_v17 = vld [vmem:[%s6446_s0 + $0x38] sm:$0xff] }
  0x41   :  { %454 = vmatprep.subr.mxu0 %v4453_v45  ;;  %525 = vmatprep.subr.mxu1 %v4455_v46  ;;  %6676 = vst [vmem:[#allocation24_spill] sm:$0xff] %v4568_v16  ;;  %v4577_v26 = vld [vmem:[#allocation3 + $0x28] sm:$0xff]  ;;  %v4579_v35 = vld [vmem:[#allocation3 + $0x38] sm:$0xff]  ;;  %v4583_v44 = vld [vmem:[#allocation3 + $0x20] sm:$0xff] }
  0x42   :  { %455 = vmatpush1.msra.mxu0 %v4459_v47  ;;  %526 = vmatpush1.msra.mxu1 %v4461_v48  ;;  %6677 = vst [vmem:[#allocation25_spill] sm:$0xff] %v4577_v26  ;;  %6678 = vst [vmem:[#allocation26_spill] sm:$0xff] %v4579_v35 }
  0x43   :  { %456 = vmatprep.subr.mxu0 %v4465_v49  ;;  %527 = vmatprep.subr.mxu1 %v4467_v50  ;;  %6679 = vst [vmem:[#allocation27_spill] sm:$0xff] %v4583_v44 }
  0x44   :  { %238 = vmatprep.mubr.f32.mxu0 %v6458_v0  ;;  %351 = vmatprep.mubr.f32.mxu1 %v6458_v0 }
  0x45   :  { %457 = vmatpush1.msra.mxu0 %v4473_v51  ;;  %528 = vmatpush1.msra.mxu1 %v4475_v52 }
  0x46   :  { %3663 = vmatmul.mubr.msk.f32.gmra.mxu0 %vm125_vm0, %v83_v53  ;;  %3671 = vmatmul.mubr.msk.f32.gmra.mxu1 %vm125_vm0, %v83_v53  ;;  %v4585_v53 = vld [vmem:[#allocation3 + $0x30] sm:$0xff] }
  0x47   :  { %458 = vmatprep.subr.mxu0 %v4484_v54  ;;  %529 = vmatprep.subr.mxu1 %v4486_v55  ;;  %6680 = vst [vmem:[#allocation28_spill] sm:$0xff] %v4585_v53 }
  0x48   :  { %459 = vmatpush1.msra.mxu0 %v4490_v56  ;;  %530 = vmatpush1.msra.mxu1 %v4492_v57 }
  0x49   :  { %460 = vmatprep.subr.mxu0 %v4496_v58  ;;  %531 = vmatprep.subr.mxu1 %v4498_v59 }
  0x4a   :  { %244 = vmatprep.mubr.f32.mxu0 %v6458_v0  ;;  %357 = vmatprep.mubr.f32.mxu1 %v6458_v0 }
  0x4b   :  { %461 = vmatpush1.msra.mxu0 %v4504_v60  ;;  %532 = vmatpush1.msra.mxu1 %v4506_v61 }
  0x4c   :  { %3664 = vmatmul.mubr.msk.f32.gmra.mxu0 %vm125_vm0, %v84_v62  ;;  %3672 = vmatmul.mubr.msk.f32.gmra.mxu1 %vm125_vm0, %v84_v62  ;;  %v4589_v62 = vld [vmem:[#allocation3 + $0x8] sm:$0xff] }
  0x4d   :  { %462 = vmatprep.subr.mxu0 %v4515_v63  ;;  %533 = vmatprep.subr.mxu1 %v4517_v1  ;;  %6681 = vst [vmem:[#allocation29_spill] sm:$0xff] %v4589_v62 }
  0x4e   :  { %463 = vmatpush1.msra.mxu0 %v4521_v2  ;;  %534 = vmatpush1.msra.mxu1 %v4523_v3 }
  0x4f   :  { %464 = vmatprep.subr.mxu0 %v4527_v4  ;;  %535 = vmatprep.subr.mxu1 %v4529_v5 }
  0x50   :  { %250 = vmatprep.mubr.f32.mxu0 %v6458_v0  ;;  %363 = vmatprep.mubr.f32.mxu1 %v6458_v0 }
  0x51   :  { %465 = vmatpush1.msra.mxu0 %v4535_v6  ;;  %536 = vmatpush1.msra.mxu1 %v4537_v7 }
  0x52   :  { %3665 = vmatmul.mubr.msk.f32.gmra.mxu0 %vm125_vm0, %v85_v8  ;;  %3673 = vmatmul.mubr.msk.f32.gmra.mxu1 %vm125_vm0, %v85_v8  ;;  %v4591_v8 = vld [vmem:[#allocation3 + $0x18] sm:$0xff] }
  0x53   :  { %466 = vmatprep.subr.mxu0 %v4546_v9  ;;  %537 = vmatprep.subr.mxu1 %v4548_v10  ;;  %6682 = vst [vmem:[#allocation30_spill] sm:$0xff] %v4591_v8 }
  0x54   :  { %467 = vmatpush1.msra.mxu0 %v4552_v11  ;;  %538 = vmatpush1.msra.mxu1 %v4554_v12 }
  0x55   :  { %468 = vmatprep.subr.mxu0 %v4558_v13  ;;  %539 = vmatprep.subr.mxu1 %v4560_v14 }
  0x56   :  { %256 = vmatprep.mubr.f32.mxu0 %v6458_v0  ;;  %369 = vmatprep.mubr.f32.mxu1 %v6458_v0  ;;  %v4595_v0 = vld [vmem:[#allocation3] sm:$0xff] }
  0x57   :  { %469 = vmatpush1.msra.mxu0 %v4566_v15  ;;  %540 = vmatpush1.msra.mxu1 %v4568_v16  ;;  %6683 = vst [vmem:[#allocation31_spill] sm:$0xff] %v4595_v0  ;;  %v4599_v16 = vld [vmem:[#allocation3 + $0x10] sm:$0xff] }
  0x58   :  { %3666 = vmatmul.mubr.msk.f32.gmra.mxu0 %vm125_vm0, %v86_v17  ;;  %3674 = vmatmul.mubr.msk.f32.gmra.mxu1 %vm125_vm0, %v86_v17  ;;  %6684 = vst [vmem:[#allocation32_spill] sm:$0xff] %v4599_v16  ;;  %v440_v17 = vld [vmem:[%s6447_s1] sm:$0xff] }
  0x59   :  { %470 = vmatprep.subr.mxu0 %v4577_v26  ;;  %541 = vmatprep.subr.mxu1 %v4579_v35  ;;  %v6685_v26 = vmov 0.0  }
  0x5a   :  { %471 = vmatpush1.msra.mxu0 %v4583_v44  ;;  %542 = vmatpush1.msra.mxu1 %v4585_v53 }
  0x5b   :  { %472 = vmatprep.subr.mxu0 %v4589_v62  ;;  %543 = vmatprep.subr.mxu1 %v4591_v8 }
  0x5c   :  { %473 = vmatpush1.msra.mxu0 %v4595_v0  ;;  %506 = vmatprep.mubr.f32.mxu0 %v6685_v26 }
  0x5d   :  { %544 = vmatpush1.msra.mxu1 %v4599_v16  ;;  %577 = vmatprep.mubr.f32.mxu1 %v6685_v26 }
  0x5e   :  { %507 = vmatmul.mubr.f32.vlgmr.msra.gmra.mxu0 %v440_v17  ;;  %578 = vmatmul.mubr.f32.vlgmr.msra.gmra.mxu1 %v440_v17  ;;  %v6686_v17 = vld [vmem:[#allocation24_spill] sm:$0xff] }
  0x5f   :  { %613 = vmatprep.subr.mxu0 %v4362_v18  ;;  %684 = vmatprep.subr.mxu1 %v4364_v19 }
  0x60   :  { %614 = vmatpush1.msra.mxu0 %v4366_v20  ;;  %685 = vmatpush1.msra.mxu1 %v4368_v21 }
  0x61   :  { %615 = vmatprep.subr.mxu0 %v4372_v22  ;;  %686 = vmatprep.subr.mxu1 %v4374_v23 }
  0x62   :  { %616 = vmatpush1.msra.mxu0 %v4380_v24  ;;  %687 = vmatpush1.msra.mxu1 %v4382_v25 }
  0x63   :  { %617 = vmatprep.subr.mxu0 %v4391_v27  ;;  %688 = vmatprep.subr.mxu1 %v4393_v28 }
  0x64   :  { %618 = vmatpush1.msra.mxu0 %v4397_v29  ;;  %689 = vmatpush1.msra.mxu1 %v4399_v30 }
  0x65   :  { %619 = vmatprep.subr.mxu0 %v4403_v31  ;;  %690 = vmatprep.subr.mxu1 %v4405_v32 }
  0x66   :  { %620 = vmatpush1.msra.mxu0 %v4411_v33  ;;  %691 = vmatpush1.msra.mxu1 %v4413_v34 }
  0x67   :  { %621 = vmatprep.subr.mxu0 %v4422_v36  ;;  %692 = vmatprep.subr.mxu1 %v4424_v37 }
  0x68   :  { %622 = vmatpush1.msra.mxu0 %v4428_v38  ;;  %693 = vmatpush1.msra.mxu1 %v4430_v39 }
  0x69   :  { %623 = vmatprep.subr.mxu0 %v4434_v40  ;;  %694 = vmatprep.subr.mxu1 %v4436_v41 }
  0x6a   :  { %624 = vmatpush1.msra.mxu0 %v4442_v42  ;;  %695 = vmatpush1.msra.mxu1 %v4444_v43 }
  0x6b   :  { %625 = vmatprep.subr.mxu0 %v4453_v45  ;;  %696 = vmatprep.subr.mxu1 %v4455_v46 }
  0x6c   :  { %626 = vmatpush1.msra.mxu0 %v4459_v47  ;;  %697 = vmatpush1.msra.mxu1 %v4461_v48 }
  0x6d   :  { %627 = vmatprep.subr.mxu0 %v4465_v49  ;;  %698 = vmatprep.subr.mxu1 %v4467_v50 }
  0x6e   :  { %628 = vmatpush1.msra.mxu0 %v4473_v51  ;;  %699 = vmatpush1.msra.mxu1 %v4475_v52 }
  0x6f   :  { %629 = vmatprep.subr.mxu0 %v4484_v54  ;;  %700 = vmatprep.subr.mxu1 %v4486_v55 }
  0x70   :  { %630 = vmatpush1.msra.mxu0 %v4490_v56  ;;  %701 = vmatpush1.msra.mxu1 %v4492_v57 }
  0x71   :  { %631 = vmatprep.subr.mxu0 %v4496_v58  ;;  %702 = vmatprep.subr.mxu1 %v4498_v59 }
  0x72   :  { %632 = vmatpush1.msra.mxu0 %v4504_v60  ;;  %703 = vmatpush1.msra.mxu1 %v4506_v61 }
  0x73   :  { %633 = vmatprep.subr.mxu0 %v4515_v63  ;;  %704 = vmatprep.subr.mxu1 %v4517_v1 }
  0x74   :  { %634 = vmatpush1.msra.mxu0 %v4521_v2  ;;  %705 = vmatpush1.msra.mxu1 %v4523_v3 }
  0x75   :  { %635 = vmatprep.subr.mxu0 %v4527_v4  ;;  %706 = vmatprep.subr.mxu1 %v4529_v5  ;;  %v6687_v5 = vld [vmem:[#allocation25_spill] sm:$0xff] }
  0x76   :  { %636 = vmatpush1.msra.mxu0 %v4535_v6  ;;  %707 = vmatpush1.msra.mxu1 %v4537_v7 }
  0x77   :  { %637 = vmatprep.subr.mxu0 %v4546_v9  ;;  %708 = vmatprep.subr.mxu1 %v4548_v10 }
  0x78   :  { %638 = vmatpush1.msra.mxu0 %v4552_v11  ;;  %709 = vmatpush1.msra.mxu1 %v4554_v12 }
  0x79   :  { %639 = vmatprep.subr.mxu0 %v4558_v13  ;;  %710 = vmatprep.subr.mxu1 %v4560_v14 }
  0x7a   :  { %640 = vmatpush1.msra.mxu0 %v4566_v15  ;;  %711 = vmatpush1.msra.mxu1 %v6686_v17 }
  0x7b   :  { %641 = vmatprep.subr.mxu0 %v6687_v5  ;;  %712 = vmatprep.subr.mxu1 %v4579_v35  ;;  %v105_v35 = vlaneseq }
  0x7c   :  { %642 = vmatpush1.msra.mxu0 %v4583_v44  ;;  %713 = vmatpush1.msra.mxu1 %v4585_v53 }
  0x7d   :  { %643 = vmatprep.subr.mxu0 %v4589_v62  ;;  %714 = vmatprep.subr.mxu1 %v4591_v8  ;;  %v4678_v44 = vshrl.u32 %v105_v35, 7 }
  0x7e   :  { %644 = vmatpush1.msra.mxu0 %v4595_v0  ;;  %677 = vmatprep.mubr.f32.mxu0 %v6685_v26 }
  0x7f   :  { %715 = vmatpush1.msra.mxu1 %v4599_v16  ;;  %748 = vmatprep.mubr.f32.mxu1 %v6685_v26  ;;  %6688 = vst [vmem:[#allocation33_spill] sm:$0xff] %v4678_v44  ;;  %v6497_v8 = vsub.s32 0, %v4678_v44  ;;  %v6500_v0 = vsub.s32 2, %v4678_v44  ;;  %v103_v16 = vld [vmem:[%s6451_s5] sm:$0xf]  ;;  %v6508_v35 = vsub.s32 3, %v4678_v44 }
  0x80   :  { %784 = vmatprep.subr.mxu0 %v4362_v18  ;;  %855 = vmatprep.subr.mxu1 %v4364_v19  ;;  %v6507_v19 = vsub.s32 1, %v4678_v44 }
  0x81   :  { %v108_v5 = vrot.slane %v103_v16, %v6497_v8  ;;  %v4699_v17 = vrot.slane %v103_v16, %v6500_v0  ;;  %v4705_v12 = vrot.slane %v103_v16, %v6508_v35 }
  0x82   :  { %v112_v13 = vrot.slane %v103_v16, %v6507_v19 }
  0xee   :  { %v4680_v53 = vpop.f32.mrf.mxu0  ;;  %v4682_v62 = vpop.f32.mrf.mxu1 }
  0xf0   :  { %v4689_v26 = vpop.f32.mrf.mxu0  ;;  %v4691_v18 = vpop.f32.mrf.mxu1 }
  0xf4   :  { %v222_v15 = vpop.f32.mrf.mxu0  ;;  %v335_v14 = vpop.f32.mrf.mxu1 }
  0xf5   :  { %v4707_v11 = vadd.f32 %v222_v15, %v108_v5  ;;  %v4710_v10 = vadd.f32 %v335_v14, %v4699_v17 }
  0xf6   :  { %v224_v9 = vpop.f32.mrf.mxu0  ;;  %v337_v8 = vpop.f32.mrf.mxu1 }
  0xf7   :  { %6689 = vst [vmem:[#allocation34_spill] sm:$0xff] %v4710_v10  ;;  %v4712_v7 = vadd.f32 %v224_v9, %v112_v13  ;;  %v4715_v0 = vadd.f32 %v337_v8, %v4705_v12 }
  0xf9   :  { %6690 = vst [vmem:[#allocation35_spill] sm:$0xff] %v4712_v7  ;;  %6691 = vst [vmem:[#allocation36_spill] sm:$0xff] %v4715_v0 }
  0xfa   :  { %v228_v6 = vpop.f32.mrf.mxu0  ;;  %v341_v4 = vpop.f32.mrf.mxu1 }
  0xfb   :  { %v4717_v3 = vadd.f32 %v228_v6, %v108_v5  ;;  %v4720_v19 = vadd.f32 %v341_v4, %v4699_v17 }
  0xfc   :  { %v230_v16 = vpop.f32.mrf.mxu0  ;;  %v343_v15 = vpop.f32.mrf.mxu1 }
  0xfd   :  { %6692 = vst [vmem:[#allocation37_spill] sm:$0xff] %v4717_v3  ;;  %6693 = vst [vmem:[#allocation38_spill] sm:$0xff] %v4720_v19  ;;  %v4722_v35 = vadd.f32 %v230_v16, %v112_v13  ;;  %v4725_v14 = vadd.f32 %v343_v15, %v4705_v12 }
  0xff   :  { %6694 = vst [vmem:[#allocation39_spill] sm:$0xff] %v4722_v35  ;;  %6695 = vst [vmem:[#allocation40_spill] sm:$0xff] %v4725_v14 }
 0x100   :  { %v234_v44 = vpop.f32.mrf.mxu0  ;;  %v347_v9 = vpop.f32.mrf.mxu1 }
 0x101   :  { %v4727_v10 = vadd.f32 %v234_v44, %v108_v5  ;;  %v4730_v8 = vadd.f32 %v347_v9, %v4699_v17 }
 0x102   :  { %v236_v0 = vpop.f32.mrf.mxu0  ;;  %v349_v6 = vpop.f32.mrf.mxu1 }
 0x103   :  { %6696 = vst [vmem:[#allocation41_spill] sm:$0xff] %v4727_v10  ;;  %6697 = vst [vmem:[#allocation42_spill] sm:$0xff] %v4730_v8  ;;  %v4732_v3 = vadd.f32 %v236_v0, %v112_v13  ;;  %v4735_v4 = vadd.f32 %v349_v6, %v4705_v12 }
 0x105   :  { %6698 = vst [vmem:[#allocation43_spill] sm:$0xff] %v4732_v3  ;;  %6699 = vst [vmem:[#allocation44_spill] sm:$0xff] %v4735_v4 }
 0x106   :  { %v240_v19 = vpop.f32.mrf.mxu0  ;;  %v353_v16 = vpop.f32.mrf.mxu1 }
 0x107   :  { %v4737_v35 = vadd.f32 %v240_v19, %v108_v5  ;;  %v4740_v15 = vadd.f32 %v353_v16, %v4699_v17 }
 0x108   :  { %v242_v14 = vpop.f32.mrf.mxu0  ;;  %v355_v44 = vpop.f32.mrf.mxu1 }
 0x109   :  { %6700 = vst [vmem:[#allocation45_spill] sm:$0xff] %v4737_v35  ;;  %6701 = vst [vmem:[#allocation46_spill] sm:$0xff] %v4740_v15  ;;  %v4742_v10 = vadd.f32 %v242_v14, %v112_v13  ;;  %v4745_v9 = vadd.f32 %v355_v44, %v4705_v12 }
 0x10b   :  { %6702 = vst [vmem:[#allocation47_spill] sm:$0xff] %v4742_v10  ;;  %6703 = vst [vmem:[#allocation48_spill] sm:$0xff] %v4745_v9 }
 0x10c   :  { %v246_v8 = vpop.f32.mrf.mxu0  ;;  %v359_v0 = vpop.f32.mrf.mxu1 }
 0x10d   :  { %v4747_v3 = vadd.f32 %v246_v8, %v108_v5  ;;  %v4750_v6 = vadd.f32 %v359_v0, %v4699_v17 }
 0x10e   :  { %v248_v4 = vpop.f32.mrf.mxu0  ;;  %v361_v19 = vpop.f32.mrf.mxu1 }
 0x10f   :  { %6704 = vst [vmem:[#allocation49_spill] sm:$0xff] %v4747_v3  ;;  %6705 = vst [vmem:[#allocation50_spill] sm:$0xff] %v4750_v6  ;;  %v4752_v35 = vadd.f32 %v248_v4, %v112_v13  ;;  %v4755_v16 = vadd.f32 %v361_v19, %v4705_v12 }
 0x111   :  { %6706 = vst [vmem:[#allocation51_spill] sm:$0xff] %v4752_v35  ;;  %6707 = vst [vmem:[#allocation52_spill] sm:$0xff] %v4755_v16 }
 0x112   :  { %v252_v15 = vpop.f32.mrf.mxu0  ;;  %v365_v14 = vpop.f32.mrf.mxu1 }
 0x113   :  { %v4757_v10 = vadd.f32 %v252_v15, %v108_v5  ;;  %v4760_v44 = vadd.f32 %v365_v14, %v4699_v17 }
 0x114   :  { %v254_v9 = vpop.f32.mrf.mxu0  ;;  %v367_v8 = vpop.f32.mrf.mxu1 }
 0x115   :  { %6708 = vst [vmem:[#allocation53_spill] sm:$0xff] %v4757_v10  ;;  %6709 = vst [vmem:[#allocation54_spill] sm:$0xff] %v4760_v44  ;;  %v4762_v3 = vadd.f32 %v254_v9, %v112_v13  ;;  %v4765_v0 = vadd.f32 %v367_v8, %v4705_v12  ;;  %v217_v9 = vadd.f32 %v4680_v53, %v108_v5 }
 0x116   :  { %v219_v8 = vadd.f32 %v4689_v26, %v112_v13 }
 0x117   :  { %6710 = vst [vmem:[#allocation55_spill] sm:$0xff] %v4762_v3  ;;  %6711 = vst [vmem:[#allocation56_spill] sm:$0xff] %v4765_v0 }
 0x118   :  { %v258_v6 = vpop.f32.mrf.mxu0  ;;  %v371_v4 = vpop.f32.mrf.mxu1 }
 0x119   :  { %v4767_v35 = vadd.f32 %v258_v6, %v108_v5  ;;  %v4770_v19 = vadd.f32 %v371_v4, %v4699_v17 }
 0x11a   :  { %v260_v16 = vpop.f32.mrf.mxu0  ;;  %v373_v15 = vpop.f32.mrf.mxu1 }
 0x11b   :  { %6712 = vst [vmem:[#allocation57_spill] sm:$0xff] %v4767_v35  ;;  %6713 = vst [vmem:[#allocation58_spill] sm:$0xff] %v4770_v19  ;;  %v4772_v10 = vadd.f32 %v260_v16, %v112_v13  ;;  %v4775_v14 = vadd.f32 %v373_v15, %v4705_v12  ;;  %v332_v16 = vadd.f32 %v4691_v18, %v4705_v12  ;;  %v441_v18 = vld [vmem:[%s6448_s2] sm:$0xff] }
 0x11c   :  { %v330_v15 = vadd.f32 %v4682_v62, %v4699_v17 }
 0x11d   :  { %6714 = vst [vmem:[#allocation59_spill] sm:$0xff] %v4772_v10  ;;  %6715 = vst [vmem:[#allocation60_spill] sm:$0xff] %v4775_v14 }
 0x11e   :  { %v508_v44 = vpop.f32.mrf.mxu0  ;;  %v579_v35 = vpop.f32.mrf.mxu1 }
 0x11f   :  { %v584_v0 = vadd.f32 %v508_v44, %v217_v9  ;;  %v586_v14 = vadd.f32 %v579_v35, %v330_v15  ;;  %v6721_v15 = vld [vmem:[#allocation16_spill] sm:$0xff] }
 0x120   :  { %v510_v3 = vpop.f32.mrf.mxu0  ;;  %v581_v19 = vpop.f32.mrf.mxu1 }
 0x121   :  { %v3675_v7 = vmul.f32 -1.442695, %v584_v0  ;;  %v585_v6 = vadd.f32 %v510_v3, %v219_v8  ;;  %v587_v10 = vadd.f32 %v581_v19, %v332_v16  ;;  %v6717_v8 = vld [vmem:[#allocation12_spill] sm:$0xff]  ;;  %v6720_v16 = vld [vmem:[#allocation15_spill] sm:$0xff] }
 0x123   :  { %3785 = vpow2.f32 %v3675_v7  ;;  %v3676_v4 = vmul.f32 -1.442695, %v585_v6  ;;  %v3677_v5 = vmul.f32 -1.442695, %v587_v10  ;;  %v6718_v6 = vld [vmem:[#allocation13_spill] sm:$0xff] }
 0x125   :  { %3787 = vpow2.f32 %v3676_v4  ;;  %v6719_v4 = vld [vmem:[#allocation14_spill] sm:$0xff] }
 0x126   :  { %3789 = vpow2.f32 %v3677_v5  ;;  %v6722_v5 = vld [vmem:[#allocation17_spill] sm:$0xff] }
 0x130   :  { %v3786_v53 = vpop.eup %3785 }
 0x131   :  { %v591_v13 = vadd.f32 1.0, %v3786_v53  ;;  %v6723_v53 = vld [vmem:[#allocation18_spill] sm:$0xff] }
 0x132   :  { %v3788_v26 = vpop.eup %3787 }
 0x133   :  { %3791 = vrcp.f32 %v591_v13  ;;  %v597_v3 = vadd.f32 1.0, %v3788_v26  ;;  %v3790_v7 = vpop.eup %3789  ;;  %v6724_v13 = vld [vmem:[#allocation19_spill] sm:$0xff]  ;;  %v6725_v26 = vld [vmem:[#allocation20_spill] sm:$0xff] }
 0x134   :  { %3793 = vtanh.f32 %v586_v14  ;;  %v604_v19 = vadd.f32 1.0, %v3790_v7  ;;  %v6727_v7 = vld [vmem:[#allocation22_spill] sm:$0xff] }
 0x135   :  { %3795 = vrcp.f32 %v597_v3  ;;  %v6726_v3 = vld [vmem:[#allocation21_spill] sm:$0xff] }
 0x136   :  { %3797 = vrcp.f32 %v604_v19  ;;  %v6732_v19 = vld [vmem:[#allocation27_spill] sm:$0xff] }
 0x140   :  { %v3792_v44 = vpop.eup %3791 }
 0x141   :  { %v3794_v12 = vpop.eup %3793 }
 0x142   :  { %v3796_v0 = vpop.eup %3795  ;;  %v608_v62 = vmul.f32 %v3794_v12, %v3792_v44  ;;  %v6728_v44 = vld [vmem:[#allocation23_spill] sm:$0xff]  ;;  %v6730_v12 = vld [vmem:[#allocation25_spill] sm:$0xff] }
 0x143   :  { %v607_v10 = vmul.f32 %v3796_v0, %v441_v18  ;;  %v3798_v35 = vpop.eup %3797  ;;  %v6729_v18 = vld [vmem:[#allocation24_spill] sm:$0xff]  ;;  %v6731_v0 = vld [vmem:[#allocation26_spill] sm:$0xff] }
 0x145   :  { %v4786_v17 = vadd.f32 %v608_v62, %v607_v10  ;;  %v6733_v62 = vld [vmem:[#allocation28_spill] sm:$0xff]  ;;  %v6734_v10 = vld [vmem:[#allocation29_spill] sm:$0xff] }
 0x147   :  { %3799 = vtanh.f32 %v4786_v17 }
 0x154   :  { %v3800_v9 = vpop.eup %3799 }
 0x155   :  { %v4789_v14 = vmul.f32 %v3800_v9, %v3798_v35  ;;  %v6735_v35 = vld [vmem:[#allocation30_spill] sm:$0xff]  ;;  %v6736_v9 = vld [vmem:[#allocation31_spill] sm:$0xff] }
 0x157   :  { %6716 = vst [vmem:[#allocation61_spill] sm:$0xff] %v4789_v14  ;;  %678 = vmatmul.mubr.f32.vlgmr.msra.gmra.mxu0 %v4789_v14  ;;  %749 = vmatmul.mubr.f32.vlgmr.msra.gmra.mxu1 %v4789_v14  ;;  %v6737_v14 = vmov 0.0  }
 0x158   :  { %785 = vmatpush1.msra.mxu0 %v4366_v20  ;;  %856 = vmatpush1.msra.mxu1 %v4368_v21 }
 0x159   :  { %786 = vmatprep.subr.mxu0 %v4372_v22  ;;  %857 = vmatprep.subr.mxu1 %v4374_v23 }
 0x15a   :  { %787 = vmatpush1.msra.mxu0 %v4380_v24  ;;  %858 = vmatpush1.msra.mxu1 %v4382_v25 }
 0x15b   :  { %788 = vmatprep.subr.mxu0 %v4391_v27  ;;  %859 = vmatprep.subr.mxu1 %v4393_v28 }
 0x15c   :  { %789 = vmatpush1.msra.mxu0 %v4397_v29  ;;  %860 = vmatpush1.msra.mxu1 %v4399_v30 }
 0x15d   :  { %790 = vmatprep.subr.mxu0 %v4403_v31  ;;  %861 = vmatprep.subr.mxu1 %v4405_v32 }
 0x15e   :  { %791 = vmatpush1.msra.mxu0 %v4411_v33  ;;  %862 = vmatpush1.msra.mxu1 %v4413_v34 }
 0x15f   :  { %792 = vmatprep.subr.mxu0 %v4422_v36  ;;  %863 = vmatprep.subr.mxu1 %v4424_v37 }
 0x160   :  { %793 = vmatpush1.msra.mxu0 %v4428_v38  ;;  %864 = vmatpush1.msra.mxu1 %v4430_v39 }
 0x161   :  { %794 = vmatprep.subr.mxu0 %v4434_v40  ;;  %865 = vmatprep.subr.mxu1 %v4436_v41 }
 0x162   :  { %795 = vmatpush1.msra.mxu0 %v4442_v42  ;;  %866 = vmatpush1.msra.mxu1 %v4444_v43 }
 0x163   :  { %796 = vmatprep.subr.mxu0 %v4453_v45  ;;  %867 = vmatprep.subr.mxu1 %v4455_v46 }
 0x164   :  { %797 = vmatpush1.msra.mxu0 %v4459_v47  ;;  %868 = vmatpush1.msra.mxu1 %v4461_v48 }
 0x165   :  { %798 = vmatprep.subr.mxu0 %v4465_v49  ;;  %869 = vmatprep.subr.mxu1 %v4467_v50 }
 0x166   :  { %799 = vmatpush1.msra.mxu0 %v4473_v51  ;;  %870 = vmatpush1.msra.mxu1 %v4475_v52 }
 0x167   :  { %800 = vmatprep.subr.mxu0 %v4484_v54  ;;  %871 = vmatprep.subr.mxu1 %v4486_v55 }
 0x168   :  { %801 = vmatpush1.msra.mxu0 %v4490_v56  ;;  %872 = vmatpush1.msra.mxu1 %v4492_v57 }
 0x169   :  { %802 = vmatprep.subr.mxu0 %v4496_v58  ;;  %873 = vmatprep.subr.mxu1 %v4498_v59 }
 0x16a   :  { %803 = vmatpush1.msra.mxu0 %v4504_v60  ;;  %874 = vmatpush1.msra.mxu1 %v4506_v61 }
 0x16b   :  { %804 = vmatprep.subr.mxu0 %v4515_v63  ;;  %875 = vmatprep.subr.mxu1 %v4517_v1 }
 0x16c   :  { %805 = vmatpush1.msra.mxu0 %v4521_v2  ;;  %876 = vmatpush1.msra.mxu1 %v6717_v8 }
 0x16d   :  { %806 = vmatprep.subr.mxu0 %v6718_v6  ;;  %877 = vmatprep.subr.mxu1 %v6719_v4 }
 0x16e   :  { %807 = vmatpush1.msra.mxu0 %v6720_v16  ;;  %878 = vmatpush1.msra.mxu1 %v6721_v15 }
 0x16f   :  { %808 = vmatprep.subr.mxu0 %v6722_v5  ;;  %879 = vmatprep.subr.mxu1 %v6723_v53  ;;  %v6743_v53 = vld [vmem:[#allocation34_spill] sm:$0xff] }
 0x170   :  { %809 = vmatpush1.msra.mxu0 %v6724_v13  ;;  %880 = vmatpush1.msra.mxu1 %v6725_v26  ;;  %v6742_v13 = vld [vmem:[#allocation36_spill] sm:$0xff] }
 0x171   :  { %810 = vmatprep.subr.mxu0 %v6726_v3  ;;  %881 = vmatprep.subr.mxu1 %v6727_v7  ;;  %v6738_v7 = vld [vmem:[#allocation32_spill] sm:$0xff] }
 0x172   :  { %811 = vmatpush1.msra.mxu0 %v6728_v44  ;;  %882 = vmatpush1.msra.mxu1 %v6729_v18  ;;  %v6739_v18 = vld [vmem:[#allocation10_spill] sm:$0xff] }
 0x173   :  { %812 = vmatprep.subr.mxu0 %v6730_v12  ;;  %883 = vmatprep.subr.mxu1 %v6731_v0  ;;  %v6740_v12 = vld [vmem:[#allocation11_spill] sm:$0xff] }
 0x174   :  { %813 = vmatpush1.msra.mxu0 %v6732_v19  ;;  %884 = vmatpush1.msra.mxu1 %v6733_v62 }
 0x175   :  { %814 = vmatprep.subr.mxu0 %v6734_v10  ;;  %885 = vmatprep.subr.mxu1 %v6735_v35  ;;  %v6741_v10 = vld [vmem:[#allocation35_spill] sm:$0xff] }
 0x176   :  { %815 = vmatpush1.msra.mxu0 %v6736_v9  ;;  %848 = vmatprep.mubr.f32.mxu0 %v6737_v14 }
 0x177   :  { %886 = vmatpush1.msra.mxu1 %v6738_v7  ;;  %919 = vmatprep.mubr.f32.mxu1 %v6737_v14 }
 0x178   :  { %955 = vmatprep.subr.mxu0 %v6739_v18  ;;  %1026 = vmatprep.subr.mxu1 %v6740_v12 }
 0x217   :  { %v679_v0 = vpop.f32.mrf.mxu0  ;;  %v750_v35 = vpop.f32.mrf.mxu1 }
 0x218   :  { %v755_v19 = vadd.f32 %v679_v0, %v4707_v11  ;;  %v757_v14 = vadd.f32 %v750_v35, %v6743_v53  ;;  %v6767_v35 = vld [vmem:[#allocation40_spill] sm:$0xff] }
 0x219   :  { %v681_v62 = vpop.f32.mrf.mxu0  ;;  %v752_v26 = vpop.f32.mrf.mxu1 }
 0x21a   :  { %v3678_v44 = vmul.f32 -1.442695, %v755_v19  ;;  %v756_v3 = vadd.f32 %v681_v62, %v6741_v10  ;;  %v758_v7 = vadd.f32 %v752_v26, %v6742_v13 }
 0x21c   :  { %3801 = vpow2.f32 %v3678_v44  ;;  %v3679_v9 = vmul.f32 -1.442695, %v756_v3  ;;  %v3680_v5 = vmul.f32 -1.442695, %v758_v7 }
 0x21e   :  { %3803 = vpow2.f32 %v3679_v9 }
 0x21f   :  { %3805 = vtanh.f32 %v757_v14 }
 0x220   :  { %3807 = vpow2.f32 %v3680_v5 }
 0x229   :  { %v3802_v18 = vpop.eup %3801 }
 0x22a   :  { %v762_v15 = vadd.f32 1.0, %v3802_v18 }
 0x22b   :  { %v3804_v12 = vpop.eup %3803 }
 0x22c   :  { %3809 = vrcp.f32 %v762_v15  ;;  %v768_v11 = vadd.f32 1.0, %v3804_v12  ;;  %v3806_v0 = vpop.eup %3805  ;;  %v6768_v12 = vld [vmem:[#allocation38_spill] sm:$0xff] }
 0x22d   :  { %v3808_v19 = vpop.eup %3807 }
 0x22e   :  { %3811 = vrcp.f32 %v768_v11  ;;  %v775_v10 = vadd.f32 1.0, %v3808_v19 }
 0x230   :  { %3813 = vrcp.f32 %v775_v10 }
 0x239   :  { %v3810_v44 = vpop.eup %3809 }
 0x23a   :  { %v779_v62 = vmul.f32 %v3810_v44, %v3806_v0 }
 0x23b   :  { %v3812_v3 = vpop.eup %3811 }
 0x23c   :  { %v778_v9 = vmul.f32 %v3812_v3, %v4786_v17 }
 0x23d   :  { %v3814_v53 = vpop.eup %3813 }
 0x23e   :  { %v4864_v13 = vadd.f32 %v779_v62, %v778_v9 }
 0x240   :  { %3815 = vtanh.f32 %v4864_v13 }
 0x24d   :  { %v3816_v14 = vpop.eup %3815 }
 0x24e   :  { %v4867_v26 = vmul.f32 %v3816_v14, %v3814_v53 }
 0x250   :  { %6744 = vst [vmem:[#allocation12_spill] sm:$0xff] %v4867_v26  ;;  %849 = vmatmul.mubr.f32.vlgmr.msra.gmra.mxu0 %v4867_v26  ;;  %920 = vmatmul.mubr.f32.vlgmr.msra.gmra.mxu1 %v4867_v26  ;;  %v5022_v26 = vld [vmem:[#allocation3 + $0x138] sm:$0xff] }
 0x251   :  { %956 = vmatpush1.msra.mxu0 %v4366_v20  ;;  %1027 = vmatpush1.msra.mxu1 %v4368_v21  ;;  %v6745_v20 = vld [vmem:[#allocation16_spill] sm:$0xff]  ;;  %v6746_v21 = vld [vmem:[#allocation17_spill] sm:$0xff] }
 0x252   :  { %957 = vmatprep.subr.mxu0 %v4372_v22  ;;  %1028 = vmatprep.subr.mxu1 %v4374_v23  ;;  %v6747_v22 = vld [vmem:[#allocation18_spill] sm:$0xff]  ;;  %v6748_v23 = vld [vmem:[#allocation19_spill] sm:$0xff] }
 0x253   :  { %958 = vmatpush1.msra.mxu0 %v4380_v24  ;;  %1029 = vmatpush1.msra.mxu1 %v4382_v25  ;;  %v6749_v24 = vld [vmem:[#allocation20_spill] sm:$0xff]  ;;  %v6750_v25 = vld [vmem:[#allocation21_spill] sm:$0xff] }
 0x254   :  { %959 = vmatprep.subr.mxu0 %v4391_v27  ;;  %1030 = vmatprep.subr.mxu1 %v4393_v28  ;;  %v6751_v27 = vld [vmem:[#allocation22_spill] sm:$0xff]  ;;  %v6752_v28 = vld [vmem:[#allocation23_spill] sm:$0xff] }
 0x255   :  { %960 = vmatpush1.msra.mxu0 %v4397_v29  ;;  %1031 = vmatpush1.msra.mxu1 %v4399_v30  ;;  %v6753_v29 = vld [vmem:[#allocation24_spill] sm:$0xff]  ;;  %v6754_v30 = vld [vmem:[#allocation25_spill] sm:$0xff] }
 0x256   :  { %961 = vmatprep.subr.mxu0 %v4403_v31  ;;  %1032 = vmatprep.subr.mxu1 %v4405_v32  ;;  %v6755_v31 = vld [vmem:[#allocation26_spill] sm:$0xff]  ;;  %v6756_v32 = vld [vmem:[#allocation27_spill] sm:$0xff] }
 0x257   :  { %962 = vmatpush1.msra.mxu0 %v4411_v33  ;;  %1033 = vmatpush1.msra.mxu1 %v4413_v34  ;;  %v6757_v33 = vld [vmem:[#allocation28_spill] sm:$0xff]  ;;  %v6758_v34 = vld [vmem:[#allocation29_spill] sm:$0xff] }
 0x258   :  { %963 = vmatprep.subr.mxu0 %v4422_v36  ;;  %1034 = vmatprep.subr.mxu1 %v4424_v37  ;;  %v6759_v36 = vld [vmem:[#allocation30_spill] sm:$0xff]  ;;  %v6760_v37 = vld [vmem:[#allocation31_spill] sm:$0xff] }
 0x259   :  { %964 = vmatpush1.msra.mxu0 %v4428_v38  ;;  %1035 = vmatpush1.msra.mxu1 %v4430_v39  ;;  %v6761_v38 = vmov 0.0   ;;  %v6762_v39 = vld [vmem:[#allocation32_spill] sm:$0xff] }
 0x25a   :  { %965 = vmatprep.subr.mxu0 %v4434_v40  ;;  %1036 = vmatprep.subr.mxu1 %v4436_v41  ;;  %v4935_v40 = vld [vmem:[#allocation3 + $0x1e8] sm:$0xff]  ;;  %v4938_v41 = vld [vmem:[#allocation3 + $0x1f8] sm:$0xff] }
 0x25b   :  { %966 = vmatpush1.msra.mxu0 %v4442_v42  ;;  %1037 = vmatpush1.msra.mxu1 %v4444_v43  ;;  %6763 = vst [vmem:[#allocation13_spill] sm:$0xff] %v4935_v40  ;;  %6764 = vst [vmem:[#allocation14_spill] sm:$0xff] %v4938_v41  ;;  %v6765_v43 = vld [vmem:[#allocation37_spill] sm:$0xff] }
 0x25c   :  { %967 = vmatprep.subr.mxu0 %v4453_v45  ;;  %1038 = vmatprep.subr.mxu1 %v4455_v46 }
 0x25d   :  { %968 = vmatpush1.msra.mxu0 %v4459_v47  ;;  %1039 = vmatpush1.msra.mxu1 %v4461_v48  ;;  %v6766_v48 = vld [vmem:[#allocation39_spill] sm:$0xff] }
 0x25e   :  { %969 = vmatprep.subr.mxu0 %v4465_v49  ;;  %1040 = vmatprep.subr.mxu1 %v4467_v50 }
 0x25f   :  { %970 = vmatpush1.msra.mxu0 %v4473_v51  ;;  %1041 = vmatpush1.msra.mxu1 %v4475_v52 }
 0x260   :  { %971 = vmatprep.subr.mxu0 %v4484_v54  ;;  %1042 = vmatprep.subr.mxu1 %v4486_v55 }
 0x261   :  { %972 = vmatpush1.msra.mxu0 %v4490_v56  ;;  %1043 = vmatpush1.msra.mxu1 %v4492_v57 }
 0x262   :  { %973 = vmatprep.subr.mxu0 %v4496_v58  ;;  %1044 = vmatprep.subr.mxu1 %v4498_v59 }
 0x263   :  { %974 = vmatpush1.msra.mxu0 %v4504_v60  ;;  %1045 = vmatpush1.msra.mxu1 %v4506_v61 }
 0x264   :  { %975 = vmatprep.subr.mxu0 %v4515_v63  ;;  %1046 = vmatprep.subr.mxu1 %v4517_v1 }
 0x265   :  { %976 = vmatpush1.msra.mxu0 %v4521_v2  ;;  %1047 = vmatpush1.msra.mxu1 %v6717_v8 }
 0x266   :  { %977 = vmatprep.subr.mxu0 %v6718_v6  ;;  %1048 = vmatprep.subr.mxu1 %v6719_v4 }
 0x267   :  { %978 = vmatpush1.msra.mxu0 %v6720_v16  ;;  %1049 = vmatpush1.msra.mxu1 %v6745_v20 }
 0x268   :  { %979 = vmatprep.subr.mxu0 %v6746_v21  ;;  %1050 = vmatprep.subr.mxu1 %v6747_v22 }
 0x269   :  { %980 = vmatpush1.msra.mxu0 %v6748_v23  ;;  %1051 = vmatpush1.msra.mxu1 %v6749_v24 }
 0x26a   :  { %981 = vmatprep.subr.mxu0 %v6750_v25  ;;  %1052 = vmatprep.subr.mxu1 %v6751_v27 }
 0x26b   :  { %982 = vmatpush1.msra.mxu0 %v6752_v28  ;;  %1053 = vmatpush1.msra.mxu1 %v6753_v29 }
 0x26c   :  { %983 = vmatprep.subr.mxu0 %v6754_v30  ;;  %1054 = vmatprep.subr.mxu1 %v6755_v31 }
 0x26d   :  { %984 = vmatpush1.msra.mxu0 %v6756_v32  ;;  %1055 = vmatpush1.msra.mxu1 %v6757_v33 }
 0x26e   :  { %985 = vmatprep.subr.mxu0 %v6758_v34  ;;  %1056 = vmatprep.subr.mxu1 %v6759_v36 }
 0x26f   :  { %986 = vmatpush1.msra.mxu0 %v6760_v37  ;;  %1019 = vmatprep.mubr.f32.mxu0 %v6761_v38 }
 0x270   :  { %1057 = vmatpush1.msra.mxu1 %v6762_v39  ;;  %1090 = vmatprep.mubr.f32.mxu1 %v6761_v38 }
 0x271   :  { %1126 = vmatprep.subr.mxu0 %v4935_v40  ;;  %1197 = vmatprep.subr.mxu1 %v4938_v41 }
 0x310   :  { %v850_v42 = vpop.f32.mrf.mxu0  ;;  %v921_v15 = vpop.f32.mrf.mxu1 }
 0x311   :  { %v926_v45 = vadd.f32 %v850_v42, %v6765_v43  ;;  %v928_v11 = vadd.f32 %v921_v15, %v6768_v12  ;;  %v4953_v15 = vld [vmem:[#allocation3 + $0x1e0] sm:$0xff]  ;;  %v4971_v12 = vld [vmem:[#allocation3 + $0x1a8] sm:$0xff] }
 0x312   :  { %v852_v46 = vpop.f32.mrf.mxu0  ;;  %v923_v7 = vpop.f32.mrf.mxu1 }
 0x313   :  { %v3681_v47 = vmul.f32 -1.442695, %v926_v45  ;;  %v927_v17 = vadd.f32 %v852_v46, %v6766_v48  ;;  %v929_v18 = vadd.f32 %v923_v7, %v6767_v35  ;;  %v4962_v7 = vld [vmem:[#allocation3 + $0x1d8] sm:$0xff]  ;;  %v4965_v35 = vld [vmem:[#allocation3 + $0x1c0] sm:$0xff] }
 0x315   :  { %3817 = vpow2.f32 %v3681_v47  ;;  %v3682_v5 = vmul.f32 -1.442695, %v927_v17  ;;  %v3683_v0 = vmul.f32 -1.442695, %v929_v18  ;;  %v4968_v18 = vld [vmem:[#allocation3 + $0x1d0] sm:$0xff] }
 0x317   :  { %3819 = vpow2.f32 %v3682_v5  ;;  %v4956_v5 = vld [vmem:[#allocation3 + $0x1f0] sm:$0xff] }
 0x318   :  { %3821 = vtanh.f32 %v928_v11  ;;  %v4974_v11 = vld [vmem:[#allocation3 + $0x1b8] sm:$0xff] }
 0x319   :  { %3823 = vpow2.f32 %v3683_v0  ;;  %v4977_v0 = vld [vmem:[#allocation3 + $0x1a0] sm:$0xff] }
 0x322   :  { %v3818_v19 = vpop.eup %3817 }
 0x323   :  { %v933_v44 = vadd.f32 1.0, %v3818_v19  ;;  %v4980_v19 = vld [vmem:[#allocation3 + $0x1b0] sm:$0xff] }
 0x324   :  { %v3820_v62 = vpop.eup %3819 }
 0x325   :  { %3825 = vrcp.f32 %v933_v44  ;;  %v939_v3 = vadd.f32 1.0, %v3820_v62  ;;  %v3822_v10 = vpop.eup %3821  ;;  %v4983_v44 = vld [vmem:[#allocation3 + $0x188] sm:$0xff]  ;;  %v4986_v62 = vld [vmem:[#allocation3 + $0x198] sm:$0xff] }
 0x326   :  { %v3824_v9 = vpop.eup %3823 }
 0x327   :  { %3827 = vrcp.f32 %v939_v3  ;;  %v946_v43 = vadd.f32 1.0, %v3824_v9  ;;  %v4989_v3 = vld [vmem:[#allocation3 + $0x180] sm:$0xff]  ;;  %v4995_v9 = vld [vmem:[#allocation3 + $0x168] sm:$0xff] }
 0x329   :  { %3829 = vrcp.f32 %v946_v43  ;;  %v5007_v43 = vld [vmem:[#allocation3 + $0x148] sm:$0xff] }
 0x32a   :  { %6770 = vst [vmem:[#allocation10_spill] sm:$0xff] %v5007_v43 }
 0x332   :  { %v3826_v53 = vpop.eup %3825 }
 0x333   :  { %v950_v14 = vmul.f32 %v3826_v53, %v3822_v10  ;;  %v4992_v10 = vld [vmem:[#allocation3 + $0x190] sm:$0xff]  ;;  %v4998_v53 = vld [vmem:[#allocation3 + $0x178] sm:$0xff] }
 0x334   :  { %v3828_v42 = vpop.eup %3827 }
 0x335   :  { %v949_v45 = vmul.f32 %v3828_v42, %v4864_v13  ;;  %v4959_v13 = vld [vmem:[#allocation3 + $0x1c8] sm:$0xff]  ;;  %v5004_v42 = vld [vmem:[#allocation3 + $0x170] sm:$0xff] }
 0x336   :  { %v3830_v47 = vpop.eup %3829 }
 0x337   :  { %v4946_v46 = vadd.f32 %v950_v14, %v949_v45  ;;  %v5001_v14 = vld [vmem:[#allocation3 + $0x160] sm:$0xff]  ;;  %v5010_v45 = vld [vmem:[#allocation3 + $0x158] sm:$0xff] }
 0x338   :  { %6771 = vst [vmem:[#allocation11_spill] sm:$0xff] %v5010_v45 }
 0x339   :  { %3831 = vtanh.f32 %v4946_v46 }
 0x346   :  { %v3832_v48 = vpop.eup %3831 }
 0x347   :  { %v4949_v17 = vmul.f32 %v3832_v48, %v3830_v47  ;;  %v5013_v47 = vld [vmem:[#allocation3 + $0x140] sm:$0xff]  ;;  %v5016_v48 = vld [vmem:[#allocation3 + $0x150] sm:$0xff] }
 0x349   :  { %6769 = vst [vmem:[#allocation15_spill] sm:$0xff] %v4949_v17  ;;  %1020 = vmatmul.mubr.f32.vlgmr.msra.gmra.mxu0 %v4949_v17  ;;  %1091 = vmatmul.mubr.f32.vlgmr.msra.gmra.mxu1 %v4949_v17  ;;  %v5019_v17 = vld [vmem:[#allocation3 + $0x128] sm:$0xff] }
 0x34a   :  { %1127 = vmatpush1.msra.mxu0 %v4953_v15  ;;  %1198 = vmatpush1.msra.mxu1 %v4956_v5 }
 0x34b   :  { %1128 = vmatprep.subr.mxu0 %v4959_v13  ;;  %1199 = vmatprep.subr.mxu1 %v4962_v7 }
 0x34c   :  { %1129 = vmatpush1.msra.mxu0 %v4965_v35  ;;  %1200 = vmatpush1.msra.mxu1 %v4968_v18 }
 0x34d   :  { %1130 = vmatprep.subr.mxu0 %v4971_v12  ;;  %1201 = vmatprep.subr.mxu1 %v4974_v11 }
 0x34e   :  { %1131 = vmatpush1.msra.mxu0 %v4977_v0  ;;  %1202 = vmatpush1.msra.mxu1 %v4980_v19 }
 0x34f   :  { %1132 = vmatprep.subr.mxu0 %v4983_v44  ;;  %1203 = vmatprep.subr.mxu1 %v4986_v62 }
 0x350   :  { %1133 = vmatpush1.msra.mxu0 %v4989_v3  ;;  %1204 = vmatpush1.msra.mxu1 %v4992_v10 }
 0x351   :  { %1134 = vmatprep.subr.mxu0 %v4995_v9  ;;  %1205 = vmatprep.subr.mxu1 %v4998_v53 }
 0x352   :  { %1135 = vmatpush1.msra.mxu0 %v5001_v14  ;;  %1206 = vmatpush1.msra.mxu1 %v5004_v42 }
 0x353   :  { %1136 = vmatprep.subr.mxu0 %v5007_v43  ;;  %1207 = vmatprep.subr.mxu1 %v5010_v45  ;;  %v5025_v43 = vld [vmem:[#allocation3 + $0x120] sm:$0xff]  ;;  %v5028_v45 = vld [vmem:[#allocation3 + $0x130] sm:$0xff] }
 0x354   :  { %1137 = vmatpush1.msra.mxu0 %v5013_v47  ;;  %1208 = vmatpush1.msra.mxu1 %v5016_v48 }
 0x355   :  { %1138 = vmatprep.subr.mxu0 %v5019_v17  ;;  %1209 = vmatprep.subr.mxu1 %v5022_v26 }
 0x356   :  { %1139 = vmatpush1.msra.mxu0 %v5025_v43  ;;  %1210 = vmatpush1.msra.mxu1 %v5028_v45 }
 0x357   :  { %1140 = vmatprep.subr.mxu0 %v4465_v49  ;;  %1211 = vmatprep.subr.mxu1 %v4467_v50  ;;  %v6772_v50 = vld [vmem:[#allocation41_spill] sm:$0xff] }
 0x358   :  { %1141 = vmatpush1.msra.mxu0 %v4473_v51  ;;  %1212 = vmatpush1.msra.mxu1 %v4475_v52 }
 0x359   :  { %1142 = vmatprep.subr.mxu0 %v4484_v54  ;;  %1213 = vmatprep.subr.mxu1 %v4486_v55  ;;  %v6773_v55 = vld [vmem:[#allocation43_spill] sm:$0xff] }
 0x35a   :  { %1143 = vmatpush1.msra.mxu0 %v4490_v56  ;;  %1214 = vmatpush1.msra.mxu1 %v4492_v57 }
 0x35b   :  { %1144 = vmatprep.subr.mxu0 %v4496_v58  ;;  %1215 = vmatprep.subr.mxu1 %v4498_v59 }
 0x35c   :  { %1145 = vmatpush1.msra.mxu0 %v4504_v60  ;;  %1216 = vmatpush1.msra.mxu1 %v4506_v61  ;;  %v6774_v60 = vld [vmem:[#allocation44_spill] sm:$0xff] }
 0x35d   :  { %1146 = vmatprep.subr.mxu0 %v4515_v63  ;;  %1217 = vmatprep.subr.mxu1 %v4517_v1  ;;  %v6775_v63 = vld [vmem:[#allocation42_spill] sm:$0xff] }
 0x35e   :  { %1147 = vmatpush1.msra.mxu0 %v4521_v2  ;;  %1218 = vmatpush1.msra.mxu1 %v6717_v8 }
 0x35f   :  { %1148 = vmatprep.subr.mxu0 %v6718_v6  ;;  %1219 = vmatprep.subr.mxu1 %v6719_v4 }
 0x360   :  { %1149 = vmatpush1.msra.mxu0 %v6720_v16  ;;  %1220 = vmatpush1.msra.mxu1 %v6745_v20 }
 0x361   :  { %1150 = vmatprep.subr.mxu0 %v6746_v21  ;;  %1221 = vmatprep.subr.mxu1 %v6747_v22 }
 0x362   :  { %1151 = vmatpush1.msra.mxu0 %v6748_v23  ;;  %1222 = vmatpush1.msra.mxu1 %v6749_v24 }
 0x363   :  { %1152 = vmatprep.subr.mxu0 %v6750_v25  ;;  %1223 = vmatprep.subr.mxu1 %v6751_v27 }
 0x364   :  { %1153 = vmatpush1.msra.mxu0 %v6752_v28  ;;  %1224 = vmatpush1.msra.mxu1 %v6753_v29 }
 0x365   :  { %1154 = vmatprep.subr.mxu0 %v6754_v30  ;;  %1225 = vmatprep.subr.mxu1 %v6755_v31 }
 0x366   :  { %1155 = vmatpush1.msra.mxu0 %v6756_v32  ;;  %1226 = vmatpush1.msra.mxu1 %v6757_v33  ;;  %v6777_v32 = vld [vmem:[#allocation10_spill] sm:$0xff]  ;;  %v6778_v33 = vld [vmem:[#allocation11_spill] sm:$0xff] }
 0x367   :  { %1156 = vmatprep.subr.mxu0 %v6758_v34  ;;  %1227 = vmatprep.subr.mxu1 %v6759_v36  ;;  %v5109_v34 = vld [vmem:[#allocation3 + $0x108] sm:$0xff]  ;;  %v5112_v36 = vld [vmem:[#allocation3 + $0x118] sm:$0xff] }
 0x368   :  { %1157 = vmatpush1.msra.mxu0 %v6760_v37  ;;  %1190 = vmatprep.mubr.f32.mxu0 %v6761_v38  ;;  %v5115_v37 = vld [vmem:[#allocation3 + $0x100] sm:$0xff] }
 0x369   :  { %1228 = vmatpush1.msra.mxu1 %v6762_v39  ;;  %1261 = vmatprep.mubr.f32.mxu1 %v6761_v38  ;;  %v5118_v39 = vld [vmem:[#allocation3 + $0x110] sm:$0xff] }
 0x36a   :  { %1297 = vmatprep.subr.mxu0 %v4935_v40  ;;  %1368 = vmatprep.subr.mxu1 %v4938_v41 }
 0x409   :  { %v1021_v49 = vpop.f32.mrf.mxu0  ;;  %v1092_v57 = vpop.f32.mrf.mxu1 }
 0x40a   :  { %v1097_v51 = vadd.f32 %v1021_v49, %v6772_v50  ;;  %v1099_v1 = vadd.f32 %v1092_v57, %v6775_v63  ;;  %v5124_v49 = vld [vmem:[#allocation3 + $0xf8] sm:$0xff]  ;;  %v5127_v50 = vld [vmem:[#allocation3 + $0xe0] sm:$0xff]  ;;  %v5145_v57 = vld [vmem:[#allocation3 + $0xa8] sm:$0xff] }
 0x40b   :  { %v1023_v52 = vpop.f32.mrf.mxu0  ;;  %v1094_v59 = vpop.f32.mrf.mxu1  ;;  %v5160_v63 = vld [vmem:[#allocation3 + $0x98] sm:$0xff] }
 0x40c   :  { %v3684_v54 = vmul.f32 -1.442695, %v1097_v51  ;;  %v1098_v56 = vadd.f32 %v1023_v52, %v6773_v55  ;;  %v1100_v61 = vadd.f32 %v1094_v59, %v6774_v60  ;;  %v5130_v51 = vld [vmem:[#allocation3 + $0xf0] sm:$0xff]  ;;  %v5133_v52 = vld [vmem:[#allocation3 + $0xc8] sm:$0xff]  ;;  %v5139_v55 = vld [vmem:[#allocation3 + $0xc0] sm:$0xff] }
 0x40d   :  { %v5151_v59 = vld [vmem:[#allocation3 + $0xa0] sm:$0xff]  ;;  %v5154_v60 = vld [vmem:[#allocation3 + $0xb0] sm:$0xff] }
 0x40e   :  { %3833 = vpow2.f32 %v3684_v54  ;;  %v3685_v58 = vmul.f32 -1.442695, %v1098_v56  ;;  %v3686_v2 = vmul.f32 -1.442695, %v1100_v61  ;;  %v5136_v54 = vld [vmem:[#allocation3 + $0xd8] sm:$0xff]  ;;  %v5142_v56 = vld [vmem:[#allocation3 + $0xd0] sm:$0xff] }
 0x40f   :  { %v5157_v61 = vld [vmem:[#allocation3 + $0x88] sm:$0xff] }
 0x410   :  { %3835 = vpow2.f32 %v3685_v58  ;;  %v5148_v58 = vld [vmem:[#allocation3 + $0xb8] sm:$0xff] }
 0x411   :  { %3837 = vtanh.f32 %v1099_v1  ;;  %v5163_v1 = vld [vmem:[#allocation3 + $0x80] sm:$0xff] }
 0x412   :  { %3839 = vpow2.f32 %v3686_v2  ;;  %v5166_v2 = vld [vmem:[#allocation3 + $0x90] sm:$0xff] }
 0x413   :  { %6779 = vst [vmem:[#allocation36_spill] sm:$0xff] %v5166_v2 }
 0x41b   :  { %v3834_v8 = vpop.eup %3833 }
 0x41c   :  { %v1104_v6 = vadd.f32 1.0, %v3834_v8  ;;  %v5169_v8 = vld [vmem:[#allocation3 + $0x68] sm:$0xff] }
 0x41d   :  { %v3836_v4 = vpop.eup %3835  ;;  %6780 = vst [vmem:[#allocation34_spill] sm:$0xff] %v5169_v8 }
 0x41e   :  { %3841 = vrcp.f32 %v1104_v6  ;;  %v1110_v16 = vadd.f32 1.0, %v3836_v4  ;;  %v3838_v20 = vpop.eup %3837  ;;  %v5172_v6 = vld [vmem:[#allocation3 + $0x78] sm:$0xff]  ;;  %v5175_v4 = vld [vmem:[#allocation3 + $0x60] sm:$0xff] }
 0x41f   :  { %v3840_v21 = vpop.eup %3839  ;;  %6781 = vst [vmem:[#allocation16_spill] sm:$0xff] %v5172_v6  ;;  %6782 = vst [vmem:[#allocation17_spill] sm:$0xff] %v5175_v4 }
 0x420   :  { %3843 = vrcp.f32 %v1110_v16  ;;  %v1117_v25 = vadd.f32 1.0, %v3840_v21  ;;  %v5178_v16 = vld [vmem:[#allocation3 + $0x70] sm:$0xff]  ;;  %v5184_v21 = vld [vmem:[#allocation3 + $0x58] sm:$0xff] }
 0x421   :  { %6783 = vst [vmem:[#allocation18_spill] sm:$0xff] %v5178_v16  ;;  %6785 = vst [vmem:[#allocation20_spill] sm:$0xff] %v5184_v21 }
 0x422   :  { %3845 = vrcp.f32 %v1117_v25  ;;  %v5196_v25 = vld [vmem:[#allocation3 + $0x38] sm:$0xff] }
 0x423   :  { %6789 = vst [vmem:[#allocation24_spill] sm:$0xff] %v5196_v25 }
 0x42b   :  { %v3842_v22 = vpop.eup %3841 }
 0x42c   :  { %v1121_v23 = vmul.f32 %v3842_v22, %v3838_v20  ;;  %v5181_v20 = vld [vmem:[#allocation3 + $0x48] sm:$0xff]  ;;  %v5187_v22 = vld [vmem:[#allocation3 + $0x40] sm:$0xff] }
 0x42d   :  { %v3844_v24 = vpop.eup %3843  ;;  %6784 = vst [vmem:[#allocation19_spill] sm:$0xff] %v5181_v20  ;;  %6786 = vst [vmem:[#allocation21_spill] sm:$0xff] %v5187_v22 }
 0x42e   :  { %v1120_v27 = vmul.f32 %v3844_v24, %v4946_v46  ;;  %v5121_v46 = vld [vmem:[#allocation3 + $0xe8] sm:$0xff] }
 0x42f   :  { %v3846_v29 = vpop.eup %3845  ;;  %v5193_v24 = vld [vmem:[#allocation3 + $0x28] sm:$0xff] }
 0x430   :  { %v5076_v28 = vadd.f32 %v1121_v23, %v1120_v27  ;;  %v5190_v23 = vld [vmem:[#allocation3 + $0x50] sm:$0xff]  ;;  %6788 = vst [vmem:[#allocation23_spill] sm:$0xff] %v5193_v24  ;;  %v5199_v27 = vld [vmem:[#allocation3 + $0x20] sm:$0xff] }
 0x431   :  { %6787 = vst [vmem:[#allocation22_spill] sm:$0xff] %v5190_v23  ;;  %6790 = vst [vmem:[#allocation25_spill] sm:$0xff] %v5199_v27 }
 0x432   :  { %3847 = vtanh.f32 %v5076_v28 }
 0x43f   :  { %v3848_v30 = vpop.eup %3847 }
 0x440   :  { %v5079_v31 = vmul.f32 %v3848_v30, %v3846_v29  ;;  %v5202_v29 = vld [vmem:[#allocation3 + $0x30] sm:$0xff]  ;;  %v5205_v30 = vld [vmem:[#allocation3 + $0x8] sm:$0xff] }
 0x441   :  { %6791 = vst [vmem:[#allocation26_spill] sm:$0xff] %v5202_v29  ;;  %6792 = vst [vmem:[#allocation27_spill] sm:$0xff] %v5205_v30 }
 0x442   :  { %6776 = vst [vmem:[#allocation35_spill] sm:$0xff] %v5079_v31  ;;  %1191 = vmatmul.mubr.f32.vlgmr.msra.gmra.mxu0 %v5079_v31  ;;  %1262 = vmatmul.mubr.f32.vlgmr.msra.gmra.mxu1 %v5079_v31  ;;  %v5208_v31 = vld [vmem:[#allocation3 + $0x18] sm:$0xff] }
 0x443   :  { %1298 = vmatpush1.msra.mxu0 %v4953_v15  ;;  %1369 = vmatpush1.msra.mxu1 %v4956_v5  ;;  %6793 = vst [vmem:[#allocation28_spill] sm:$0xff] %v5208_v31 }
 0x444   :  { %1299 = vmatprep.subr.mxu0 %v4959_v13  ;;  %1370 = vmatprep.subr.mxu1 %v4962_v7 }
 0x445   :  { %1300 = vmatpush1.msra.mxu0 %v4965_v35  ;;  %1371 = vmatpush1.msra.mxu1 %v4968_v18 }
 0x446   :  { %1301 = vmatprep.subr.mxu0 %v4971_v12  ;;  %1372 = vmatprep.subr.mxu1 %v4974_v11 }
 0x447   :  { %1302 = vmatpush1.msra.mxu0 %v4977_v0  ;;  %1373 = vmatpush1.msra.mxu1 %v4980_v19 }
 0x448   :  { %1303 = vmatprep.subr.mxu0 %v4983_v44  ;;  %1374 = vmatprep.subr.mxu1 %v4986_v62 }
 0x449   :  { %1304 = vmatpush1.msra.mxu0 %v4989_v3  ;;  %1375 = vmatpush1.msra.mxu1 %v4992_v10 }
 0x44a   :  { %1305 = vmatprep.subr.mxu0 %v4995_v9  ;;  %1376 = vmatprep.subr.mxu1 %v4998_v53 }
 0x44b   :  { %1306 = vmatpush1.msra.mxu0 %v5001_v14  ;;  %1377 = vmatpush1.msra.mxu1 %v5004_v42 }
 0x44c   :  { %1307 = vmatprep.subr.mxu0 %v6777_v32  ;;  %1378 = vmatprep.subr.mxu1 %v6778_v33 }
 0x44d   :  { %1308 = vmatpush1.msra.mxu0 %v5013_v47  ;;  %1379 = vmatpush1.msra.mxu1 %v5016_v48 }
 0x44e   :  { %1309 = vmatprep.subr.mxu0 %v5019_v17  ;;  %1380 = vmatprep.subr.mxu1 %v5022_v26 }
 0x44f   :  { %1310 = vmatpush1.msra.mxu0 %v5025_v43  ;;  %1381 = vmatpush1.msra.mxu1 %v5028_v45 }
 0x450   :  { %1311 = vmatprep.subr.mxu0 %v5109_v34  ;;  %1382 = vmatprep.subr.mxu1 %v5112_v36 }
 0x451   :  { %1312 = vmatpush1.msra.mxu0 %v5115_v37  ;;  %1383 = vmatpush1.msra.mxu1 %v5118_v39 }
 0x452   :  { %1313 = vmatprep.subr.mxu0 %v5121_v46  ;;  %1384 = vmatprep.subr.mxu1 %v5124_v49 }
 0x453   :  { %1314 = vmatpush1.msra.mxu0 %v5127_v50  ;;  %1385 = vmatpush1.msra.mxu1 %v5130_v51 }
 0x454   :  { %1315 = vmatprep.subr.mxu0 %v5133_v52  ;;  %1386 = vmatprep.subr.mxu1 %v5136_v54 }
 0x455   :  { %1316 = vmatpush1.msra.mxu0 %v5139_v55  ;;  %1387 = vmatpush1.msra.mxu1 %v5142_v56 }
 0x456   :  { %1317 = vmatprep.subr.mxu0 %v5145_v57  ;;  %1388 = vmatprep.subr.mxu1 %v5148_v58 }
 0x457   :  { %1318 = vmatpush1.msra.mxu0 %v5151_v59  ;;  %1389 = vmatpush1.msra.mxu1 %v5154_v60 }
 0x458   :  { %1319 = vmatprep.subr.mxu0 %v5157_v61  ;;  %1390 = vmatprep.subr.mxu1 %v5160_v63 }
 0x459   :  { %1320 = vmatpush1.msra.mxu0 %v5163_v1  ;;  %1391 = vmatpush1.msra.mxu1 %v5166_v2 }
 0x45a   :  { %1321 = vmatprep.subr.mxu0 %v5169_v8  ;;  %1392 = vmatprep.subr.mxu1 %v5172_v6  ;;  %v6799_v6 = vld [vmem:[#allocation46_spill] sm:$0xff] }
 0x45b   :  { %1322 = vmatpush1.msra.mxu0 %v5175_v4  ;;  %1393 = vmatpush1.msra.mxu1 %v5178_v16  ;;  %v6798_v4 = vld [vmem:[#allocation48_spill] sm:$0xff] }
 0x45c   :  { %1323 = vmatprep.subr.mxu0 %v5181_v20  ;;  %1394 = vmatprep.subr.mxu1 %v5184_v21 }
 0x45d   :  { %1324 = vmatpush1.msra.mxu0 %v5187_v22  ;;  %1395 = vmatpush1.msra.mxu1 %v5190_v23  ;;  %v6797_v22 = vld [vmem:[#allocation47_spill] sm:$0xff] }
 0x45e   :  { %1325 = vmatprep.subr.mxu0 %v5193_v24  ;;  %1396 = vmatprep.subr.mxu1 %v5196_v25  ;;  %v5211_v24 = vld [vmem:[#allocation3] sm:$0xff]  ;;  %v5215_v25 = vld [vmem:[#allocation3 + $0x10] sm:$0xff] }
 0x45f   :  { %1326 = vmatpush1.msra.mxu0 %v5199_v27  ;;  %1397 = vmatpush1.msra.mxu1 %v5202_v29  ;;  %6794 = vst [vmem:[#allocation29_spill] sm:$0xff] %v5211_v24  ;;  %6795 = vst [vmem:[#allocation30_spill] sm:$0xff] %v5215_v25  ;;  %v6796_v29 = vld [vmem:[#allocation45_spill] sm:$0xff] }
 0x460   :  { %1327 = vmatprep.subr.mxu0 %v5205_v30  ;;  %1398 = vmatprep.subr.mxu1 %v5208_v31 }
 0x461   :  { %1328 = vmatpush1.msra.mxu0 %v5211_v24  ;;  %1361 = vmatprep.mubr.f32.mxu0 %v6761_v38 }
 0x462   :  { %1399 = vmatpush1.msra.mxu1 %v5215_v25  ;;  %1432 = vmatprep.mubr.f32.mxu1 %v6761_v38 }
 0x463   :  { %1468 = vmatprep.subr.mxu0 %v4935_v40  ;;  %1539 = vmatprep.subr.mxu1 %v4938_v41 }
 0x502   :  { %v1192_v30 = vpop.f32.mrf.mxu0  ;;  %v1263_v24 = vpop.f32.mrf.mxu1 }
 0x503   :  { %v1268_v27 = vadd.f32 %v1192_v30, %v6796_v29  ;;  %v1270_v38 = vadd.f32 %v1263_v24, %v6799_v6  ;;  %v6806_v24 = vld [vmem:[#allocation19_spill] sm:$0xff] }
 0x504   :  { %v1194_v31 = vpop.f32.mrf.mxu0  ;;  %v1265_v16 = vpop.f32.mrf.mxu1 }
 0x505   :  { %v3687_v23 = vmul.f32 -1.442695, %v1268_v27  ;;  %v1269_v21 = vadd.f32 %v1194_v31, %v6797_v22  ;;  %v1271_v25 = vadd.f32 %v1265_v16, %v6798_v4  ;;  %v6805_v16 = vld [vmem:[#allocation18_spill] sm:$0xff] }
 0x507   :  { %3849 = vpow2.f32 %v3687_v23  ;;  %v3688_v20 = vmul.f32 -1.442695, %v1269_v21  ;;  %v3689_v8 = vmul.f32 -1.442695, %v1271_v25  ;;  %v6807_v25 = vld [vmem:[#allocation20_spill] sm:$0xff] }
 0x509   :  { %3851 = vpow2.f32 %v3688_v20 }
 0x50a   :  { %3853 = vtanh.f32 %v1270_v38 }
 0x50b   :  { %3855 = vpow2.f32 %v3689_v8  ;;  %v6804_v8 = vld [vmem:[#allocation17_spill] sm:$0xff] }
 0x514   :  { %v3850_v40 = vpop.eup %3849 }
 0x515   :  { %v1275_v2 = vadd.f32 1.0, %v3850_v40 }
 0x516   :  { %v3852_v41 = vpop.eup %3851 }
 0x517   :  { %3857 = vrcp.f32 %v1275_v2  ;;  %v1281_v29 = vadd.f32 1.0, %v3852_v41  ;;  %v3854_v27 = vpop.eup %3853  ;;  %v6801_v41 = vld [vmem:[#allocation36_spill] sm:$0xff] }
 0x518   :  { %v3856_v31 = vpop.eup %3855  ;;  %v6803_v2 = vld [vmem:[#allocation16_spill] sm:$0xff] }
 0x519   :  { %3859 = vrcp.f32 %v1281_v29  ;;  %v1288_v20 = vadd.f32 1.0, %v3856_v31  ;;  %v6808_v29 = vld [vmem:[#allocation21_spill] sm:$0xff]  ;;  %v6810_v31 = vld [vmem:[#allocation23_spill] sm:$0xff] }
 0x51b   :  { %3861 = vrcp.f32 %v1288_v20  ;;  %v6814_v20 = vld [vmem:[#allocation27_spill] sm:$0xff] }
 0x524   :  { %v3858_v22 = vpop.eup %3857 }
 0x525   :  { %v1292_v23 = vmul.f32 %v3858_v22, %v3854_v27  ;;  %v6809_v27 = vld [vmem:[#allocation22_spill] sm:$0xff]  ;;  %v6811_v22 = vld [vmem:[#allocation24_spill] sm:$0xff] }
 0x526   :  { %v3860_v21 = vpop.eup %3859 }
 0x527   :  { %v1291_v30 = vmul.f32 %v3860_v21, %v5076_v28  ;;  %v6802_v28 = vld [vmem:[#allocation34_spill] sm:$0xff] }
 0x528   :  { %v3862_v40 = vpop.eup %3861  ;;  %v6813_v21 = vld [vmem:[#allocation26_spill] sm:$0xff] }
 0x529   :  { %v5226_v4 = vadd.f32 %v1292_v23, %v1291_v30  ;;  %v6812_v23 = vld [vmem:[#allocation25_spill] sm:$0xff]  ;;  %v6815_v30 = vld [vmem:[#allocation28_spill] sm:$0xff] }
 0x52b   :  { %3863 = vtanh.f32 %v5226_v4 }
 0x538   :  { %v3864_v38 = vpop.eup %3863 }
 0x539   :  { %v5229_v6 = vmul.f32 %v3864_v38, %v3862_v40  ;;  %v6816_v40 = vld [vmem:[#allocation29_spill] sm:$0xff]  ;;  %v6817_v38 = vmov 0.0  }
 0x53b   :  { %6800 = vst [vmem:[#allocation31_spill] sm:$0xff] %v5229_v6  ;;  %1362 = vmatmul.mubr.f32.vlgmr.msra.gmra.mxu0 %v5229_v6  ;;  %1433 = vmatmul.mubr.f32.vlgmr.msra.gmra.mxu1 %v5229_v6  ;;  %v6818_v6 = vld [vmem:[#allocation30_spill] sm:$0xff] }
 0x53c   :  { %1469 = vmatpush1.msra.mxu0 %v4953_v15  ;;  %1540 = vmatpush1.msra.mxu1 %v4956_v5 }
 0x53d   :  { %1470 = vmatprep.subr.mxu0 %v4959_v13  ;;  %1541 = vmatprep.subr.mxu1 %v4962_v7 }
 0x53e   :  { %1471 = vmatpush1.msra.mxu0 %v4965_v35  ;;  %1542 = vmatpush1.msra.mxu1 %v4968_v18 }
 0x53f   :  { %1472 = vmatprep.subr.mxu0 %v4971_v12  ;;  %1543 = vmatprep.subr.mxu1 %v4974_v11 }
 0x540   :  { %1473 = vmatpush1.msra.mxu0 %v4977_v0  ;;  %1544 = vmatpush1.msra.mxu1 %v4980_v19 }
 0x541   :  { %1474 = vmatprep.subr.mxu0 %v4983_v44  ;;  %1545 = vmatprep.subr.mxu1 %v4986_v62 }
 0x542   :  { %1475 = vmatpush1.msra.mxu0 %v4989_v3  ;;  %1546 = vmatpush1.msra.mxu1 %v4992_v10 }
 0x543   :  { %1476 = vmatprep.subr.mxu0 %v4995_v9  ;;  %1547 = vmatprep.subr.mxu1 %v4998_v53 }
 0x544   :  { %1477 = vmatpush1.msra.mxu0 %v5001_v14  ;;  %1548 = vmatpush1.msra.mxu1 %v5004_v42 }
 0x545   :  { %1478 = vmatprep.subr.mxu0 %v6777_v32  ;;  %1549 = vmatprep.subr.mxu1 %v6778_v33 }
 0x546   :  { %1479 = vmatpush1.msra.mxu0 %v5013_v47  ;;  %1550 = vmatpush1.msra.mxu1 %v5016_v48 }
 0x547   :  { %1480 = vmatprep.subr.mxu0 %v5019_v17  ;;  %1551 = vmatprep.subr.mxu1 %v5022_v26 }
 0x548   :  { %1481 = vmatpush1.msra.mxu0 %v5025_v43  ;;  %1552 = vmatpush1.msra.mxu1 %v5028_v45 }
 0x549   :  { %1482 = vmatprep.subr.mxu0 %v5109_v34  ;;  %1553 = vmatprep.subr.mxu1 %v5112_v36 }
 0x54a   :  { %1483 = vmatpush1.msra.mxu0 %v5115_v37  ;;  %1554 = vmatpush1.msra.mxu1 %v5118_v39 }
 0x54b   :  { %1484 = vmatprep.subr.mxu0 %v5121_v46  ;;  %1555 = vmatprep.subr.mxu1 %v5124_v49 }
 0x54c   :  { %1485 = vmatpush1.msra.mxu0 %v5127_v50  ;;  %1556 = vmatpush1.msra.mxu1 %v5130_v51 }
 0x54d   :  { %1486 = vmatprep.subr.mxu0 %v5133_v52  ;;  %1557 = vmatprep.subr.mxu1 %v5136_v54 }
 0x54e   :  { %1487 = vmatpush1.msra.mxu0 %v5139_v55  ;;  %1558 = vmatpush1.msra.mxu1 %v5142_v56 }
 0x54f   :  { %1488 = vmatprep.subr.mxu0 %v5145_v57  ;;  %1559 = vmatprep.subr.mxu1 %v5148_v58 }
 0x550   :  { %1489 = vmatpush1.msra.mxu0 %v5151_v59  ;;  %1560 = vmatpush1.msra.mxu1 %v5154_v60 }
 0x551   :  { %1490 = vmatprep.subr.mxu0 %v5157_v61  ;;  %1561 = vmatprep.subr.mxu1 %v5160_v63 }
 0x552   :  { %1491 = vmatpush1.msra.mxu0 %v5163_v1  ;;  %1562 = vmatpush1.msra.mxu1 %v6801_v41 }
 0x553   :  { %1492 = vmatprep.subr.mxu0 %v6802_v28  ;;  %1563 = vmatprep.subr.mxu1 %v6803_v2  ;;  %v6824_v2 = vld [vmem:[#allocation50_spill] sm:$0xff] }
 0x554   :  { %1493 = vmatpush1.msra.mxu0 %v6804_v8  ;;  %1564 = vmatpush1.msra.mxu1 %v6805_v16  ;;  %v6823_v8 = vld [vmem:[#allocation52_spill] sm:$0xff] }
 0x555   :  { %1494 = vmatprep.subr.mxu0 %v6806_v24  ;;  %1565 = vmatprep.subr.mxu1 %v6807_v25 }
 0x556   :  { %1495 = vmatpush1.msra.mxu0 %v6808_v29  ;;  %1566 = vmatpush1.msra.mxu1 %v6809_v27  ;;  %v6819_v27 = vld [vmem:[#allocation13_spill] sm:$0xff] }
 0x557   :  { %1496 = vmatprep.subr.mxu0 %v6810_v31  ;;  %1567 = vmatprep.subr.mxu1 %v6811_v22  ;;  %v6820_v31 = vld [vmem:[#allocation14_spill] sm:$0xff] }
 0x558   :  { %1497 = vmatpush1.msra.mxu0 %v6812_v23  ;;  %1568 = vmatpush1.msra.mxu1 %v6813_v21  ;;  %v6821_v23 = vld [vmem:[#allocation49_spill] sm:$0xff] }
 0x559   :  { %1498 = vmatprep.subr.mxu0 %v6814_v20  ;;  %1569 = vmatprep.subr.mxu1 %v6815_v30  ;;  %v6822_v20 = vld [vmem:[#allocation51_spill] sm:$0xff] }
 0x55a   :  { %1499 = vmatpush1.msra.mxu0 %v6816_v40  ;;  %1532 = vmatprep.mubr.f32.mxu0 %v6817_v38 }
 0x55b   :  { %1570 = vmatpush1.msra.mxu1 %v6818_v6  ;;  %1603 = vmatprep.mubr.f32.mxu1 %v6817_v38 }
 0x55c   :  { %1639 = vmatprep.subr.mxu0 %v6819_v27  ;;  %1710 = vmatprep.subr.mxu1 %v6820_v31 }
 0x5fb   :  { %v1363_v22 = vpop.f32.mrf.mxu0  ;;  %v1434_v30 = vpop.f32.mrf.mxu1 }
 0x5fc   :  { %v1439_v29 = vadd.f32 %v1363_v22, %v6821_v23  ;;  %v1441_v38 = vadd.f32 %v1434_v30, %v6824_v2 }
 0x5fd   :  { %v1365_v21 = vpop.f32.mrf.mxu0  ;;  %v1436_v16 = vpop.f32.mrf.mxu1 }
 0x5fe   :  { %v3690_v25 = vmul.f32 -1.442695, %v1439_v29  ;;  %v1440_v24 = vadd.f32 %v1365_v21, %v6822_v20  ;;  %v1442_v6 = vadd.f32 %v1436_v16, %v6823_v8 }
 0x600   :  { %3865 = vpow2.f32 %v3690_v25  ;;  %v3691_v40 = vmul.f32 -1.442695, %v1440_v24  ;;  %v3692_v28 = vmul.f32 -1.442695, %v1442_v6 }
 0x602   :  { %3867 = vpow2.f32 %v3691_v40 }
 0x603   :  { %3869 = vtanh.f32 %v1441_v38 }
 0x604   :  { %3871 = vpow2.f32 %v3692_v28 }
 0x60d   :  { %v3866_v27 = vpop.eup %3865 }
 0x60e   :  { %v1446_v41 = vadd.f32 1.0, %v3866_v27  ;;  %v1878_v27 = vld [vmem:[#allocation5 + $0x1e0] sm:$0xff] }
 0x60f   :  { %v3868_v31 = vpop.eup %3867 }
 0x610   :  { %3873 = vrcp.f32 %v1446_v41  ;;  %v1452_v22 = vadd.f32 1.0, %v3868_v31  ;;  %v3870_v29 = vpop.eup %3869  ;;  %v1880_v31 = vld [vmem:[#allocation5 + $0x1f0] sm:$0xff] }
 0x611   :  { %v3872_v23 = vpop.eup %3871 }
 0x612   :  { %3875 = vrcp.f32 %v1452_v22  ;;  %v1459_v20 = vadd.f32 1.0, %v3872_v23  ;;  %v1875_v22 = vld [vmem:[#allocation5 + $0x1c8] sm:$0xff]  ;;  %v1874_v23 = vld [vmem:[#allocation5 + $0x1c0] sm:$0xff] }
 0x614   :  { %3877 = vrcp.f32 %v1459_v20  ;;  %v1870_v20 = vld [vmem:[#allocation5 + $0x1a0] sm:$0xff] }
 0x61d   :  { %v3874_v25 = vpop.eup %3873 }
 0x61e   :  { %v1463_v21 = vmul.f32 %v3874_v25, %v3870_v29  ;;  %v1877_v29 = vld [vmem:[#allocation5 + $0x1d8] sm:$0xff]  ;;  %v1876_v25 = vld [vmem:[#allocation5 + $0x1d0] sm:$0xff] }
 0x61f   :  { %v3876_v24 = vpop.eup %3875 }
 0x620   :  { %v1462_v40 = vmul.f32 %v3876_v24, %v5226_v4  ;;  %v1873_v24 = vld [vmem:[#allocation5 + $0x1b8] sm:$0xff] }
 0x621   :  { %v3878_v6 = vpop.eup %3877 }
 0x622   :  { %v5304_v8 = vadd.f32 %v1463_v21, %v1462_v40  ;;  %v1871_v21 = vld [vmem:[#allocation5 + $0x1a8] sm:$0xff]  ;;  %v1872_v40 = vld [vmem:[#allocation5 + $0x1b0] sm:$0xff] }
 0x624   :  { %3879 = vtanh.f32 %v5304_v8 }
 0x631   :  { %v3880_v2 = vpop.eup %3879 }
 0x632   :  { %v5307_v16 = vmul.f32 %v3880_v2, %v3878_v6  ;;  %v1869_v6 = vld [vmem:[#allocation5 + $0x198] sm:$0xff]  ;;  %v1866_v2 = vld [vmem:[#allocation5 + $0x180] sm:$0xff] }
 0x634   :  { %1533 = vmatmul.mubr.f32.vlgmr.msra.gmra.mxu0 %v5307_v16  ;;  %1604 = vmatmul.mubr.f32.vlgmr.msra.gmra.mxu1 %v5307_v16 }
 0x635   :  { %1640 = vmatpush1.msra.mxu0 %v4953_v15  ;;  %1711 = vmatpush1.msra.mxu1 %v4956_v5  ;;  %v6827_v15 = vld [vmem:[#allocation16_spill] sm:$0xff]  ;;  %v6828_v5 = vld [vmem:[#allocation17_spill] sm:$0xff] }
 0x636   :  { %1641 = vmatprep.subr.mxu0 %v4959_v13  ;;  %1712 = vmatprep.subr.mxu1 %v4962_v7  ;;  %v6829_v13 = vld [vmem:[#allocation18_spill] sm:$0xff]  ;;  %v6830_v7 = vld [vmem:[#allocation19_spill] sm:$0xff] }
 0x637   :  { %1642 = vmatpush1.msra.mxu0 %v4965_v35  ;;  %1713 = vmatpush1.msra.mxu1 %v4968_v18  ;;  %v6831_v35 = vld [vmem:[#allocation20_spill] sm:$0xff]  ;;  %v6832_v18 = vld [vmem:[#allocation21_spill] sm:$0xff] }
 0x638   :  { %1643 = vmatprep.subr.mxu0 %v4971_v12  ;;  %1714 = vmatprep.subr.mxu1 %v4974_v11  ;;  %v6833_v12 = vld [vmem:[#allocation22_spill] sm:$0xff]  ;;  %v6834_v11 = vld [vmem:[#allocation23_spill] sm:$0xff] }
 0x639   :  { %1644 = vmatpush1.msra.mxu0 %v4977_v0  ;;  %1715 = vmatpush1.msra.mxu1 %v4980_v19  ;;  %v6835_v0 = vld [vmem:[#allocation24_spill] sm:$0xff]  ;;  %v6836_v19 = vld [vmem:[#allocation25_spill] sm:$0xff] }
 0x63a   :  { %1645 = vmatprep.subr.mxu0 %v4983_v44  ;;  %1716 = vmatprep.subr.mxu1 %v4986_v62  ;;  %v6837_v44 = vld [vmem:[#allocation26_spill] sm:$0xff]  ;;  %v6838_v62 = vld [vmem:[#allocation27_spill] sm:$0xff] }
 0x63b   :  { %1646 = vmatpush1.msra.mxu0 %v4989_v3  ;;  %1717 = vmatpush1.msra.mxu1 %v4992_v10  ;;  %v6839_v3 = vld [vmem:[#allocation28_spill] sm:$0xff]  ;;  %v6840_v10 = vld [vmem:[#allocation29_spill] sm:$0xff] }
 0x63c   :  { %1647 = vmatprep.subr.mxu0 %v4995_v9  ;;  %1718 = vmatprep.subr.mxu1 %v4998_v53  ;;  %v6841_v9 = vld [vmem:[#allocation30_spill] sm:$0xff]  ;;  %v6842_v53 = vmov 0.0  }
 0x63d   :  { %1648 = vmatpush1.msra.mxu0 %v5001_v14  ;;  %1719 = vmatpush1.msra.mxu1 %v5004_v42  ;;  %v1879_v14 = vld [vmem:[#allocation5 + $0x1e8] sm:$0xff]  ;;  %v1881_v42 = vld [vmem:[#allocation5 + $0x1f8] sm:$0xff] }
 0x63e   :  { %1649 = vmatprep.subr.mxu0 %v6777_v32  ;;  %1720 = vmatprep.subr.mxu1 %v6778_v33  ;;  %v6844_v33 = vld [vmem:[#allocation55_spill] sm:$0xff] }
 0x63f   :  { %1650 = vmatpush1.msra.mxu0 %v5013_v47  ;;  %1721 = vmatpush1.msra.mxu1 %v5016_v48 }
 0x640   :  { %1651 = vmatprep.subr.mxu0 %v5019_v17  ;;  %1722 = vmatprep.subr.mxu1 %v5022_v26  ;;  %v6825_v26 = vld [vmem:[#allocation36_spill] sm:$0xff]  ;;  %v6826_v17 = vld [vmem:[#allocation34_spill] sm:$0xff] }
 0x641   :  { %1652 = vmatpush1.msra.mxu0 %v5025_v43  ;;  %1723 = vmatpush1.msra.mxu1 %v5028_v45  ;;  %v6843_v45 = vld [vmem:[#allocation53_spill] sm:$0xff] }
 0x642   :  { %1653 = vmatprep.subr.mxu0 %v5109_v34  ;;  %1724 = vmatprep.subr.mxu1 %v5112_v36 }
 0x643   :  { %1654 = vmatpush1.msra.mxu0 %v5115_v37  ;;  %1725 = vmatpush1.msra.mxu1 %v5118_v39 }
 0x644   :  { %1655 = vmatprep.subr.mxu0 %v5121_v46  ;;  %1726 = vmatprep.subr.mxu1 %v5124_v49  ;;  %v6845_v46 = vld [vmem:[#allocation56_spill] sm:$0xff] }
 0x645   :  { %1656 = vmatpush1.msra.mxu0 %v5127_v50  ;;  %1727 = vmatpush1.msra.mxu1 %v5130_v51  ;;  %v6846_v50 = vld [vmem:[#allocation54_spill] sm:$0xff] }
 0x646   :  { %1657 = vmatprep.subr.mxu0 %v5133_v52  ;;  %1728 = vmatprep.subr.mxu1 %v5136_v54 }
 0x647   :  { %1658 = vmatpush1.msra.mxu0 %v5139_v55  ;;  %1729 = vmatpush1.msra.mxu1 %v5142_v56 }
 0x648   :  { %1659 = vmatprep.subr.mxu0 %v5145_v57  ;;  %1730 = vmatprep.subr.mxu1 %v5148_v58 }
 0x649   :  { %1660 = vmatpush1.msra.mxu0 %v5151_v59  ;;  %1731 = vmatpush1.msra.mxu1 %v5154_v60 }
 0x64a   :  { %1661 = vmatprep.subr.mxu0 %v5157_v61  ;;  %1732 = vmatprep.subr.mxu1 %v5160_v63 }
 0x64b   :  { %1662 = vmatpush1.msra.mxu0 %v5163_v1  ;;  %1733 = vmatpush1.msra.mxu1 %v6825_v26  ;;  %v1868_v26 = vld [vmem:[#allocation5 + $0x190] sm:$0xff] }
 0x64c   :  { %1663 = vmatprep.subr.mxu0 %v6826_v17  ;;  %1734 = vmatprep.subr.mxu1 %v6827_v15  ;;  %v1863_v17 = vld [vmem:[#allocation5 + $0x168] sm:$0xff]  ;;  %v1865_v15 = vld [vmem:[#allocation5 + $0x178] sm:$0xff] }
 0x64d   :  { %1664 = vmatpush1.msra.mxu0 %v6828_v5  ;;  %1735 = vmatpush1.msra.mxu1 %v6829_v13  ;;  %v1862_v5 = vld [vmem:[#allocation5 + $0x160] sm:$0xff]  ;;  %v1864_v13 = vld [vmem:[#allocation5 + $0x170] sm:$0xff] }
 0x64e   :  { %1665 = vmatprep.subr.mxu0 %v6830_v7  ;;  %1736 = vmatprep.subr.mxu1 %v6831_v35  ;;  %v1859_v7 = vld [vmem:[#allocation5 + $0x148] sm:$0xff]  ;;  %v1861_v35 = vld [vmem:[#allocation5 + $0x158] sm:$0xff] }
 0x64f   :  { %1666 = vmatpush1.msra.mxu0 %v6832_v18  ;;  %1737 = vmatpush1.msra.mxu1 %v6833_v12  ;;  %v1858_v18 = vld [vmem:[#allocation5 + $0x140] sm:$0xff]  ;;  %v1860_v12 = vld [vmem:[#allocation5 + $0x150] sm:$0xff] }
 0x650   :  { %1667 = vmatprep.subr.mxu0 %v6834_v11  ;;  %1738 = vmatprep.subr.mxu1 %v6835_v0  ;;  %v1855_v11 = vld [vmem:[#allocation5 + $0x128] sm:$0xff]  ;;  %v1857_v0 = vld [vmem:[#allocation5 + $0x138] sm:$0xff] }
 0x651   :  { %1668 = vmatpush1.msra.mxu0 %v6836_v19  ;;  %1739 = vmatpush1.msra.mxu1 %v6837_v44  ;;  %v1854_v19 = vld [vmem:[#allocation5 + $0x120] sm:$0xff]  ;;  %v1856_v44 = vld [vmem:[#allocation5 + $0x130] sm:$0xff] }
 0x652   :  { %1669 = vmatprep.subr.mxu0 %v6838_v62  ;;  %1740 = vmatprep.subr.mxu1 %v6839_v3  ;;  %v1851_v62 = vld [vmem:[#allocation5 + $0x108] sm:$0xff]  ;;  %v1853_v3 = vld [vmem:[#allocation5 + $0x118] sm:$0xff] }
 0x653   :  { %1670 = vmatpush1.msra.mxu0 %v6840_v10  ;;  %1741 = vmatpush1.msra.mxu1 %v6841_v9  ;;  %v1850_v10 = vld [vmem:[#allocation5 + $0x100] sm:$0xff]  ;;  %v1852_v9 = vld [vmem:[#allocation5 + $0x110] sm:$0xff] }
 0x654   :  { %1703 = vmatprep.mubr.f32.mxu0 %v6842_v53  ;;  %1774 = vmatprep.mubr.f32.mxu1 %v6842_v53 }
 0x655   :  { %1904 = vmatprep.subr.mxu0 %v1879_v14  ;;  %2017 = vmatprep.subr.mxu1 %v1881_v42  ;;  %v1847_v14 = vld [vmem:[#allocation5 + $0xe8] sm:$0xff]  ;;  %v1849_v42 = vld [vmem:[#allocation5 + $0xf8] sm:$0xff] }
 0x6f4   :  { %v1534_v43 = vpop.f32.mrf.mxu0  ;;  %v1605_v36 = vpop.f32.mrf.mxu1 }
 0x6f5   :  { %v1610_v47 = vadd.f32 %v1534_v43, %v6843_v45  ;;  %v1612_v51 = vadd.f32 %v1605_v36, %v6846_v50  ;;  %v1846_v43 = vld [vmem:[#allocation5 + $0xe0] sm:$0xff]  ;;  %v1848_v45 = vld [vmem:[#allocation5 + $0xf0] sm:$0xff]  ;;  %v1841_v36 = vld [vmem:[#allocation5 + $0xb8] sm:$0xff] }
 0x6f6   :  { %v1536_v48 = vpop.f32.mrf.mxu0  ;;  %v1607_v39 = vpop.f32.mrf.mxu1  ;;  %v1834_v50 = vld [vmem:[#allocation5 + $0x80] sm:$0xff] }
 0x6f7   :  { %v3693_v32 = vmul.f32 -1.442695, %v1610_v47  ;;  %v1611_v34 = vadd.f32 %v1536_v48, %v6844_v33  ;;  %v1613_v49 = vadd.f32 %v1607_v39, %v6845_v46  ;;  %v1843_v47 = vld [vmem:[#allocation5 + $0xc8] sm:$0xff]  ;;  %v1845_v48 = vld [vmem:[#allocation5 + $0xd8] sm:$0xff]  ;;  %v1844_v33 = vld [vmem:[#allocation5 + $0xd0] sm:$0xff] }
 0x6f8   :  { %v1840_v39 = vld [vmem:[#allocation5 + $0xb0] sm:$0xff]  ;;  %v1835_v46 = vld [vmem:[#allocation5 + $0x88] sm:$0xff] }
 0x6f9   :  { %3881 = vpow2.f32 %v3693_v32  ;;  %v3694_v37 = vmul.f32 -1.442695, %v1611_v34  ;;  %v3695_v52 = vmul.f32 -1.442695, %v1613_v49  ;;  %v1842_v32 = vld [vmem:[#allocation5 + $0xc0] sm:$0xff]  ;;  %v1839_v34 = vld [vmem:[#allocation5 + $0xa8] sm:$0xff] }
 0x6fa   :  { %v1837_v49 = vld [vmem:[#allocation5 + $0x98] sm:$0xff] }
 0x6fb   :  { %3883 = vpow2.f32 %v3694_v37  ;;  %v1838_v37 = vld [vmem:[#allocation5 + $0xa0] sm:$0xff] }
 0x6fc   :  { %3885 = vtanh.f32 %v1612_v51  ;;  %v1836_v51 = vld [vmem:[#allocation5 + $0x90] sm:$0xff] }
 0x6fd   :  { %3887 = vpow2.f32 %v3695_v52  ;;  %v1831_v52 = vld [vmem:[#allocation5 + $0x68] sm:$0xff] }
 0x706   :  { %v3882_v54 = vpop.eup %3881 }
 0x707   :  { %v1617_v55 = vadd.f32 1.0, %v3882_v54  ;;  %v1833_v54 = vld [vmem:[#allocation5 + $0x78] sm:$0xff] }
 0x708   :  { %v3884_v56 = vpop.eup %3883 }
 0x709   :  { %3889 = vrcp.f32 %v1617_v55  ;;  %v1623_v57 = vadd.f32 1.0, %v3884_v56  ;;  %v3886_v58 = vpop.eup %3885  ;;  %v1830_v55 = vld [vmem:[#allocation5 + $0x60] sm:$0xff]  ;;  %v1832_v56 = vld [vmem:[#allocation5 + $0x70] sm:$0xff] }
 0x70a   :  { %v3888_v59 = vpop.eup %3887 }
 0x70b   :  { %3891 = vrcp.f32 %v1623_v57  ;;  %v1630_v1 = vadd.f32 1.0, %v3888_v59  ;;  %v1827_v57 = vld [vmem:[#allocation5 + $0x48] sm:$0xff]  ;;  %v1826_v59 = vld [vmem:[#allocation5 + $0x40] sm:$0xff] }
 0x70d   :  { %3893 = vrcp.f32 %v1630_v1  ;;  %v1822_v1 = vld [vmem:[#allocation5 + $0x20] sm:$0xff] }
 0x716   :  { %v3890_v60 = vpop.eup %3889 }
 0x717   :  { %v1634_v61 = vmul.f32 %v3890_v60, %v3886_v58  ;;  %v1829_v58 = vld [vmem:[#allocation5 + $0x58] sm:$0xff]  ;;  %v1828_v60 = vld [vmem:[#allocation5 + $0x50] sm:$0xff] }
 0x718   :  { %v3892_v63 = vpop.eup %3891 }
 0x719   :  { %v1633_v4 = vmul.f32 %v3892_v63, %v5304_v8  ;;  %v1867_v8 = vld [vmem:[#allocation5 + $0x188] sm:$0xff]  ;;  %v1825_v63 = vld [vmem:[#allocation5 + $0x38] sm:$0xff] }
 0x71a   :  { %v3894_v28 = vpop.eup %3893 }
 0x71b   :  { %v5380_v41 = vadd.f32 %v1634_v61, %v1633_v4  ;;  %v1823_v61 = vld [vmem:[#allocation5 + $0x28] sm:$0xff]  ;;  %v1824_v4 = vld [vmem:[#allocation5 + $0x30] sm:$0xff] }
 0x71d   :  { %3895 = vtanh.f32 %v5380_v41 }
 0x72a   :  { %v3896_v30 = vpop.eup %3895 }
 0x72b   :  { %v5383_v38 = vmul.f32 %v3896_v30, %v3894_v28  ;;  %v1819_v28 = vld [vmem:[#allocation5 + $0x8] sm:$0xff]  ;;  %v1821_v30 = vld [vmem:[#allocation5 + $0x18] sm:$0xff] }
 0x72d   :  { %1704 = vmatmul.mubr.f32.vlgmr.msra.gmra.mxu0 %v5383_v38  ;;  %1775 = vmatmul.mubr.f32.vlgmr.msra.gmra.mxu1 %v5383_v38 }
 0x72e   :  { %1905 = vmatpush1.msra.mxu0 %v1878_v27  ;;  %2018 = vmatpush1.msra.mxu1 %v1880_v31  ;;  %v1818_v27 = vld [vmem:[#allocation5] sm:$0xff]  ;;  %v1820_v31 = vld [vmem:[#allocation5 + $0x10] sm:$0xff] }
 0x72f   :  { %1906 = vmatprep.subr.mxu0 %v1875_v22  ;;  %2019 = vmatprep.subr.mxu1 %v1877_v29  ;;  %v6847_v22 = vld [vmem:[#allocation61_spill] sm:$0xff]  ;;  %v6848_v29 = vld [vmem:[#allocation12_spill] sm:$0xff] }
 0x730   :  { %1907 = vmatpush1.msra.mxu0 %v1874_v23  ;;  %2020 = vmatpush1.msra.mxu1 %v1876_v25  ;;  %v6849_v23 = vld [vmem:[#allocation15_spill] sm:$0xff] }
 0x731   :  { %1908 = vmatprep.subr.mxu0 %v1871_v21  ;;  %2021 = vmatprep.subr.mxu1 %v1873_v24  ;;  %v6850_v25 = vld [vmem:[#allocation35_spill] sm:$0xff] }
 0x732   :  { %1909 = vmatpush1.msra.mxu0 %v1870_v20  ;;  %2022 = vmatpush1.msra.mxu1 %v1872_v40  ;;  %v6851_v21 = vld [vmem:[#allocation31_spill] sm:$0xff]  ;;  %v5419_v20 = vld [vmem:[#allocation7 + $0x1f8] sm:$0xff]  ;;  %v5425_v40 = vld [vmem:[#allocation7 + $0x1f0] sm:$0xff] }
 0x733   :  { %1910 = vmatprep.subr.mxu0 %v1867_v8  ;;  %2023 = vmatprep.subr.mxu1 %v1869_v6  ;;  %v5417_v24 = vld [vmem:[#allocation7 + $0x1e8] sm:$0xff]  ;;  %6853 = vst [vmem:[#allocation37_spill] sm:$0xff] %v5419_v20  ;;  %v5431_v8 = vld [vmem:[#allocation7 + $0x1d8] sm:$0xff]  ;;  %v5435_v6 = vld [vmem:[#allocation7 + $0x1c0] sm:$0xff] }
 0x734   :  { %1911 = vmatpush1.msra.mxu0 %v1866_v2  ;;  %2024 = vmatpush1.msra.mxu1 %v1868_v26  ;;  %6852 = vst [vmem:[#allocation32_spill] sm:$0xff] %v5417_v24  ;;  %v5437_v2 = vld [vmem:[#allocation7 + $0x1d0] sm:$0xff]  ;;  %v5441_v26 = vld [vmem:[#allocation7 + $0x1a8] sm:$0xff] }
 0x735   :  { %1912 = vmatprep.subr.mxu0 %v1863_v17  ;;  %2025 = vmatprep.subr.mxu1 %v1865_v15  ;;  %v5443_v17 = vld [vmem:[#allocation7 + $0x1b8] sm:$0xff]  ;;  %v5447_v15 = vld [vmem:[#allocation7 + $0x1a0] sm:$0xff] }
 0x736   :  { %1913 = vmatpush1.msra.mxu0 %v1862_v5  ;;  %2026 = vmatpush1.msra.mxu1 %v1864_v13  ;;  %v5449_v5 = vld [vmem:[#allocation7 + $0x1b0] sm:$0xff]  ;;  %v5453_v13 = vld [vmem:[#allocation7 + $0x188] sm:$0xff] }
 0x737   :  { %1914 = vmatprep.subr.mxu0 %v1859_v7  ;;  %2027 = vmatprep.subr.mxu1 %v1861_v35  ;;  %v5455_v7 = vld [vmem:[#allocation7 + $0x198] sm:$0xff]  ;;  %v5459_v35 = vld [vmem:[#allocation7 + $0x180] sm:$0xff] }
 0x738   :  { %1915 = vmatpush1.msra.mxu0 %v1858_v18  ;;  %2028 = vmatpush1.msra.mxu1 %v1860_v12  ;;  %v5461_v18 = vld [vmem:[#allocation7 + $0x190] sm:$0xff]  ;;  %v5465_v12 = vld [vmem:[#allocation7 + $0x168] sm:$0xff] }
 0x739   :  { %1916 = vmatprep.subr.mxu0 %v1855_v11  ;;  %2029 = vmatprep.subr.mxu1 %v1857_v0  ;;  %v5467_v11 = vld [vmem:[#allocation7 + $0x178] sm:$0xff]  ;;  %v5471_v0 = vld [vmem:[#allocation7 + $0x160] sm:$0xff] }
 0x73a   :  { %1917 = vmatpush1.msra.mxu0 %v1854_v19  ;;  %2030 = vmatpush1.msra.mxu1 %v1856_v44  ;;  %v5473_v19 = vld [vmem:[#allocation7 + $0x170] sm:$0xff]  ;;  %v5477_v44 = vld [vmem:[#allocation7 + $0x148] sm:$0xff] }
 0x73b   :  { %1918 = vmatprep.subr.mxu0 %v1851_v62  ;;  %2031 = vmatprep.subr.mxu1 %v1853_v3  ;;  %v5479_v62 = vld [vmem:[#allocation7 + $0x158] sm:$0xff]  ;;  %v5483_v3 = vld [vmem:[#allocation7 + $0x140] sm:$0xff] }
 0x73c   :  { %1919 = vmatpush1.msra.mxu0 %v1850_v10  ;;  %2032 = vmatpush1.msra.mxu1 %v1852_v9  ;;  %v5485_v10 = vld [vmem:[#allocation7 + $0x150] sm:$0xff]  ;;  %v5489_v9 = vld [vmem:[#allocation7 + $0x128] sm:$0xff] }
 0x73d   :  { %1920 = vmatprep.subr.mxu0 %v1847_v14  ;;  %2033 = vmatprep.subr.mxu1 %v1849_v42  ;;  %v5491_v14 = vld [vmem:[#allocation7 + $0x138] sm:$0xff]  ;;  %v5495_v42 = vld [vmem:[#allocation7 + $0x120] sm:$0xff] }
 0x73e   :  { %1921 = vmatpush1.msra.mxu0 %v1846_v43  ;;  %2034 = vmatpush1.msra.mxu1 %v1848_v45  ;;  %v5497_v43 = vld [vmem:[#allocation7 + $0x130] sm:$0xff]  ;;  %v5501_v45 = vld [vmem:[#allocation7 + $0x108] sm:$0xff] }
 0x73f   :  { %1922 = vmatprep.subr.mxu0 %v1843_v47  ;;  %2035 = vmatprep.subr.mxu1 %v1845_v48  ;;  %v5503_v47 = vld [vmem:[#allocation7 + $0x118] sm:$0xff]  ;;  %v5507_v48 = vld [vmem:[#allocation7 + $0x100] sm:$0xff] }
 0x740   :  { %1923 = vmatpush1.msra.mxu0 %v1842_v32  ;;  %2036 = vmatpush1.msra.mxu1 %v1844_v33  ;;  %v5509_v32 = vld [vmem:[#allocation7 + $0x110] sm:$0xff]  ;;  %v5513_v33 = vld [vmem:[#allocation7 + $0xe8] sm:$0xff] }
 0x741   :  { %1924 = vmatprep.subr.mxu0 %v1839_v34  ;;  %2037 = vmatprep.subr.mxu1 %v1841_v36  ;;  %v5515_v34 = vld [vmem:[#allocation7 + $0xf8] sm:$0xff]  ;;  %v5519_v36 = vld [vmem:[#allocation7 + $0xe0] sm:$0xff] }
 0x742   :  { %1925 = vmatpush1.msra.mxu0 %v1838_v37  ;;  %2038 = vmatpush1.msra.mxu1 %v1840_v39  ;;  %v5521_v37 = vld [vmem:[#allocation7 + $0xf0] sm:$0xff]  ;;  %v5525_v39 = vld [vmem:[#allocation7 + $0xc8] sm:$0xff] }
 0x743   :  { %1926 = vmatprep.subr.mxu0 %v1835_v46  ;;  %2039 = vmatprep.subr.mxu1 %v1837_v49  ;;  %v5527_v46 = vld [vmem:[#allocation7 + $0xd8] sm:$0xff]  ;;  %v5531_v49 = vld [vmem:[#allocation7 + $0xc0] sm:$0xff] }
 0x744   :  { %1927 = vmatpush1.msra.mxu0 %v1834_v50  ;;  %2040 = vmatpush1.msra.mxu1 %v1836_v51  ;;  %v5533_v50 = vld [vmem:[#allocation7 + $0xd0] sm:$0xff]  ;;  %v5537_v51 = vld [vmem:[#allocation7 + $0xa8] sm:$0xff] }
 0x745   :  { %1928 = vmatprep.subr.mxu0 %v1831_v52  ;;  %2041 = vmatprep.subr.mxu1 %v1833_v54  ;;  %v5539_v52 = vld [vmem:[#allocation7 + $0xb8] sm:$0xff]  ;;  %v5543_v54 = vld [vmem:[#allocation7 + $0xa0] sm:$0xff] }
 0x746   :  { %1929 = vmatpush1.msra.mxu0 %v1830_v55  ;;  %2042 = vmatpush1.msra.mxu1 %v1832_v56  ;;  %v5545_v55 = vld [vmem:[#allocation7 + $0xb0] sm:$0xff]  ;;  %v5549_v56 = vld [vmem:[#allocation7 + $0x88] sm:$0xff] }
 0x747   :  { %1930 = vmatprep.subr.mxu0 %v1827_v57  ;;  %2043 = vmatprep.subr.mxu1 %v1829_v58  ;;  %6854 = vst [vmem:[#allocation39_spill] sm:$0xff] %v5545_v55  ;;  %6855 = vst [vmem:[#allocation40_spill] sm:$0xff] %v5549_v56  ;;  %v5551_v57 = vld [vmem:[#allocation7 + $0x98] sm:$0xff]  ;;  %v5555_v58 = vld [vmem:[#allocation7 + $0x80] sm:$0xff] }
 0x748   :  { %1931 = vmatpush1.msra.mxu0 %v1826_v59  ;;  %2044 = vmatpush1.msra.mxu1 %v1828_v60  ;;  %6856 = vst [vmem:[#allocation38_spill] sm:$0xff] %v5551_v57  ;;  %6857 = vst [vmem:[#allocation41_spill] sm:$0xff] %v5555_v58  ;;  %v5557_v59 = vld [vmem:[#allocation7 + $0x90] sm:$0xff]  ;;  %v5561_v60 = vld [vmem:[#allocation7 + $0x68] sm:$0xff] }
 0x749   :  { %1932 = vmatprep.subr.mxu0 %v1823_v61  ;;  %2045 = vmatprep.subr.mxu1 %v1825_v63  ;;  %6858 = vst [vmem:[#allocation43_spill] sm:$0xff] %v5557_v59  ;;  %6859 = vst [vmem:[#allocation44_spill] sm:$0xff] %v5561_v60  ;;  %v5563_v61 = vld [vmem:[#allocation7 + $0x78] sm:$0xff]  ;;  %v5567_v63 = vld [vmem:[#allocation7 + $0x60] sm:$0xff] }
 0x74a   :  { %1933 = vmatpush1.msra.mxu0 %v1822_v1  ;;  %2046 = vmatpush1.msra.mxu1 %v1824_v4  ;;  %6860 = vst [vmem:[#allocation42_spill] sm:$0xff] %v5563_v61  ;;  %6861 = vst [vmem:[#allocation10_spill] sm:$0xff] %v5567_v63  ;;  %v5569_v1 = vld [vmem:[#allocation7 + $0x70] sm:$0xff]  ;;  %v5573_v4 = vld [vmem:[#allocation7 + $0x48] sm:$0xff] }
 0x74b   :  { %1934 = vmatprep.subr.mxu0 %v1819_v28  ;;  %2047 = vmatprep.subr.mxu1 %v1821_v30  ;;  %6862 = vst [vmem:[#allocation11_spill] sm:$0xff] %v5569_v1  ;;  %6863 = vst [vmem:[#allocation45_spill] sm:$0xff] %v5573_v4  ;;  %v5575_v28 = vld [vmem:[#allocation7 + $0x58] sm:$0xff]  ;;  %v5579_v30 = vld [vmem:[#allocation7 + $0x40] sm:$0xff] }
 0x74c   :  { %1935 = vmatpush1.msra.mxu0 %v1818_v27  ;;  %1968 = vmatprep.mubr.f32.mxu0 %v6842_v53  ;;  %6864 = vst [vmem:[#allocation47_spill] sm:$0xff] %v5575_v28  ;;  %6865 = vst [vmem:[#allocation48_spill] sm:$0xff] %v5579_v30  ;;  %v5581_v27 = vld [vmem:[#allocation7 + $0x50] sm:$0xff] }
 0x74d   :  { %2048 = vmatpush1.msra.mxu1 %v1820_v31  ;;  %2081 = vmatprep.mubr.f32.mxu1 %v6842_v53  ;;  %6866 = vst [vmem:[#allocation46_spill] sm:$0xff] %v5581_v27  ;;  %v5585_v31 = vld [vmem:[#allocation7 + $0x28] sm:$0xff] }
 0x74e   :  { %1969 = vmatmul.mubr.f32.vlgmr.msra.gmra.mxu0 %v6847_v22  ;;  %2082 = vmatmul.mubr.f32.vlgmr.msra.gmra.mxu1 %v6847_v22  ;;  %6867 = vst [vmem:[#allocation13_spill] sm:$0xff] %v5585_v31  ;;  %v5587_v22 = vld [vmem:[#allocation7 + $0x38] sm:$0xff] }
 0x74f   :  { %1974 = vmatprep.mubr.f32.mxu0 %v6842_v53  ;;  %2087 = vmatprep.mubr.f32.mxu1 %v6842_v53  ;;  %6868 = vst [vmem:[#allocation14_spill] sm:$0xff] %v5587_v22 }
 0x750   :  { %2198 = vmatprep.subr.mxu0 %v5417_v24  ;;  %2269 = vmatprep.subr.mxu1 %v5419_v20 }
 0x751   :  { %2270 = vmatpush1.msra.mxu1 %v5425_v40 }
 0x752   :  { %1975 = vmatmul.mubr.f32.gmra.mxu0 %v6848_v29  ;;  %2088 = vmatmul.mubr.f32.gmra.mxu1 %v6848_v29  ;;  %v5591_v29 = vld [vmem:[#allocation7 + $0x20] sm:$0xff] }
 0x753   :  { %1980 = vmatprep.mubr.f32.mxu0 %v6842_v53  ;;  %2093 = vmatprep.mubr.f32.mxu1 %v6842_v53  ;;  %6869 = vst [vmem:[#allocation49_spill] sm:$0xff] %v5591_v29 }
 0x754   :  { %2271 = vmatprep.subr.mxu1 %v5431_v8 }
 0x755   :  { %2272 = vmatpush1.msra.mxu1 %v5437_v2 }
 0x756   :  { %1981 = vmatmul.mubr.f32.gmra.mxu0 %v6849_v23  ;;  %2094 = vmatmul.mubr.f32.gmra.mxu1 %v6849_v23  ;;  %v5593_v23 = vld [vmem:[#allocation7 + $0x30] sm:$0xff] }
 0x757   :  { %1986 = vmatprep.mubr.f32.mxu0 %v6842_v53  ;;  %2099 = vmatprep.mubr.f32.mxu1 %v6842_v53  ;;  %6870 = vst [vmem:[#allocation51_spill] sm:$0xff] %v5593_v23 }
 0x758   :  { %2273 = vmatprep.subr.mxu1 %v5443_v17 }
 0x759   :  { %2274 = vmatpush1.msra.mxu1 %v5449_v5 }
 0x75a   :  { %1987 = vmatmul.mubr.f32.gmra.mxu0 %v6850_v25  ;;  %2100 = vmatmul.mubr.f32.gmra.mxu1 %v6850_v25  ;;  %v5597_v25 = vld [vmem:[#allocation7 + $0x8] sm:$0xff] }
 0x75b   :  { %1992 = vmatprep.mubr.f32.mxu0 %v6842_v53  ;;  %2105 = vmatprep.mubr.f32.mxu1 %v6842_v53  ;;  %6871 = vst [vmem:[#allocation52_spill] sm:$0xff] %v5597_v25 }
 0x75c   :  { %2275 = vmatprep.subr.mxu1 %v5455_v7 }
 0x75d   :  { %2276 = vmatpush1.msra.mxu1 %v5461_v18 }
 0x75e   :  { %1993 = vmatmul.mubr.f32.gmra.mxu0 %v6851_v21  ;;  %2106 = vmatmul.mubr.f32.gmra.mxu1 %v6851_v21  ;;  %v5599_v21 = vld [vmem:[#allocation7 + $0x18] sm:$0xff] }
 0x75f   :  { %1998 = vmatprep.mubr.f32.mxu0 %v6842_v53  ;;  %2111 = vmatprep.mubr.f32.mxu1 %v6842_v53  ;;  %6872 = vst [vmem:[#allocation50_spill] sm:$0xff] %v5599_v21 }
 0x760   :  { %2277 = vmatprep.subr.mxu1 %v5467_v11 }
 0x761   :  { %2278 = vmatpush1.msra.mxu1 %v5473_v19 }
 0x762   :  { %1999 = vmatmul.mubr.f32.gmra.mxu0 %v5307_v16  ;;  %2112 = vmatmul.mubr.f32.gmra.mxu1 %v5307_v16  ;;  %v5423_v16 = vld [vmem:[#allocation7 + $0x1e0] sm:$0xff] }
 0x763   :  { %2004 = vmatprep.mubr.f32.mxu0 %v6842_v53  ;;  %2117 = vmatprep.mubr.f32.mxu1 %v6842_v53 }
 0x764   :  { %2199 = vmatpush1.msra.mxu0 %v5423_v16  ;;  %2279 = vmatprep.subr.mxu1 %v5479_v62 }
 0x765   :  { %2280 = vmatpush1.msra.mxu1 %v5485_v10 }
 0x766   :  { %2005 = vmatmul.mubr.f32.gmra.mxu0 %v5383_v38  ;;  %2118 = vmatmul.mubr.f32.gmra.mxu1 %v5383_v38  ;;  %v5429_v38 = vld [vmem:[#allocation7 + $0x1c8] sm:$0xff] }
 0x767   :  { %2010 = vmatprep.mubr.f32.mxu0 %v6842_v53  ;;  %2123 = vmatprep.mubr.f32.mxu1 %v6842_v53 }
 0x768   :  { %2200 = vmatprep.subr.mxu0 %v5429_v38  ;;  %2281 = vmatprep.subr.mxu1 %v5491_v14 }
 0x769   :  { %2201 = vmatpush1.msra.mxu0 %v5435_v6  ;;  %2282 = vmatpush1.msra.mxu1 %v5497_v43 }
 0x76a   :  { %2202 = vmatprep.subr.mxu0 %v5441_v26  ;;  %2283 = vmatprep.subr.mxu1 %v5503_v47 }
 0x76b   :  { %2203 = vmatpush1.msra.mxu0 %v5447_v15  ;;  %2284 = vmatpush1.msra.mxu1 %v5509_v32 }
 0x76c   :  { %2204 = vmatprep.subr.mxu0 %v5453_v13  ;;  %2285 = vmatprep.subr.mxu1 %v5515_v34 }
 0x76d   :  { %2205 = vmatpush1.msra.mxu0 %v5459_v35  ;;  %2286 = vmatpush1.msra.mxu1 %v5521_v37 }
 0x76e   :  { %2206 = vmatprep.subr.mxu0 %v5465_v12  ;;  %2287 = vmatprep.subr.mxu1 %v5527_v46 }
 0x76f   :  { %2207 = vmatpush1.msra.mxu0 %v5471_v0  ;;  %2288 = vmatpush1.msra.mxu1 %v5533_v50 }
 0x770   :  { %2208 = vmatprep.subr.mxu0 %v5477_v44  ;;  %2289 = vmatprep.subr.mxu1 %v5539_v52 }
 0x771   :  { %2209 = vmatpush1.msra.mxu0 %v5483_v3  ;;  %2290 = vmatpush1.msra.mxu1 %v5545_v55 }
 0x772   :  { %2210 = vmatprep.subr.mxu0 %v5489_v9  ;;  %2291 = vmatprep.subr.mxu1 %v5551_v57 }
 0x773   :  { %2211 = vmatpush1.msra.mxu0 %v5495_v42  ;;  %2292 = vmatpush1.msra.mxu1 %v5557_v59 }
 0x774   :  { %2212 = vmatprep.subr.mxu0 %v5501_v45  ;;  %2293 = vmatprep.subr.mxu1 %v5563_v61  ;;  %v6877_v61 = vld [vmem:[#allocation60_spill] sm:$0xff] }
 0x775   :  { %2213 = vmatpush1.msra.mxu0 %v5507_v48  ;;  %2294 = vmatpush1.msra.mxu1 %v5569_v1 }
 0x776   :  { %2214 = vmatprep.subr.mxu0 %v5513_v33  ;;  %2295 = vmatprep.subr.mxu1 %v5575_v28 }
 0x777   :  { %2215 = vmatpush1.msra.mxu0 %v5519_v36  ;;  %2296 = vmatpush1.msra.mxu1 %v5581_v27  ;;  %v5601_v27 = vld [vmem:[#allocation7] sm:$0xff] }
 0x778   :  { %2216 = vmatprep.subr.mxu0 %v5525_v39  ;;  %2297 = vmatprep.subr.mxu1 %v5587_v22  ;;  %6873 = vst [vmem:[#allocation36_spill] sm:$0xff] %v5601_v27 }
 0x779   :  { %2217 = vmatpush1.msra.mxu0 %v5531_v49  ;;  %2298 = vmatpush1.msra.mxu1 %v5593_v23 }
 0x77a   :  { %2218 = vmatprep.subr.mxu0 %v5537_v51  ;;  %2299 = vmatprep.subr.mxu1 %v5599_v21 }
 0x77b   :  { %2219 = vmatpush1.msra.mxu0 %v5543_v54 }
 0x77c   :  { %2220 = vmatprep.subr.mxu0 %v5549_v56 }
 0x77d   :  { %2221 = vmatpush1.msra.mxu0 %v5555_v58 }
 0x77e   :  { %2222 = vmatprep.subr.mxu0 %v5561_v60  ;;  %v6878_v60 = vld [vmem:[#allocation58_spill] sm:$0xff] }
 0x77f   :  { %2223 = vmatpush1.msra.mxu0 %v5567_v63 }
 0x780   :  { %2224 = vmatprep.subr.mxu0 %v5573_v4  ;;  %v6876_v4 = vld [vmem:[#allocation59_spill] sm:$0xff] }
 0x781   :  { %2225 = vmatpush1.msra.mxu0 %v5579_v30 }
 0x782   :  { %2226 = vmatprep.subr.mxu0 %v5585_v31  ;;  %v5605_v31 = vld [vmem:[#allocation7 + $0x10] sm:$0xff] }
 0x783   :  { %2227 = vmatpush1.msra.mxu0 %v5591_v29  ;;  %6874 = vst [vmem:[#allocation34_spill] sm:$0xff] %v5605_v31  ;;  %2300 = vmatpush1.msra.mxu1 %v5605_v31  ;;  %v6875_v29 = vld [vmem:[#allocation57_spill] sm:$0xff] }
 0x784   :  { %2228 = vmatprep.subr.mxu0 %v5597_v25  ;;  %2439 = vmatprep.subr.mxu1 %v5419_v20 }
 0x785   :  { %2229 = vmatpush1.msra.mxu0 %v5601_v27 }
 0x786   :  { %2368 = vmatprep.subr.mxu0 %v5417_v24 }
 0x7ed   :  { %v1705_v23 = vpop.f32.mrf.mxu0  ;;  %v1776_v25 = vpop.f32.mrf.mxu1 }
 0x7ee   :  { %v1781_v22 = vadd.f32 %v1705_v23, %v6875_v29  ;;  %v1783_v31 = vadd.f32 %v1776_v25, %v6878_v60  ;;  %v6884_v25 = vld [vmem:[#allocation11_spill] sm:$0xff] }
 0x7ef   :  { %v1707_v30 = vpop.f32.mrf.mxu0  ;;  %v1778_v63 = vpop.f32.mrf.mxu1 }
 0x7f0   :  { %v3696_v28 = vmul.f32 -1.442695, %v1781_v22  ;;  %v1782_v1 = vadd.f32 %v1707_v30, %v6876_v4  ;;  %v1784_v27 = vadd.f32 %v1778_v63, %v6877_v61 }
 0x7f2   :  { %3897 = vpow2.f32 %v3696_v28  ;;  %v3697_v21 = vmul.f32 -1.442695, %v1782_v1  ;;  %v3698_v59 = vmul.f32 -1.442695, %v1784_v27  ;;  %v6882_v27 = vld [vmem:[#allocation42_spill] sm:$0xff] }
 0x7f4   :  { %3899 = vpow2.f32 %v3697_v21 }
 0x7f5   :  { %3901 = vtanh.f32 %v1783_v31  ;;  %v6883_v31 = vld [vmem:[#allocation10_spill] sm:$0xff] }
 0x7f6   :  { %3903 = vpow2.f32 %v3698_v59  ;;  %v6881_v59 = vld [vmem:[#allocation44_spill] sm:$0xff] }
 0x7ff   :  { %v3898_v24 = vpop.eup %3897 }
 0x800   :  { %v1788_v58 = vadd.f32 1.0, %v3898_v24 }
 0x801   :  { %v3900_v20 = vpop.eup %3899 }
 0x802   :  { %3905 = vrcp.f32 %v1788_v58  ;;  %v1794_v29 = vadd.f32 1.0, %v3900_v20  ;;  %v3902_v22 = vpop.eup %3901  ;;  %v3699_v20 = vld [vmem:[%s6447_s1 + $0x8] sm:$0xff] }
 0x803   :  { %v3904_v4 = vpop.eup %3903  ;;  %v6880_v58 = vld [vmem:[#allocation43_spill] sm:$0xff] }
 0x804   :  { %3907 = vrcp.f32 %v1794_v29  ;;  %v1801_v23 = vadd.f32 1.0, %v3904_v4  ;;  %v6885_v29 = vld [vmem:[#allocation45_spill] sm:$0xff]  ;;  %v6887_v4 = vld [vmem:[#allocation48_spill] sm:$0xff] }
 0x806   :  { %3909 = vrcp.f32 %v1801_v23  ;;  %v6891_v23 = vld [vmem:[#allocation49_spill] sm:$0xff] }
 0x80f   :  { %v3906_v28 = vpop.eup %3905 }
 0x810   :  { %v1805_v30 = vmul.f32 %v3906_v28, %v3902_v22  ;;  %v6886_v22 = vld [vmem:[#allocation47_spill] sm:$0xff]  ;;  %v6888_v28 = vld [vmem:[#allocation46_spill] sm:$0xff] }
 0x811   :  { %v3908_v1 = vpop.eup %3907 }
 0x812   :  { %v1804_v21 = vmul.f32 %v3908_v1, %v5380_v41  ;;  %v6879_v41 = vld [vmem:[#allocation41_spill] sm:$0xff]  ;;  %v6890_v1 = vld [vmem:[#allocation14_spill] sm:$0xff] }
 0x813   :  { %v3910_v60 = vpop.eup %3909 }
 0x814   :  { %v1806_v61 = vadd.f32 %v1805_v30, %v1804_v21  ;;  %v6889_v30 = vld [vmem:[#allocation13_spill] sm:$0xff]  ;;  %v6892_v21 = vld [vmem:[#allocation51_spill] sm:$0xff] }
 0x816   :  { %3911 = vtanh.f32 %v1806_v61  ;;  %v6893_v61 = vld [vmem:[#allocation52_spill] sm:$0xff] }
 0x823   :  { %v3912_v63 = vpop.eup %3911 }
 0x824   :  { %v1808_v24 = vmul.f32 %v3912_v63, %v3910_v60  ;;  %v6894_v60 = vld [vmem:[#allocation50_spill] sm:$0xff]  ;;  %v6895_v63 = vld [vmem:[#allocation36_spill] sm:$0xff] }
 0x826   :  { %2011 = vmatmul.mubr.f32.gmra.mxu0 %v1808_v24  ;;  %2124 = vmatmul.mubr.f32.gmra.mxu1 %v1808_v24  ;;  %v6896_v24 = vld [vmem:[#allocation34_spill] sm:$0xff] }
 0x827   :  { %2262 = vmatprep.mubr.f32.mxu0 %v6842_v53  ;;  %2333 = vmatprep.mubr.f32.mxu1 %v6842_v53 }
 0x82a   :  { %2263 = vmatmul.mubr.f32.vlgmr.msra.gmra.mxu0 %v3699_v20  ;;  %2334 = vmatmul.mubr.f32.vlgmr.msra.gmra.mxu1 %v3699_v20  ;;  %v6897_v20 = vld [vmem:[#allocation32_spill] sm:$0xff] }
 0x82b   :  { %2369 = vmatpush1.msra.mxu0 %v5423_v16  ;;  %2440 = vmatpush1.msra.mxu1 %v5425_v40 }
 0x82c   :  { %2370 = vmatprep.subr.mxu0 %v5429_v38  ;;  %2441 = vmatprep.subr.mxu1 %v5431_v8 }
 0x82d   :  { %2371 = vmatpush1.msra.mxu0 %v5435_v6  ;;  %2442 = vmatpush1.msra.mxu1 %v5437_v2 }
 0x82e   :  { %2372 = vmatprep.subr.mxu0 %v5441_v26  ;;  %2443 = vmatprep.subr.mxu1 %v5443_v17 }
 0x82f   :  { %2373 = vmatpush1.msra.mxu0 %v5447_v15  ;;  %2444 = vmatpush1.msra.mxu1 %v5449_v5 }
 0x830   :  { %2374 = vmatprep.subr.mxu0 %v5453_v13  ;;  %2445 = vmatprep.subr.mxu1 %v5455_v7 }
 0x831   :  { %2375 = vmatpush1.msra.mxu0 %v5459_v35  ;;  %2446 = vmatpush1.msra.mxu1 %v5461_v18 }
 0x832   :  { %2376 = vmatprep.subr.mxu0 %v5465_v12  ;;  %2447 = vmatprep.subr.mxu1 %v5467_v11 }
 0x833   :  { %2377 = vmatpush1.msra.mxu0 %v5471_v0  ;;  %2448 = vmatpush1.msra.mxu1 %v5473_v19 }
 0x834   :  { %2378 = vmatprep.subr.mxu0 %v5477_v44  ;;  %2449 = vmatprep.subr.mxu1 %v5479_v62 }
 0x835   :  { %2379 = vmatpush1.msra.mxu0 %v5483_v3  ;;  %2450 = vmatpush1.msra.mxu1 %v5485_v10 }
 0x836   :  { %2380 = vmatprep.subr.mxu0 %v5489_v9  ;;  %2451 = vmatprep.subr.mxu1 %v5491_v14 }
 0x837   :  { %2381 = vmatpush1.msra.mxu0 %v5495_v42  ;;  %2452 = vmatpush1.msra.mxu1 %v5497_v43 }
 0x838   :  { %2382 = vmatprep.subr.mxu0 %v5501_v45  ;;  %2453 = vmatprep.subr.mxu1 %v5503_v47 }
 0x839   :  { %2383 = vmatpush1.msra.mxu0 %v5507_v48  ;;  %2454 = vmatpush1.msra.mxu1 %v5509_v32 }
 0x83a   :  { %2384 = vmatprep.subr.mxu0 %v5513_v33  ;;  %2455 = vmatprep.subr.mxu1 %v5515_v34 }
 0x83b   :  { %2385 = vmatpush1.msra.mxu0 %v5519_v36  ;;  %2456 = vmatpush1.msra.mxu1 %v5521_v37 }
 0x83c   :  { %2386 = vmatprep.subr.mxu0 %v5525_v39  ;;  %2457 = vmatprep.subr.mxu1 %v5527_v46 }
 0x83d   :  { %2387 = vmatpush1.msra.mxu0 %v5531_v49  ;;  %2458 = vmatpush1.msra.mxu1 %v5533_v50 }
 0x83e   :  { %2388 = vmatprep.subr.mxu0 %v5537_v51  ;;  %2459 = vmatprep.subr.mxu1 %v5539_v52 }
 0x83f   :  { %2389 = vmatpush1.msra.mxu0 %v5543_v54  ;;  %2460 = vmatpush1.msra.mxu1 %v5545_v55 }
 0x840   :  { %2390 = vmatprep.subr.mxu0 %v5549_v56  ;;  %2461 = vmatprep.subr.mxu1 %v5551_v57 }
 0x841   :  { %2391 = vmatpush1.msra.mxu0 %v6879_v41  ;;  %2462 = vmatpush1.msra.mxu1 %v6880_v58 }
 0x842   :  { %2392 = vmatprep.subr.mxu0 %v6881_v59  ;;  %2463 = vmatprep.subr.mxu1 %v6882_v27 }
 0x843   :  { %2393 = vmatpush1.msra.mxu0 %v6883_v31  ;;  %2464 = vmatpush1.msra.mxu1 %v6884_v25 }
 0x844   :  { %2394 = vmatprep.subr.mxu0 %v6885_v29  ;;  %2465 = vmatprep.subr.mxu1 %v6886_v22 }
 0x845   :  { %2395 = vmatpush1.msra.mxu0 %v6887_v4  ;;  %2466 = vmatpush1.msra.mxu1 %v6888_v28 }
 0x846   :  { %2396 = vmatprep.subr.mxu0 %v6889_v30  ;;  %2467 = vmatprep.subr.mxu1 %v6890_v1  ;;  %v6898_v30 = vld [vmem:[#allocation37_spill] sm:$0xff]  ;;  %v1970_v1 = vpop.f32.mrf.mxu0 }
 0x847   :  { %2397 = vmatpush1.msra.mxu0 %v6891_v23  ;;  %2468 = vmatpush1.msra.mxu1 %v6892_v21  ;;  %v2083_v23 = vpop.f32.mrf.mxu1 }
 0x848   :  { %2398 = vmatprep.subr.mxu0 %v6893_v61  ;;  %2469 = vmatprep.subr.mxu1 %v6894_v60  ;;  %v1972_v28 = vpop.f32.mrf.mxu0 }
 0x849   :  { %2399 = vmatpush1.msra.mxu0 %v6895_v63  ;;  %2432 = vmatprep.mubr.f32.mxu0 %v6842_v53  ;;  %v2085_v21 = vpop.f32.mrf.mxu1 }
 0x84a   :  { %2470 = vmatpush1.msra.mxu1 %v6896_v24  ;;  %2503 = vmatprep.mubr.f32.mxu1 %v6842_v53  ;;  %v5687_v4 = vpop.f32.mrf.mxu0 }
 0x84b   :  { %2538 = vmatprep.subr.mxu0 %v6897_v20  ;;  %2609 = vmatprep.subr.mxu1 %v6898_v30  ;;  %6899 = vst [vmem:[#allocation16_spill] sm:$0xff] %v5687_v4  ;;  %v5689_v61 = vpop.f32.mrf.mxu1 }
 0x84c   :  { %6900 = vst [vmem:[#allocation17_spill] sm:$0xff] %v5689_v61  ;;  %v5691_v60 = vpop.f32.mrf.mxu0 }
 0x84d   :  { %6901 = vst [vmem:[#allocation18_spill] sm:$0xff] %v5691_v60  ;;  %v5693_v63 = vpop.f32.mrf.mxu1 }
 0x84e   :  { %6902 = vst [vmem:[#allocation19_spill] sm:$0xff] %v5693_v63  ;;  %v5695_v22 = vpop.f32.mrf.mxu0 }
 0x84f   :  { %6903 = vst [vmem:[#allocation20_spill] sm:$0xff] %v5695_v22  ;;  %v5697_v24 = vpop.f32.mrf.mxu1 }
 0x850   :  { %6904 = vst [vmem:[#allocation21_spill] sm:$0xff] %v5697_v24  ;;  %v5699_v53 = vpop.f32.mrf.mxu0 }
 0x851   :  { %6905 = vst [vmem:[#allocation22_spill] sm:$0xff] %v5699_v53  ;;  %v5701_v20 = vpop.f32.mrf.mxu1 }
 0x852   :  { %6906 = vst [vmem:[#allocation23_spill] sm:$0xff] %v5701_v20  ;;  %v5703_v30 = vpop.f32.mrf.mxu0 }
 0x853   :  { %6907 = vst [vmem:[#allocation24_spill] sm:$0xff] %v5703_v30  ;;  %v5705_v29 = vpop.f32.mrf.mxu1 }
 0x854   :  { %6908 = vst [vmem:[#allocation25_spill] sm:$0xff] %v5705_v29  ;;  %v5707_v25 = vpop.f32.mrf.mxu0 }
 0x855   :  { %6909 = vst [vmem:[#allocation26_spill] sm:$0xff] %v5707_v25  ;;  %v5709_v4 = vpop.f32.mrf.mxu1 }
 0x856   :  { %6910 = vst [vmem:[#allocation27_spill] sm:$0xff] %v5709_v4  ;;  %v5711_v61 = vpop.f32.mrf.mxu0 }
 0x857   :  { %6911 = vst [vmem:[#allocation28_spill] sm:$0xff] %v5711_v61  ;;  %v5713_v60 = vpop.f32.mrf.mxu1 }
 0x858   :  { %6912 = vst [vmem:[#allocation29_spill] sm:$0xff] %v5713_v60  ;;  %v5715_v63 = vpop.f32.mrf.mxu0  ;;  %v1882_v60 = vld [vmem:[%s6454_s8] sm:$0xf] }
 0x859   :  { %6913 = vst [vmem:[#allocation30_spill] sm:$0xff] %v5715_v63  ;;  %v5717_v22 = vpop.f32.mrf.mxu1  ;;  %v6922_v63 = vld [vmem:[#allocation33_spill] sm:$0xff] }
 0x85a   :  { %6914 = vst [vmem:[#allocation53_spill] sm:$0xff] %v5717_v22  ;;  %v5719_v24 = vpop.f32.mrf.mxu0  ;;  %v6923_v22 = vsub.s32 0, %v6922_v63 }
 0x85b   :  { %6915 = vst [vmem:[#allocation55_spill] sm:$0xff] %v5719_v24  ;;  %v5721_v53 = vpop.f32.mrf.mxu1 }
 0x85c   :  { %6916 = vst [vmem:[#allocation56_spill] sm:$0xff] %v5721_v53  ;;  %v5723_v20 = vpop.f32.mrf.mxu0  ;;  %v5738_v4 = vrot.slane %v1882_v60, %v6923_v22 }
 0x85d   :  { %6917 = vst [vmem:[#allocation54_spill] sm:$0xff] %v5723_v20  ;;  %v5725_v30 = vpop.f32.mrf.mxu1 }
 0x85e   :  { %6918 = vst [vmem:[#allocation61_spill] sm:$0xff] %v5725_v30  ;;  %v5727_v29 = vpop.f32.mrf.mxu0  ;;  %6924 = vst [vmem:[#allocation31_spill] sm:$0xff] %v5738_v4  ;;  %v6927_v30 = vsub.s32 1, %v6922_v63  ;;  %v1971_v31 = vadd.f32 %v1970_v1, %v5738_v4 }
 0x85f   :  { %6919 = vst [vmem:[#allocation12_spill] sm:$0xff] %v5727_v29  ;;  %v5729_v25 = vpop.f32.mrf.mxu1 }
 0x860   :  { %6920 = vst [vmem:[#allocation15_spill] sm:$0xff] %v5729_v25  ;;  %v5734_v61 = vpop.f32.mrf.mxu0  ;;  %v5746_v20 = vrot.slane %v1882_v60, %v6927_v30  ;;  %v6931_v30 = vsub.s32 3, %v6922_v63 }
 0x861   :  { %6921 = vst [vmem:[#allocation35_spill] sm:$0xff] %v5734_v61  ;;  %v5740_v24 = vpop.f32.mrf.mxu1 }
 0x862   :  { %6925 = vst [vmem:[#allocation57_spill] sm:$0xff] %v5740_v24  ;;  %v1973_v61 = vadd.f32 %v1972_v28, %v5746_v20  ;;  %v5758_v56 = vrot.slane %v1882_v60, %v6931_v30 }
 0x864   :  { %v2086_v1 = vadd.f32 %v2085_v21, %v5758_v56 }
 0x8e6   :  { %v5742_v53 = vpop.f32.mrf.mxu0  ;;  %v5748_v29 = vpop.f32.mrf.mxu1 }
 0x8e7   :  { %6926 = vst [vmem:[#allocation59_spill] sm:$0xff] %v5742_v53  ;;  %6928 = vst [vmem:[#allocation60_spill] sm:$0xff] %v5748_v29 }
 0x8e8   :  { %v5750_v25 = vpop.f32.mrf.mxu0  ;;  %v5754_v59 = vpop.f32.mrf.mxu1 }
 0x8e9   :  { %6929 = vst [vmem:[#allocation58_spill] sm:$0xff] %v5750_v25  ;;  %6930 = vst [vmem:[#allocation33_spill] sm:$0xff] %v5754_v59  ;;  %v6932_v25 = vsub.s32 2, %v6922_v63 }
 0x8ea   :  { %v2264_v27 = vpop.f32.mrf.mxu0  ;;  %v2335_v53 = vpop.f32.mrf.mxu1 }
 0x8eb   :  { %v2340_v22 = vadd.f32 %v2264_v27, %v1971_v31  ;;  %v5763_v28 = vrot.slane %v1882_v60, %v6932_v25  ;;  %v3700_v25 = vld [vmem:[%s6448_s2 + $0x8] sm:$0xff] }
 0x8ec   :  { %v2266_v58 = vpop.f32.mrf.mxu0  ;;  %v2337_v29 = vpop.f32.mrf.mxu1 }
 0x8ed   :  { %v3701_v24 = vmul.f32 -1.442695, %v2340_v22  ;;  %v2341_v41 = vadd.f32 %v2266_v58, %v1973_v61  ;;  %v2343_v59 = vadd.f32 %v2337_v29, %v2086_v1  ;;  %v2084_v27 = vadd.f32 %v2083_v23, %v5763_v28 }
 0x8ef   :  { %3913 = vpow2.f32 %v3701_v24  ;;  %v3702_v57 = vmul.f32 -1.442695, %v2341_v41  ;;  %v3703_v31 = vmul.f32 -1.442695, %v2343_v59  ;;  %v2342_v61 = vadd.f32 %v2335_v53, %v2084_v27 }
 0x8f1   :  { %3915 = vpow2.f32 %v3702_v57 }
 0x8f2   :  { %3917 = vpow2.f32 %v3703_v31  ;;  %v6933_v31 = vld [vmem:[#allocation40_spill] sm:$0xff] }
 0x8fc   :  { %v3914_v58 = vpop.eup %3913 }
 0x8fd   :  { %v2347_v24 = vadd.f32 1.0, %v3914_v58  ;;  %v6934_v58 = vld [vmem:[#allocation38_spill] sm:$0xff] }
 0x8fe   :  { %v3916_v41 = vpop.eup %3915 }
 0x8ff   :  { %3919 = vrcp.f32 %v2347_v24  ;;  %v2353_v22 = vadd.f32 1.0, %v3916_v41  ;;  %v3918_v57 = vpop.eup %3917  ;;  %v6936_v24 = vld [vmem:[#allocation43_spill] sm:$0xff]  ;;  %v6937_v41 = vld [vmem:[#allocation44_spill] sm:$0xff] }
 0x900   :  { %3921 = vtanh.f32 %v2342_v61  ;;  %v2360_v60 = vadd.f32 1.0, %v3918_v57  ;;  %v6935_v61 = vld [vmem:[#allocation41_spill] sm:$0xff]  ;;  %v6939_v57 = vld [vmem:[#allocation10_spill] sm:$0xff] }
 0x901   :  { %3923 = vrcp.f32 %v2353_v22  ;;  %v6938_v22 = vld [vmem:[#allocation42_spill] sm:$0xff] }
 0x902   :  { %3925 = vrcp.f32 %v2360_v60  ;;  %v6944_v60 = vld [vmem:[#allocation46_spill] sm:$0xff] }
 0x90c   :  { %v3920_v30 = vpop.eup %3919 }
 0x90d   :  { %v3922_v21 = vpop.eup %3921 }
 0x90e   :  { %v3924_v29 = vpop.eup %3923  ;;  %v2364_v23 = vmul.f32 %v3922_v21, %v3920_v30  ;;  %v6940_v30 = vld [vmem:[#allocation11_spill] sm:$0xff] }
 0x90f   :  { %v2363_v59 = vmul.f32 %v3924_v29, %v3700_v25  ;;  %v3926_v53 = vpop.eup %3925  ;;  %v6941_v25 = vld [vmem:[#allocation45_spill] sm:$0xff]  ;;  %v6942_v21 = vld [vmem:[#allocation47_spill] sm:$0xff]  ;;  %v6943_v29 = vld [vmem:[#allocation48_spill] sm:$0xff] }
 0x911   :  { %v5769_v63 = vadd.f32 %v2364_v23, %v2363_v59  ;;  %v6945_v23 = vld [vmem:[#allocation13_spill] sm:$0xff]  ;;  %v6946_v59 = vld [vmem:[#allocation14_spill] sm:$0xff] }
 0x913   :  { %3927 = vtanh.f32 %v5769_v63 }
 0x920   :  { %v3928_v1 = vpop.eup %3927 }
 0x921   :  { %v2367_v27 = vmul.f32 %v3928_v1, %v3926_v53  ;;  %v6947_v53 = vld [vmem:[#allocation49_spill] sm:$0xff]  ;;  %v6948_v1 = vld [vmem:[#allocation51_spill] sm:$0xff] }
 0x923   :  { %2433 = vmatmul.mubr.f32.vlgmr.msra.gmra.mxu0 %v2367_v27  ;;  %2504 = vmatmul.mubr.f32.vlgmr.msra.gmra.mxu1 %v2367_v27  ;;  %v6949_v27 = vld [vmem:[#allocation52_spill] sm:$0xff] }
 0x924   :  { %2539 = vmatpush1.msra.mxu0 %v5423_v16  ;;  %2610 = vmatpush1.msra.mxu1 %v5425_v40 }
 0x925   :  { %2540 = vmatprep.subr.mxu0 %v5429_v38  ;;  %2611 = vmatprep.subr.mxu1 %v5431_v8 }
 0x926   :  { %2541 = vmatpush1.msra.mxu0 %v5435_v6  ;;  %2612 = vmatpush1.msra.mxu1 %v5437_v2 }
 0x927   :  { %2542 = vmatprep.subr.mxu0 %v5441_v26  ;;  %2613 = vmatprep.subr.mxu1 %v5443_v17 }
 0x928   :  { %2543 = vmatpush1.msra.mxu0 %v5447_v15  ;;  %2614 = vmatpush1.msra.mxu1 %v5449_v5 }
 0x929   :  { %2544 = vmatprep.subr.mxu0 %v5453_v13  ;;  %2615 = vmatprep.subr.mxu1 %v5455_v7 }
 0x92a   :  { %2545 = vmatpush1.msra.mxu0 %v5459_v35  ;;  %2616 = vmatpush1.msra.mxu1 %v5461_v18 }
 0x92b   :  { %2546 = vmatprep.subr.mxu0 %v5465_v12  ;;  %2617 = vmatprep.subr.mxu1 %v5467_v11 }
 0x92c   :  { %2547 = vmatpush1.msra.mxu0 %v5471_v0  ;;  %2618 = vmatpush1.msra.mxu1 %v5473_v19 }
 0x92d   :  { %2548 = vmatprep.subr.mxu0 %v5477_v44  ;;  %2619 = vmatprep.subr.mxu1 %v5479_v62 }
 0x92e   :  { %2549 = vmatpush1.msra.mxu0 %v5483_v3  ;;  %2620 = vmatpush1.msra.mxu1 %v5485_v10 }
 0x92f   :  { %2550 = vmatprep.subr.mxu0 %v5489_v9  ;;  %2621 = vmatprep.subr.mxu1 %v5491_v14 }
 0x930   :  { %2551 = vmatpush1.msra.mxu0 %v5495_v42  ;;  %2622 = vmatpush1.msra.mxu1 %v5497_v43 }
 0x931   :  { %2552 = vmatprep.subr.mxu0 %v5501_v45  ;;  %2623 = vmatprep.subr.mxu1 %v5503_v47 }
 0x932   :  { %2553 = vmatpush1.msra.mxu0 %v5507_v48  ;;  %2624 = vmatpush1.msra.mxu1 %v5509_v32 }
 0x933   :  { %2554 = vmatprep.subr.mxu0 %v5513_v33  ;;  %2625 = vmatprep.subr.mxu1 %v5515_v34 }
 0x934   :  { %2555 = vmatpush1.msra.mxu0 %v5519_v36  ;;  %2626 = vmatpush1.msra.mxu1 %v5521_v37 }
 0x935   :  { %2556 = vmatprep.subr.mxu0 %v5525_v39  ;;  %2627 = vmatprep.subr.mxu1 %v5527_v46 }
 0x936   :  { %2557 = vmatpush1.msra.mxu0 %v5531_v49  ;;  %2628 = vmatpush1.msra.mxu1 %v5533_v50 }
 0x937   :  { %2558 = vmatprep.subr.mxu0 %v5537_v51  ;;  %2629 = vmatprep.subr.mxu1 %v5539_v52 }
 0x938   :  { %2559 = vmatpush1.msra.mxu0 %v5543_v54  ;;  %2630 = vmatpush1.msra.mxu1 %v5545_v55 }
 0x939   :  { %2560 = vmatprep.subr.mxu0 %v6933_v31  ;;  %2631 = vmatprep.subr.mxu1 %v6934_v58  ;;  %v6959_v58 = vld [vmem:[#allocation17_spill] sm:$0xff] }
 0x93a   :  { %2561 = vmatpush1.msra.mxu0 %v6935_v61  ;;  %2632 = vmatpush1.msra.mxu1 %v6936_v24 }
 0x93b   :  { %2562 = vmatprep.subr.mxu0 %v6937_v41  ;;  %2633 = vmatprep.subr.mxu1 %v6938_v22 }
 0x93c   :  { %2563 = vmatpush1.msra.mxu0 %v6939_v57  ;;  %2634 = vmatpush1.msra.mxu1 %v6940_v30  ;;  %v6950_v57 = vld [vmem:[#allocation50_spill] sm:$0xff]  ;;  %v6951_v30 = vld [vmem:[#allocation36_spill] sm:$0xff] }
 0x93d   :  { %2564 = vmatprep.subr.mxu0 %v6941_v25  ;;  %2635 = vmatprep.subr.mxu1 %v6942_v21  ;;  %v6952_v25 = vmov 0.0   ;;  %v6953_v21 = vld [vmem:[#allocation34_spill] sm:$0xff] }
 0x93e   :  { %2565 = vmatpush1.msra.mxu0 %v6943_v29  ;;  %2636 = vmatpush1.msra.mxu1 %v6944_v60  ;;  %v6954_v60 = vld [vmem:[#allocation32_spill] sm:$0xff] }
 0x93f   :  { %2566 = vmatprep.subr.mxu0 %v6945_v23  ;;  %2637 = vmatprep.subr.mxu1 %v6946_v59  ;;  %v6955_v23 = vld [vmem:[#allocation37_spill] sm:$0xff] }
 0x940   :  { %2567 = vmatpush1.msra.mxu0 %v6947_v53  ;;  %2638 = vmatpush1.msra.mxu1 %v6948_v1  ;;  %v6956_v53 = vld [vmem:[#allocation16_spill] sm:$0xff] }
 0x941   :  { %2568 = vmatprep.subr.mxu0 %v6949_v27  ;;  %2639 = vmatprep.subr.mxu1 %v6950_v57  ;;  %v1977_v59 = vadd.f32 %v6956_v53, %v5738_v4  ;;  %v6957_v27 = vld [vmem:[#allocation18_spill] sm:$0xff]  ;;  %v2090_v53 = vadd.f32 %v6959_v58, %v5763_v28 }
 0x942   :  { %2569 = vmatpush1.msra.mxu0 %v6951_v30  ;;  %2602 = vmatprep.mubr.f32.mxu0 %v6952_v25  ;;  %v1979_v29 = vadd.f32 %v6957_v27, %v5746_v20 }
 0x943   :  { %2640 = vmatpush1.msra.mxu1 %v6953_v21  ;;  %2673 = vmatprep.mubr.f32.mxu1 %v6952_v25 }
 0x944   :  { %2708 = vmatprep.subr.mxu0 %v6954_v60  ;;  %2779 = vmatprep.subr.mxu1 %v6955_v23  ;;  %v6958_v60 = vld [vmem:[#allocation19_spill] sm:$0xff] }
 0x945   :  { %v2092_v61 = vadd.f32 %v6958_v60, %v5758_v56 }
 0x9e3   :  { %v2434_v1 = vpop.f32.mrf.mxu0  ;;  %v2505_v24 = vpop.f32.mrf.mxu1 }
 0x9e4   :  { %v2510_v57 = vadd.f32 %v2434_v1, %v1977_v59  ;;  %v2512_v4 = vadd.f32 %v2505_v24, %v2090_v53  ;;  %v6974_v24 = vld [vmem:[#allocation14_spill] sm:$0xff]  ;;  %v6976_v1 = vld [vmem:[#allocation51_spill] sm:$0xff]  ;;  %v6977_v53 = vld [vmem:[#allocation52_spill] sm:$0xff] }
 0x9e5   :  { %v2436_v22 = vpop.f32.mrf.mxu0  ;;  %v2507_v25 = vpop.f32.mrf.mxu1 }
 0x9e6   :  { %v3704_v30 = vmul.f32 -1.442695, %v2510_v57  ;;  %v2511_v41 = vadd.f32 %v2436_v22, %v1979_v29  ;;  %v2513_v23 = vadd.f32 %v2507_v25, %v2092_v61 }
 0x9e8   :  { %3929 = vpow2.f32 %v3704_v30  ;;  %v3705_v21 = vmul.f32 -1.442695, %v2511_v41  ;;  %v3706_v31 = vmul.f32 -1.442695, %v2513_v23  ;;  %v6975_v23 = vld [vmem:[#allocation49_spill] sm:$0xff] }
 0x9ea   :  { %3931 = vpow2.f32 %v3705_v21 }
 0x9eb   :  { %3933 = vtanh.f32 %v2512_v4 }
 0x9ec   :  { %3935 = vpow2.f32 %v3706_v31  ;;  %v6973_v31 = vld [vmem:[#allocation13_spill] sm:$0xff] }
 0x9f5   :  { %v3930_v55 = vpop.eup %3929 }
 0x9f6   :  { %v2517_v27 = vadd.f32 1.0, %v3930_v55 }
 0x9f7   :  { %v3932_v59 = vpop.eup %3931 }
 0x9f8   :  { %3937 = vrcp.f32 %v2517_v27  ;;  %v2523_v22 = vadd.f32 1.0, %v3932_v59  ;;  %v3934_v41 = vpop.eup %3933  ;;  %v6978_v27 = vld [vmem:[#allocation50_spill] sm:$0xff]  ;;  %v6979_v59 = vld [vmem:[#allocation36_spill] sm:$0xff] }
 0x9f9   :  { %v3936_v57 = vpop.eup %3935 }
 0x9fa   :  { %3939 = vrcp.f32 %v2523_v22  ;;  %v2530_v60 = vadd.f32 1.0, %v3936_v57  ;;  %v6980_v22 = vmov 0.0   ;;  %v6982_v57 = vld [vmem:[#allocation32_spill] sm:$0xff] }
 0x9fc   :  { %3941 = vrcp.f32 %v2530_v60 }
 0xa05   :  { %v3938_v30 = vpop.eup %3937 }
 0xa06   :  { %v2534_v21 = vmul.f32 %v3938_v30, %v3934_v41  ;;  %v6981_v41 = vld [vmem:[#allocation34_spill] sm:$0xff]  ;;  %v6983_v30 = vld [vmem:[#allocation37_spill] sm:$0xff] }
 0xa07   :  { %v3940_v29 = vpop.eup %3939 }
 0xa08   :  { %v2533_v61 = vmul.f32 %v3940_v29, %v5769_v63  ;;  %v6972_v63 = vld [vmem:[#allocation46_spill] sm:$0xff]  ;;  %v6985_v29 = vld [vmem:[#allocation20_spill] sm:$0xff] }
 0xa09   :  { %v3942_v55 = vpop.eup %3941 }
 0xa0a   :  { %v5847_v25 = vadd.f32 %v2534_v21, %v2533_v61  ;;  %v6984_v21 = vld [vmem:[#allocation31_spill] sm:$0xff] }
 0xa0b   :  { %v1983_v60 = vadd.f32 %v6985_v29, %v6984_v21 }
 0xa0c   :  { %3943 = vtanh.f32 %v5847_v25 }
 0xa19   :  { %v3944_v4 = vpop.eup %3943 }
 0xa1a   :  { %v2537_v58 = vmul.f32 %v3944_v4, %v3942_v55  ;;  %v6986_v55 = vld [vmem:[#allocation22_spill] sm:$0xff] }
 0xa1b   :  { %v1985_v4 = vadd.f32 %v6986_v55, %v5746_v20 }
 0xa1c   :  { %2603 = vmatmul.mubr.f32.vlgmr.msra.gmra.mxu0 %v2537_v58  ;;  %2674 = vmatmul.mubr.f32.vlgmr.msra.gmra.mxu1 %v2537_v58 }
 0xa1d   :  { %2709 = vmatpush1.msra.mxu0 %v5423_v16  ;;  %2780 = vmatpush1.msra.mxu1 %v5425_v40  ;;  %v6960_v16 = vld [vmem:[#allocation39_spill] sm:$0xff]  ;;  %v6961_v40 = vld [vmem:[#allocation40_spill] sm:$0xff] }
 0xa1e   :  { %2710 = vmatprep.subr.mxu0 %v5429_v38  ;;  %2781 = vmatprep.subr.mxu1 %v5431_v8  ;;  %v6962_v38 = vld [vmem:[#allocation38_spill] sm:$0xff]  ;;  %v6963_v8 = vld [vmem:[#allocation41_spill] sm:$0xff] }
 0xa1f   :  { %2711 = vmatpush1.msra.mxu0 %v5435_v6  ;;  %2782 = vmatpush1.msra.mxu1 %v5437_v2  ;;  %v6964_v6 = vld [vmem:[#allocation43_spill] sm:$0xff]  ;;  %v6965_v2 = vld [vmem:[#allocation44_spill] sm:$0xff] }
 0xa20   :  { %2712 = vmatprep.subr.mxu0 %v5441_v26  ;;  %2783 = vmatprep.subr.mxu1 %v5443_v17  ;;  %v6966_v26 = vld [vmem:[#allocation42_spill] sm:$0xff] }
 0xa21   :  { %2713 = vmatpush1.msra.mxu0 %v5447_v15  ;;  %2784 = vmatpush1.msra.mxu1 %v5449_v5  ;;  %v6967_v17 = vld [vmem:[#allocation10_spill] sm:$0xff]  ;;  %v6968_v15 = vld [vmem:[#allocation11_spill] sm:$0xff]  ;;  %v6969_v5 = vld [vmem:[#allocation45_spill] sm:$0xff] }
 0xa22   :  { %2714 = vmatprep.subr.mxu0 %v5453_v13  ;;  %2785 = vmatprep.subr.mxu1 %v5455_v7  ;;  %v6970_v13 = vld [vmem:[#allocation47_spill] sm:$0xff]  ;;  %v6971_v7 = vld [vmem:[#allocation48_spill] sm:$0xff] }
 0xa23   :  { %2715 = vmatpush1.msra.mxu0 %v5459_v35  ;;  %2786 = vmatpush1.msra.mxu1 %v5461_v18 }
 0xa24   :  { %2716 = vmatprep.subr.mxu0 %v5465_v12  ;;  %2787 = vmatprep.subr.mxu1 %v5467_v11 }
 0xa25   :  { %2717 = vmatpush1.msra.mxu0 %v5471_v0  ;;  %2788 = vmatpush1.msra.mxu1 %v5473_v19 }
 0xa26   :  { %2718 = vmatprep.subr.mxu0 %v5477_v44  ;;  %2789 = vmatprep.subr.mxu1 %v5479_v62 }
 0xa27   :  { %2719 = vmatpush1.msra.mxu0 %v5483_v3  ;;  %2790 = vmatpush1.msra.mxu1 %v5485_v10 }
 0xa28   :  { %2720 = vmatprep.subr.mxu0 %v5489_v9  ;;  %2791 = vmatprep.subr.mxu1 %v5491_v14 }
 0xa29   :  { %2721 = vmatpush1.msra.mxu0 %v5495_v42  ;;  %2792 = vmatpush1.msra.mxu1 %v5497_v43 }
 0xa2a   :  { %2722 = vmatprep.subr.mxu0 %v5501_v45  ;;  %2793 = vmatprep.subr.mxu1 %v5503_v47 }
 0xa2b   :  { %2723 = vmatpush1.msra.mxu0 %v5507_v48  ;;  %2794 = vmatpush1.msra.mxu1 %v5509_v32 }
 0xa2c   :  { %2724 = vmatprep.subr.mxu0 %v5513_v33  ;;  %2795 = vmatprep.subr.mxu1 %v5515_v34 }
 0xa2d   :  { %2725 = vmatpush1.msra.mxu0 %v5519_v36  ;;  %2796 = vmatpush1.msra.mxu1 %v5521_v37 }
 0xa2e   :  { %2726 = vmatprep.subr.mxu0 %v5525_v39  ;;  %2797 = vmatprep.subr.mxu1 %v5527_v46 }
 0xa2f   :  { %2727 = vmatpush1.msra.mxu0 %v5531_v49  ;;  %2798 = vmatpush1.msra.mxu1 %v5533_v50 }
 0xa30   :  { %2728 = vmatprep.subr.mxu0 %v5537_v51  ;;  %2799 = vmatprep.subr.mxu1 %v5539_v52 }
 0xa31   :  { %2729 = vmatpush1.msra.mxu0 %v5543_v54  ;;  %2800 = vmatpush1.msra.mxu1 %v6960_v16 }
 0xa32   :  { %2730 = vmatprep.subr.mxu0 %v6961_v40  ;;  %2801 = vmatprep.subr.mxu1 %v6962_v38 }
 0xa33   :  { %2731 = vmatpush1.msra.mxu0 %v6963_v8  ;;  %2802 = vmatpush1.msra.mxu1 %v6964_v6 }
 0xa34   :  { %2732 = vmatprep.subr.mxu0 %v6965_v2  ;;  %2803 = vmatprep.subr.mxu1 %v6966_v26 }
 0xa35   :  { %2733 = vmatpush1.msra.mxu0 %v6967_v17  ;;  %2804 = vmatpush1.msra.mxu1 %v6968_v15 }
 0xa36   :  { %2734 = vmatprep.subr.mxu0 %v6969_v5  ;;  %2805 = vmatprep.subr.mxu1 %v6970_v13 }
 0xa37   :  { %2735 = vmatpush1.msra.mxu0 %v6971_v7  ;;  %2806 = vmatpush1.msra.mxu1 %v6972_v63 }
 0xa38   :  { %2736 = vmatprep.subr.mxu0 %v6973_v31  ;;  %2807 = vmatprep.subr.mxu1 %v6974_v24  ;;  %v6988_v24 = vld [vmem:[#allocation21_spill] sm:$0xff] }
 0xa39   :  { %2737 = vmatpush1.msra.mxu0 %v6975_v23  ;;  %2808 = vmatpush1.msra.mxu1 %v6976_v1  ;;  %v2096_v29 = vadd.f32 %v6988_v24, %v5763_v28 }
 0xa3a   :  { %2738 = vmatprep.subr.mxu0 %v6977_v53  ;;  %2809 = vmatprep.subr.mxu1 %v6978_v27 }
 0xa3b   :  { %2739 = vmatpush1.msra.mxu0 %v6979_v59  ;;  %2772 = vmatprep.mubr.f32.mxu0 %v6980_v22 }
 0xa3c   :  { %2810 = vmatpush1.msra.mxu1 %v6981_v41  ;;  %2843 = vmatprep.mubr.f32.mxu1 %v6980_v22 }
 0xa3d   :  { %2878 = vmatprep.subr.mxu0 %v6982_v57  ;;  %2949 = vmatprep.subr.mxu1 %v6983_v30  ;;  %v6987_v57 = vld [vmem:[#allocation23_spill] sm:$0xff] }
 0xa3e   :  { %v2098_v23 = vadd.f32 %v6987_v57, %v5758_v56  ;;  %v5934_v57 = vld [vmem:[#allocation7 + $0x1c8] sm:$0xff] }
 0xadc   :  { %v2604_v61 = vpop.f32.mrf.mxu0  ;;  %v2675_v1 = vpop.f32.mrf.mxu1 }
 0xadd   :  { %v2680_v58 = vadd.f32 %v2604_v61, %v1983_v60  ;;  %v2682_v21 = vadd.f32 %v2675_v1, %v2096_v29  ;;  %v5943_v29 = vld [vmem:[#allocation7 + $0x1d0] sm:$0xff] }
 0xade   :  { %v2606_v27 = vpop.f32.mrf.mxu0  ;;  %v2677_v22 = vpop.f32.mrf.mxu1 }
 0xadf   :  { %v3707_v59 = vmul.f32 -1.442695, %v2680_v58  ;;  %v2681_v53 = vadd.f32 %v2606_v27, %v1985_v4  ;;  %v2683_v30 = vadd.f32 %v2677_v22, %v2098_v23 }
 0xae1   :  { %3945 = vpow2.f32 %v3707_v59  ;;  %v3708_v41 = vmul.f32 -1.442695, %v2681_v53  ;;  %v3709_v31 = vmul.f32 -1.442695, %v2683_v30  ;;  %v5940_v30 = vld [vmem:[#allocation7 + $0x1c0] sm:$0xff] }
 0xae3   :  { %3947 = vpow2.f32 %v3708_v41 }
 0xae4   :  { %3949 = vtanh.f32 %v2682_v21  ;;  %v5931_v21 = vld [vmem:[#allocation7 + $0x1f0] sm:$0xff] }
 0xae5   :  { %3951 = vpow2.f32 %v3709_v31  ;;  %v5928_v31 = vld [vmem:[#allocation7 + $0x1e0] sm:$0xff] }
 0xaee   :  { %v3946_v63 = vpop.eup %3945 }
 0xaef   :  { %v2687_v55 = vadd.f32 1.0, %v3946_v63 }
 0xaf0   :  { %v3948_v60 = vpop.eup %3947 }
 0xaf1   :  { %3953 = vrcp.f32 %v2687_v55  ;;  %v2693_v27 = vadd.f32 1.0, %v3948_v60  ;;  %v3950_v53 = vpop.eup %3949  ;;  %v5946_v55 = vld [vmem:[#allocation7 + $0x1a8] sm:$0xff]  ;;  %v5949_v60 = vld [vmem:[#allocation7 + $0x1b8] sm:$0xff] }
 0xaf2   :  { %v3952_v59 = vpop.eup %3951 }
 0xaf3   :  { %3955 = vrcp.f32 %v2693_v27  ;;  %v2700_v58 = vadd.f32 1.0, %v3952_v59  ;;  %v5952_v27 = vld [vmem:[#allocation7 + $0x1a0] sm:$0xff]  ;;  %v5958_v59 = vld [vmem:[#allocation7 + $0x188] sm:$0xff] }
 0xaf5   :  { %3957 = vrcp.f32 %v2700_v58 }
 0xafe   :  { %v3954_v41 = vpop.eup %3953 }
 0xaff   :  { %v2704_v61 = vmul.f32 %v3954_v41, %v3950_v53  ;;  %v5955_v53 = vld [vmem:[#allocation7 + $0x1b0] sm:$0xff]  ;;  %v5961_v41 = vld [vmem:[#allocation7 + $0x198] sm:$0xff] }
 0xb00   :  { %v3956_v4 = vpop.eup %3955 }
 0xb01   :  { %v2703_v23 = vmul.f32 %v3956_v4, %v5847_v25  ;;  %v5937_v25 = vld [vmem:[#allocation7 + $0x1d8] sm:$0xff] }
 0xb02   :  { %v3958_v63 = vpop.eup %3957 }
 0xb03   :  { %v5925_v22 = vadd.f32 %v2704_v61, %v2703_v23 }
 0xb05   :  { %3959 = vtanh.f32 %v5925_v22 }
 0xb12   :  { %v3960_v24 = vpop.eup %3959 }
 0xb13   :  { %v2707_v1 = vmul.f32 %v3960_v24, %v3958_v63 }
 0xb15   :  { %2773 = vmatmul.mubr.f32.vlgmr.msra.gmra.mxu0 %v2707_v1  ;;  %2844 = vmatmul.mubr.f32.vlgmr.msra.gmra.mxu1 %v2707_v1  ;;  %v6049_v1 = vld [vmem:[#allocation7 + $0x190] sm:$0xff] }
 0xb16   :  { %2879 = vmatpush1.msra.mxu0 %v5928_v31  ;;  %2950 = vmatpush1.msra.mxu1 %v5931_v21 }
 0xb17   :  { %2880 = vmatprep.subr.mxu0 %v5934_v57  ;;  %2951 = vmatprep.subr.mxu1 %v5937_v25 }
 0xb18   :  { %2881 = vmatpush1.msra.mxu0 %v5940_v30  ;;  %2952 = vmatpush1.msra.mxu1 %v5943_v29 }
 0xb19   :  { %2882 = vmatprep.subr.mxu0 %v5946_v55  ;;  %2953 = vmatprep.subr.mxu1 %v5949_v60 }
 0xb1a   :  { %2883 = vmatpush1.msra.mxu0 %v5952_v27  ;;  %2954 = vmatpush1.msra.mxu1 %v5955_v53 }
 0xb1b   :  { %2884 = vmatprep.subr.mxu0 %v5958_v59  ;;  %2955 = vmatprep.subr.mxu1 %v5961_v41 }
 0xb1c   :  { %2885 = vmatpush1.msra.mxu0 %v5459_v35  ;;  %2956 = vmatpush1.msra.mxu1 %v5461_v18  ;;  %v6989_v35 = vld [vmem:[#allocation46_spill] sm:$0xff]  ;;  %v6990_v18 = vld [vmem:[#allocation13_spill] sm:$0xff] }
 0xb1d   :  { %2886 = vmatprep.subr.mxu0 %v5465_v12  ;;  %2957 = vmatprep.subr.mxu1 %v5467_v11  ;;  %v6991_v12 = vld [vmem:[#allocation14_spill] sm:$0xff]  ;;  %v6992_v11 = vld [vmem:[#allocation49_spill] sm:$0xff] }
 0xb1e   :  { %2887 = vmatpush1.msra.mxu0 %v5471_v0  ;;  %2958 = vmatpush1.msra.mxu1 %v5473_v19  ;;  %v6993_v0 = vld [vmem:[#allocation51_spill] sm:$0xff]  ;;  %v6994_v19 = vld [vmem:[#allocation52_spill] sm:$0xff] }
 0xb1f   :  { %2888 = vmatprep.subr.mxu0 %v5477_v44  ;;  %2959 = vmatprep.subr.mxu1 %v5479_v62  ;;  %v6995_v44 = vld [vmem:[#allocation50_spill] sm:$0xff]  ;;  %v6996_v62 = vld [vmem:[#allocation36_spill] sm:$0xff] }
 0xb20   :  { %2889 = vmatpush1.msra.mxu0 %v5483_v3  ;;  %2960 = vmatpush1.msra.mxu1 %v5485_v10  ;;  %v6997_v3 = vmov 0.0   ;;  %v6998_v10 = vld [vmem:[#allocation34_spill] sm:$0xff] }
 0xb21   :  { %2890 = vmatprep.subr.mxu0 %v5489_v9  ;;  %2961 = vmatprep.subr.mxu1 %v5491_v14  ;;  %v6016_v9 = vld [vmem:[#allocation7 + $0x1e8] sm:$0xff]  ;;  %v6019_v14 = vld [vmem:[#allocation7 + $0x1f8] sm:$0xff] }
 0xb22   :  { %2891 = vmatpush1.msra.mxu0 %v5495_v42  ;;  %2962 = vmatpush1.msra.mxu1 %v5497_v43  ;;  %6999 = vst [vmem:[#allocation16_spill] sm:$0xff] %v6016_v9  ;;  %7000 = vst [vmem:[#allocation18_spill] sm:$0xff] %v6019_v14  ;;  %v7001_v42 = vld [vmem:[#allocation31_spill] sm:$0xff]  ;;  %v7002_v43 = vld [vmem:[#allocation24_spill] sm:$0xff] }
 0xb23   :  { %2892 = vmatprep.subr.mxu0 %v5501_v45  ;;  %2963 = vmatprep.subr.mxu1 %v5503_v47  ;;  %v1989_v45 = vadd.f32 %v7002_v43, %v7001_v42  ;;  %v6079_v43 = vld [vmem:[#allocation7 + $0x138] sm:$0xff] }
 0xb24   :  { %2893 = vmatpush1.msra.mxu0 %v5507_v48  ;;  %2964 = vmatpush1.msra.mxu1 %v5509_v32  ;;  %v7003_v48 = vld [vmem:[#allocation26_spill] sm:$0xff] }
 0xb25   :  { %2894 = vmatprep.subr.mxu0 %v5513_v33  ;;  %2965 = vmatprep.subr.mxu1 %v5515_v34  ;;  %v1991_v32 = vadd.f32 %v7003_v48, %v5746_v20  ;;  %v6088_v48 = vld [vmem:[#allocation7 + $0x108] sm:$0xff] }
 0xb26   :  { %2895 = vmatpush1.msra.mxu0 %v5519_v36  ;;  %2966 = vmatpush1.msra.mxu1 %v5521_v37 }
 0xb27   :  { %2896 = vmatprep.subr.mxu0 %v5525_v39  ;;  %2967 = vmatprep.subr.mxu1 %v5527_v46 }
 0xb28   :  { %2897 = vmatpush1.msra.mxu0 %v5531_v49  ;;  %2968 = vmatpush1.msra.mxu1 %v5533_v50  ;;  %v7004_v50 = vld [vmem:[#allocation27_spill] sm:$0xff] }
 0xb29   :  { %2898 = vmatprep.subr.mxu0 %v5537_v51  ;;  %2969 = vmatprep.subr.mxu1 %v5539_v52  ;;  %v2104_v51 = vadd.f32 %v7004_v50, %v5758_v56  ;;  %v6115_v50 = vld [vmem:[#allocation7 + $0xd8] sm:$0xff] }
 0xb2a   :  { %2899 = vmatpush1.msra.mxu0 %v5543_v54  ;;  %2970 = vmatpush1.msra.mxu1 %v6960_v16  ;;  %v7005_v54 = vld [vmem:[#allocation25_spill] sm:$0xff] }
 0xb2b   :  { %2900 = vmatprep.subr.mxu0 %v6961_v40  ;;  %2971 = vmatprep.subr.mxu1 %v6962_v38  ;;  %v2102_v16 = vadd.f32 %v7005_v54, %v5763_v28  ;;  %v6124_v54 = vld [vmem:[#allocation7 + $0xa8] sm:$0xff] }
 0xb2c   :  { %2901 = vmatpush1.msra.mxu0 %v6963_v8  ;;  %2972 = vmatpush1.msra.mxu1 %v6964_v6 }
 0xb2d   :  { %2902 = vmatprep.subr.mxu0 %v6965_v2  ;;  %2973 = vmatprep.subr.mxu1 %v6966_v26 }
 0xb2e   :  { %2903 = vmatpush1.msra.mxu0 %v6967_v17  ;;  %2974 = vmatpush1.msra.mxu1 %v6968_v15 }
 0xb2f   :  { %2904 = vmatprep.subr.mxu0 %v6969_v5  ;;  %2975 = vmatprep.subr.mxu1 %v6970_v13 }
 0xb30   :  { %2905 = vmatpush1.msra.mxu0 %v6971_v7  ;;  %2976 = vmatpush1.msra.mxu1 %v6989_v35  ;;  %v6052_v35 = vld [vmem:[#allocation7 + $0x168] sm:$0xff] }
 0xb31   :  { %2906 = vmatprep.subr.mxu0 %v6990_v18  ;;  %2977 = vmatprep.subr.mxu1 %v6991_v12  ;;  %v6055_v18 = vld [vmem:[#allocation7 + $0x178] sm:$0xff]  ;;  %v6058_v12 = vld [vmem:[#allocation7 + $0x160] sm:$0xff] }
 0xb32   :  { %2907 = vmatpush1.msra.mxu0 %v6992_v11  ;;  %2978 = vmatpush1.msra.mxu1 %v6993_v0  ;;  %v6061_v11 = vld [vmem:[#allocation7 + $0x170] sm:$0xff]  ;;  %v6064_v0 = vld [vmem:[#allocation7 + $0x148] sm:$0xff] }
 0xb33   :  { %2908 = vmatprep.subr.mxu0 %v6994_v19  ;;  %2979 = vmatprep.subr.mxu1 %v6995_v44  ;;  %v6067_v19 = vld [vmem:[#allocation7 + $0x158] sm:$0xff]  ;;  %v6070_v44 = vld [vmem:[#allocation7 + $0x140] sm:$0xff] }
 0xb34   :  { %2909 = vmatpush1.msra.mxu0 %v6996_v62  ;;  %2942 = vmatprep.mubr.f32.mxu0 %v6997_v3  ;;  %v6073_v62 = vld [vmem:[#allocation7 + $0x150] sm:$0xff] }
 0xb35   :  { %2980 = vmatpush1.msra.mxu1 %v6998_v10  ;;  %3013 = vmatprep.mubr.f32.mxu1 %v6997_v3  ;;  %v6076_v10 = vld [vmem:[#allocation7 + $0x128] sm:$0xff] }
 0xb36   :  { %3048 = vmatprep.subr.mxu0 %v6016_v9  ;;  %3119 = vmatprep.subr.mxu1 %v6019_v14 }
 0xbd5   :  { %v2774_v47 = vpop.f32.mrf.mxu0  ;;  %v2845_v39 = vpop.f32.mrf.mxu1 }
 0xbd6   :  { %v2850_v33 = vadd.f32 %v2774_v47, %v1989_v45  ;;  %v2852_v40 = vadd.f32 %v2845_v39, %v2102_v16  ;;  %v6082_v45 = vld [vmem:[#allocation7 + $0x120] sm:$0xff]  ;;  %v6085_v47 = vld [vmem:[#allocation7 + $0x130] sm:$0xff]  ;;  %v6127_v16 = vld [vmem:[#allocation7 + $0xb8] sm:$0xff] }
 0xbd7   :  { %v2776_v34 = vpop.f32.mrf.mxu0  ;;  %v2847_v49 = vpop.f32.mrf.mxu1  ;;  %v6106_v39 = vld [vmem:[#allocation7 + $0xe0] sm:$0xff] }
 0xbd8   :  { %v3710_v36 = vmul.f32 -1.442695, %v2850_v33  ;;  %v2851_v37 = vadd.f32 %v2776_v34, %v1991_v32  ;;  %v2853_v52 = vadd.f32 %v2847_v49, %v2104_v51  ;;  %v6091_v32 = vld [vmem:[#allocation7 + $0x118] sm:$0xff]  ;;  %v6094_v33 = vld [vmem:[#allocation7 + $0x100] sm:$0xff]  ;;  %v6097_v34 = vld [vmem:[#allocation7 + $0x110] sm:$0xff] }
 0xbd9   :  { %v6112_v49 = vld [vmem:[#allocation7 + $0xc8] sm:$0xff]  ;;  %v6118_v51 = vld [vmem:[#allocation7 + $0xc0] sm:$0xff] }
 0xbda   :  { %3961 = vpow2.f32 %v3710_v36  ;;  %v3711_v46 = vmul.f32 -1.442695, %v2851_v37  ;;  %v3712_v38 = vmul.f32 -1.442695, %v2853_v52  ;;  %v6100_v36 = vld [vmem:[#allocation7 + $0xe8] sm:$0xff]  ;;  %v6103_v37 = vld [vmem:[#allocation7 + $0xf8] sm:$0xff] }
 0xbdb   :  { %v6121_v52 = vld [vmem:[#allocation7 + $0xd0] sm:$0xff] }
 0xbdc   :  { %3963 = vpow2.f32 %v3711_v46  ;;  %v6109_v46 = vld [vmem:[#allocation7 + $0xf0] sm:$0xff] }
 0xbdd   :  { %3965 = vtanh.f32 %v2852_v40  ;;  %v6130_v40 = vld [vmem:[#allocation7 + $0xa0] sm:$0xff] }
 0xbde   :  { %3967 = vpow2.f32 %v3712_v38  ;;  %v6133_v38 = vld [vmem:[#allocation7 + $0xb0] sm:$0xff] }
 0xbdf   :  { %7006 = vst [vmem:[#allocation19_spill] sm:$0xff] %v6133_v38 }
 0xbe7   :  { %v3962_v8 = vpop.eup %3961 }
 0xbe8   :  { %v2857_v6 = vadd.f32 1.0, %v3962_v8  ;;  %v6136_v8 = vld [vmem:[#allocation7 + $0x88] sm:$0xff] }
 0xbe9   :  { %v3964_v2 = vpop.eup %3963  ;;  %7007 = vst [vmem:[#allocation17_spill] sm:$0xff] %v6136_v8 }
 0xbea   :  { %3969 = vrcp.f32 %v2857_v6  ;;  %v2863_v26 = vadd.f32 1.0, %v3964_v2  ;;  %v3966_v17 = vpop.eup %3965  ;;  %v6139_v6 = vld [vmem:[#allocation7 + $0x98] sm:$0xff]  ;;  %v6142_v2 = vld [vmem:[#allocation7 + $0x80] sm:$0xff] }
 0xbeb   :  { %v3968_v15 = vpop.eup %3967  ;;  %7008 = vst [vmem:[#allocation39_spill] sm:$0xff] %v6139_v6  ;;  %7009 = vst [vmem:[#allocation40_spill] sm:$0xff] %v6142_v2 }
 0xbec   :  { %3971 = vrcp.f32 %v2863_v26  ;;  %v2870_v61 = vadd.f32 1.0, %v3968_v15  ;;  %v6145_v26 = vld [vmem:[#allocation7 + $0x90] sm:$0xff]  ;;  %v6151_v15 = vld [vmem:[#allocation7 + $0x78] sm:$0xff] }
 0xbed   :  { %7010 = vst [vmem:[#allocation38_spill] sm:$0xff] %v6145_v26  ;;  %7012 = vst [vmem:[#allocation43_spill] sm:$0xff] %v6151_v15 }
 0xbee   :  { %3973 = vrcp.f32 %v2870_v61  ;;  %v6163_v61 = vld [vmem:[#allocation7 + $0x58] sm:$0xff] }
 0xbef   :  { %7016 = vst [vmem:[#allocation11_spill] sm:$0xff] %v6163_v61 }
 0xbf7   :  { %v3970_v5 = vpop.eup %3969 }
 0xbf8   :  { %v2874_v13 = vmul.f32 %v3970_v5, %v3966_v17  ;;  %v6148_v17 = vld [vmem:[#allocation7 + $0x68] sm:$0xff]  ;;  %v6154_v5 = vld [vmem:[#allocation7 + $0x60] sm:$0xff] }
 0xbf9   :  { %v3972_v7 = vpop.eup %3971  ;;  %7011 = vst [vmem:[#allocation41_spill] sm:$0xff] %v6148_v17  ;;  %7013 = vst [vmem:[#allocation44_spill] sm:$0xff] %v6154_v5 }
 0xbfa   :  { %v2873_v4 = vmul.f32 %v3972_v7, %v5925_v22  ;;  %v6046_v22 = vld [vmem:[#allocation7 + $0x180] sm:$0xff]  ;;  %v6160_v7 = vld [vmem:[#allocation7 + $0x48] sm:$0xff] }
 0xbfb   :  { %v3974_v23 = vpop.eup %3973  ;;  %7015 = vst [vmem:[#allocation10_spill] sm:$0xff] %v6160_v7 }
 0xbfc   :  { %v6031_v58 = vadd.f32 %v2874_v13, %v2873_v4  ;;  %v6157_v13 = vld [vmem:[#allocation7 + $0x70] sm:$0xff]  ;;  %v6166_v4 = vld [vmem:[#allocation7 + $0x40] sm:$0xff] }
 0xbfd   :  { %7014 = vst [vmem:[#allocation42_spill] sm:$0xff] %v6157_v13  ;;  %7017 = vst [vmem:[#allocation45_spill] sm:$0xff] %v6166_v4 }
 0xbfe   :  { %3975 = vtanh.f32 %v6031_v58 }
 0xc0b   :  { %v3976_v63 = vpop.eup %3975 }
 0xc0c   :  { %v2877_v24 = vmul.f32 %v3976_v63, %v3974_v23  ;;  %v6169_v23 = vld [vmem:[#allocation7 + $0x50] sm:$0xff]  ;;  %v6172_v63 = vld [vmem:[#allocation7 + $0x28] sm:$0xff] }
 0xc0d   :  { %7018 = vst [vmem:[#allocation47_spill] sm:$0xff] %v6169_v23  ;;  %7019 = vst [vmem:[#allocation48_spill] sm:$0xff] %v6172_v63 }
 0xc0e   :  { %2943 = vmatmul.mubr.f32.vlgmr.msra.gmra.mxu0 %v2877_v24  ;;  %3014 = vmatmul.mubr.f32.vlgmr.msra.gmra.mxu1 %v2877_v24  ;;  %v6175_v24 = vld [vmem:[#allocation7 + $0x38] sm:$0xff] }
 0xc0f   :  { %3049 = vmatpush1.msra.mxu0 %v5928_v31  ;;  %3120 = vmatpush1.msra.mxu1 %v5931_v21  ;;  %7020 = vst [vmem:[#allocation32_spill] sm:$0xff] %v6175_v24 }
 0xc10   :  { %3050 = vmatprep.subr.mxu0 %v5934_v57  ;;  %3121 = vmatprep.subr.mxu1 %v5937_v25 }
 0xc11   :  { %3051 = vmatpush1.msra.mxu0 %v5940_v30  ;;  %3122 = vmatpush1.msra.mxu1 %v5943_v29 }
 0xc12   :  { %3052 = vmatprep.subr.mxu0 %v5946_v55  ;;  %3123 = vmatprep.subr.mxu1 %v5949_v60 }
 0xc13   :  { %3053 = vmatpush1.msra.mxu0 %v5952_v27  ;;  %3124 = vmatpush1.msra.mxu1 %v5955_v53 }
 0xc14   :  { %3054 = vmatprep.subr.mxu0 %v5958_v59  ;;  %3125 = vmatprep.subr.mxu1 %v5961_v41 }
 0xc15   :  { %3055 = vmatpush1.msra.mxu0 %v6046_v22  ;;  %3126 = vmatpush1.msra.mxu1 %v6049_v1 }
 0xc16   :  { %3056 = vmatprep.subr.mxu0 %v6052_v35  ;;  %3127 = vmatprep.subr.mxu1 %v6055_v18 }
 0xc17   :  { %3057 = vmatpush1.msra.mxu0 %v6058_v12  ;;  %3128 = vmatpush1.msra.mxu1 %v6061_v11 }
 0xc18   :  { %3058 = vmatprep.subr.mxu0 %v6064_v0  ;;  %3129 = vmatprep.subr.mxu1 %v6067_v19 }
 0xc19   :  { %3059 = vmatpush1.msra.mxu0 %v6070_v44  ;;  %3130 = vmatpush1.msra.mxu1 %v6073_v62 }
 0xc1a   :  { %3060 = vmatprep.subr.mxu0 %v6076_v10  ;;  %3131 = vmatprep.subr.mxu1 %v6079_v43 }
 0xc1b   :  { %3061 = vmatpush1.msra.mxu0 %v6082_v45  ;;  %3132 = vmatpush1.msra.mxu1 %v6085_v47 }
 0xc1c   :  { %3062 = vmatprep.subr.mxu0 %v6088_v48  ;;  %3133 = vmatprep.subr.mxu1 %v6091_v32 }
 0xc1d   :  { %3063 = vmatpush1.msra.mxu0 %v6094_v33  ;;  %3134 = vmatpush1.msra.mxu1 %v6097_v34 }
 0xc1e   :  { %3064 = vmatprep.subr.mxu0 %v6100_v36  ;;  %3135 = vmatprep.subr.mxu1 %v6103_v37 }
 0xc1f   :  { %3065 = vmatpush1.msra.mxu0 %v6106_v39  ;;  %3136 = vmatpush1.msra.mxu1 %v6109_v46 }
 0xc20   :  { %3066 = vmatprep.subr.mxu0 %v6112_v49  ;;  %3137 = vmatprep.subr.mxu1 %v6115_v50 }
 0xc21   :  { %3067 = vmatpush1.msra.mxu0 %v6118_v51  ;;  %3138 = vmatpush1.msra.mxu1 %v6121_v52 }
 0xc22   :  { %3068 = vmatprep.subr.mxu0 %v6124_v54  ;;  %3139 = vmatprep.subr.mxu1 %v6127_v16 }
 0xc23   :  { %3069 = vmatpush1.msra.mxu0 %v6130_v40  ;;  %3140 = vmatpush1.msra.mxu1 %v6133_v38 }
 0xc24   :  { %3070 = vmatprep.subr.mxu0 %v6136_v8  ;;  %3141 = vmatprep.subr.mxu1 %v6139_v6  ;;  %v7030_v6 = vld [vmem:[#allocation29_spill] sm:$0xff] }
 0xc25   :  { %3071 = vmatpush1.msra.mxu0 %v6142_v2  ;;  %3142 = vmatpush1.msra.mxu1 %v6145_v26 }
 0xc26   :  { %3072 = vmatprep.subr.mxu0 %v6148_v17  ;;  %3143 = vmatprep.subr.mxu1 %v6151_v15 }
 0xc27   :  { %3073 = vmatpush1.msra.mxu0 %v6154_v5  ;;  %3144 = vmatpush1.msra.mxu1 %v6157_v13 }
 0xc28   :  { %3074 = vmatprep.subr.mxu0 %v6160_v7  ;;  %3145 = vmatprep.subr.mxu1 %v6163_v61  ;;  %v6178_v7 = vld [vmem:[#allocation7 + $0x20] sm:$0xff]  ;;  %v6181_v61 = vld [vmem:[#allocation7 + $0x30] sm:$0xff] }
 0xc29   :  { %3075 = vmatpush1.msra.mxu0 %v6166_v4  ;;  %3146 = vmatpush1.msra.mxu1 %v6169_v23  ;;  %7021 = vst [vmem:[#allocation37_spill] sm:$0xff] %v6178_v7  ;;  %7022 = vst [vmem:[#allocation20_spill] sm:$0xff] %v6181_v61  ;;  %v6184_v4 = vld [vmem:[#allocation7 + $0x8] sm:$0xff]  ;;  %v6187_v23 = vld [vmem:[#allocation7 + $0x18] sm:$0xff] }
 0xc2a   :  { %3076 = vmatprep.subr.mxu0 %v6172_v63  ;;  %3147 = vmatprep.subr.mxu1 %v6175_v24  ;;  %7023 = vst [vmem:[#allocation22_spill] sm:$0xff] %v6184_v4  ;;  %7024 = vst [vmem:[#allocation23_spill] sm:$0xff] %v6187_v23  ;;  %v6190_v63 = vld [vmem:[#allocation7] sm:$0xff]  ;;  %v6194_v24 = vld [vmem:[#allocation7 + $0x10] sm:$0xff] }
 0xc2b   :  { %3077 = vmatpush1.msra.mxu0 %v6178_v7  ;;  %3148 = vmatpush1.msra.mxu1 %v6181_v61  ;;  %7025 = vst [vmem:[#allocation21_spill] sm:$0xff] %v6190_v63  ;;  %7026 = vst [vmem:[#allocation46_spill] sm:$0xff] %v6194_v24  ;;  %v7028_v7 = vld [vmem:[#allocation30_spill] sm:$0xff] }
 0xc2c   :  { %3078 = vmatprep.subr.mxu0 %v6184_v4  ;;  %3149 = vmatprep.subr.mxu1 %v6187_v23  ;;  %v7027_v4 = vld [vmem:[#allocation28_spill] sm:$0xff]  ;;  %v1997_v13 = vadd.f32 %v7028_v7, %v5746_v20 }
 0xc2d   :  { %3079 = vmatpush1.msra.mxu0 %v6190_v63  ;;  %3112 = vmatprep.mubr.f32.mxu0 %v6997_v3  ;;  %v1995_v61 = vadd.f32 %v7027_v4, %v7001_v42  ;;  %v2108_v4 = vadd.f32 %v7030_v6, %v5763_v28  ;;  %v7033_v6 = vld [vmem:[#allocation39_spill] sm:$0xff] }
 0xc2e   :  { %3150 = vmatpush1.msra.mxu1 %v6194_v24  ;;  %3183 = vmatprep.mubr.f32.mxu1 %v6997_v3 }
 0xc2f   :  { %3218 = vmatprep.subr.mxu0 %v6016_v9  ;;  %3289 = vmatprep.subr.mxu1 %v6019_v14  ;;  %v7029_v9 = vld [vmem:[#allocation53_spill] sm:$0xff] }
 0xc30   :  { %v2110_v2 = vadd.f32 %v7029_v9, %v5758_v56 }
 0xcce   :  { %v2944_v23 = vpop.f32.mrf.mxu0  ;;  %v3015_v26 = vpop.f32.mrf.mxu1 }
 0xccf   :  { %v3020_v63 = vadd.f32 %v2944_v23, %v1995_v61  ;;  %v3022_v42 = vadd.f32 %v3015_v26, %v2108_v4  ;;  %v7034_v26 = vld [vmem:[#allocation40_spill] sm:$0xff]  ;;  %v7036_v4 = vld [vmem:[#allocation41_spill] sm:$0xff] }
 0xcd0   :  { %v2946_v5 = vpop.f32.mrf.mxu0  ;;  %v3017_v3 = vpop.f32.mrf.mxu1 }
 0xcd1   :  { %v3713_v15 = vmul.f32 -1.442695, %v3020_v63  ;;  %v3021_v17 = vadd.f32 %v2946_v5, %v1997_v13  ;;  %v3023_v14 = vadd.f32 %v3017_v3, %v2110_v2 }
 0xcd3   :  { %3977 = vpow2.f32 %v3713_v15  ;;  %v3714_v24 = vmul.f32 -1.442695, %v3021_v17  ;;  %v3715_v8 = vmul.f32 -1.442695, %v3023_v14 }
 0xcd5   :  { %3979 = vpow2.f32 %v3714_v24  ;;  %v7035_v24 = vld [vmem:[#allocation38_spill] sm:$0xff] }
 0xcd6   :  { %3981 = vtanh.f32 %v3022_v42 }
 0xcd7   :  { %3983 = vpow2.f32 %v3715_v8  ;;  %v7032_v8 = vld [vmem:[#allocation17_spill] sm:$0xff] }
 0xce0   :  { %v3978_v38 = vpop.eup %3977 }
 0xce1   :  { %v3027_v7 = vadd.f32 1.0, %v3978_v38 }
 0xce2   :  { %v3980_v61 = vpop.eup %3979 }
 0xce3   :  { %3985 = vrcp.f32 %v3027_v7  ;;  %v3033_v15 = vadd.f32 1.0, %v3980_v61  ;;  %v3982_v17 = vpop.eup %3981  ;;  %v7037_v7 = vld [vmem:[#allocation43_spill] sm:$0xff]  ;;  %v7038_v61 = vld [vmem:[#allocation44_spill] sm:$0xff] }
 0xce4   :  { %v3984_v5 = vpop.eup %3983 }
 0xce5   :  { %3987 = vrcp.f32 %v3033_v15  ;;  %v3040_v9 = vadd.f32 1.0, %v3984_v5  ;;  %v7039_v15 = vld [vmem:[#allocation42_spill] sm:$0xff]  ;;  %v7041_v5 = vld [vmem:[#allocation11_spill] sm:$0xff] }
 0xce7   :  { %3989 = vrcp.f32 %v3040_v9  ;;  %v7045_v9 = vld [vmem:[#allocation32_spill] sm:$0xff] }
 0xcf0   :  { %v3986_v13 = vpop.eup %3985 }
 0xcf1   :  { %v3044_v23 = vmul.f32 %v3986_v13, %v3982_v17  ;;  %v7040_v17 = vld [vmem:[#allocation10_spill] sm:$0xff]  ;;  %v7042_v13 = vld [vmem:[#allocation45_spill] sm:$0xff] }
 0xcf2   :  { %v3988_v63 = vpop.eup %3987 }
 0xcf3   :  { %v3043_v3 = vmul.f32 %v3988_v63, %v6031_v58  ;;  %v7031_v58 = vld [vmem:[#allocation19_spill] sm:$0xff]  ;;  %v7044_v63 = vld [vmem:[#allocation48_spill] sm:$0xff] }
 0xcf4   :  { %v3990_v14 = vpop.eup %3989 }
 0xcf5   :  { %v6209_v2 = vadd.f32 %v3044_v23, %v3043_v3  ;;  %v7043_v23 = vld [vmem:[#allocation47_spill] sm:$0xff]  ;;  %v7046_v3 = vld [vmem:[#allocation37_spill] sm:$0xff] }
 0xcf7   :  { %3991 = vtanh.f32 %v6209_v2 }
 0xd04   :  { %v3992_v42 = vpop.eup %3991 }
 0xd05   :  { %v3047_v38 = vmul.f32 %v3992_v42, %v3990_v14  ;;  %v7047_v14 = vld [vmem:[#allocation20_spill] sm:$0xff]  ;;  %v7048_v42 = vld [vmem:[#allocation22_spill] sm:$0xff] }
 0xd07   :  { %3113 = vmatmul.mubr.f32.vlgmr.msra.gmra.mxu0 %v3047_v38  ;;  %3184 = vmatmul.mubr.f32.vlgmr.msra.gmra.mxu1 %v3047_v38  ;;  %v7049_v38 = vld [vmem:[#allocation23_spill] sm:$0xff] }
 0xd08   :  { %3219 = vmatpush1.msra.mxu0 %v5928_v31  ;;  %3290 = vmatpush1.msra.mxu1 %v5931_v21 }
 0xd09   :  { %3220 = vmatprep.subr.mxu0 %v5934_v57  ;;  %3291 = vmatprep.subr.mxu1 %v5937_v25 }
 0xd0a   :  { %3221 = vmatpush1.msra.mxu0 %v5940_v30  ;;  %3292 = vmatpush1.msra.mxu1 %v5943_v29 }
 0xd0b   :  { %3222 = vmatprep.subr.mxu0 %v5946_v55  ;;  %3293 = vmatprep.subr.mxu1 %v5949_v60 }
 0xd0c   :  { %3223 = vmatpush1.msra.mxu0 %v5952_v27  ;;  %3294 = vmatpush1.msra.mxu1 %v5955_v53 }
 0xd0d   :  { %3224 = vmatprep.subr.mxu0 %v5958_v59  ;;  %3295 = vmatprep.subr.mxu1 %v5961_v41 }
 0xd0e   :  { %3225 = vmatpush1.msra.mxu0 %v6046_v22  ;;  %3296 = vmatpush1.msra.mxu1 %v6049_v1 }
 0xd0f   :  { %3226 = vmatprep.subr.mxu0 %v6052_v35  ;;  %3297 = vmatprep.subr.mxu1 %v6055_v18 }
 0xd10   :  { %3227 = vmatpush1.msra.mxu0 %v6058_v12  ;;  %3298 = vmatpush1.msra.mxu1 %v6061_v11 }
 0xd11   :  { %3228 = vmatprep.subr.mxu0 %v6064_v0  ;;  %3299 = vmatprep.subr.mxu1 %v6067_v19 }
 0xd12   :  { %3229 = vmatpush1.msra.mxu0 %v6070_v44  ;;  %3300 = vmatpush1.msra.mxu1 %v6073_v62 }
 0xd13   :  { %3230 = vmatprep.subr.mxu0 %v6076_v10  ;;  %3301 = vmatprep.subr.mxu1 %v6079_v43 }
 0xd14   :  { %3231 = vmatpush1.msra.mxu0 %v6082_v45  ;;  %3302 = vmatpush1.msra.mxu1 %v6085_v47 }
 0xd15   :  { %3232 = vmatprep.subr.mxu0 %v6088_v48  ;;  %3303 = vmatprep.subr.mxu1 %v6091_v32 }
 0xd16   :  { %3233 = vmatpush1.msra.mxu0 %v6094_v33  ;;  %3304 = vmatpush1.msra.mxu1 %v6097_v34 }
 0xd17   :  { %3234 = vmatprep.subr.mxu0 %v6100_v36  ;;  %3305 = vmatprep.subr.mxu1 %v6103_v37 }
 0xd18   :  { %3235 = vmatpush1.msra.mxu0 %v6106_v39  ;;  %3306 = vmatpush1.msra.mxu1 %v6109_v46 }
 0xd19   :  { %3236 = vmatprep.subr.mxu0 %v6112_v49  ;;  %3307 = vmatprep.subr.mxu1 %v6115_v50 }
 0xd1a   :  { %3237 = vmatpush1.msra.mxu0 %v6118_v51  ;;  %3308 = vmatpush1.msra.mxu1 %v6121_v52 }
 0xd1b   :  { %3238 = vmatprep.subr.mxu0 %v6124_v54  ;;  %3309 = vmatprep.subr.mxu1 %v6127_v16 }
 0xd1c   :  { %3239 = vmatpush1.msra.mxu0 %v6130_v40  ;;  %3310 = vmatpush1.msra.mxu1 %v7031_v58 }
 0xd1d   :  { %3240 = vmatprep.subr.mxu0 %v7032_v8  ;;  %3311 = vmatprep.subr.mxu1 %v7033_v6  ;;  %v7059_v6 = vld [vmem:[#allocation56_spill] sm:$0xff] }
 0xd1e   :  { %3241 = vmatpush1.msra.mxu0 %v7034_v26  ;;  %3312 = vmatpush1.msra.mxu1 %v7035_v24 }
 0xd1f   :  { %3242 = vmatprep.subr.mxu0 %v7036_v4  ;;  %3313 = vmatprep.subr.mxu1 %v7037_v7 }
 0xd20   :  { %3243 = vmatpush1.msra.mxu0 %v7038_v61  ;;  %3314 = vmatpush1.msra.mxu1 %v7039_v15  ;;  %v7050_v15 = vld [vmem:[#allocation21_spill] sm:$0xff] }
 0xd21   :  { %3244 = vmatprep.subr.mxu0 %v7040_v17  ;;  %3315 = vmatprep.subr.mxu1 %v7041_v5  ;;  %v7051_v17 = vmov 0.0   ;;  %v7052_v5 = vld [vmem:[#allocation46_spill] sm:$0xff] }
 0xd22   :  { %3245 = vmatpush1.msra.mxu0 %v7042_v13  ;;  %3316 = vmatpush1.msra.mxu1 %v7043_v23  ;;  %v7053_v23 = vld [vmem:[#allocation16_spill] sm:$0xff] }
 0xd23   :  { %3246 = vmatprep.subr.mxu0 %v7044_v63  ;;  %3317 = vmatprep.subr.mxu1 %v7045_v9  ;;  %v7054_v63 = vld [vmem:[#allocation18_spill] sm:$0xff]  ;;  %v7055_v9 = vld [vmem:[#allocation31_spill] sm:$0xff] }
 0xd24   :  { %3247 = vmatpush1.msra.mxu0 %v7046_v3  ;;  %3318 = vmatpush1.msra.mxu1 %v7047_v14  ;;  %v7056_v3 = vld [vmem:[#allocation55_spill] sm:$0xff] }
 0xd25   :  { %3248 = vmatprep.subr.mxu0 %v7048_v42  ;;  %3319 = vmatprep.subr.mxu1 %v7049_v38  ;;  %v2001_v13 = vadd.f32 %v7056_v3, %v7055_v9  ;;  %v7057_v42 = vld [vmem:[#allocation54_spill] sm:$0xff]  ;;  %v2114_v3 = vadd.f32 %v7059_v6, %v5763_v28 }
 0xd26   :  { %3249 = vmatpush1.msra.mxu0 %v7050_v15  ;;  %3282 = vmatprep.mubr.f32.mxu0 %v7051_v17  ;;  %v2003_v61 = vadd.f32 %v7057_v42, %v5746_v20 }
 0xd27   :  { %3320 = vmatpush1.msra.mxu1 %v7052_v5  ;;  %3353 = vmatprep.mubr.f32.mxu1 %v7051_v17 }
 0xd28   :  { %3388 = vmatprep.subr.mxu0 %v7053_v23  ;;  %3459 = vmatprep.subr.mxu1 %v7054_v63  ;;  %v7058_v23 = vld [vmem:[#allocation61_spill] sm:$0xff] }
 0xd29   :  { %v2116_v26 = vadd.f32 %v7058_v23, %v5758_v56 }
 0xdc7   :  { %v3114_v14 = vpop.f32.mrf.mxu0  ;;  %v3185_v24 = vpop.f32.mrf.mxu1 }
 0xdc8   :  { %v3190_v38 = vadd.f32 %v3114_v14, %v2001_v13  ;;  %v3192_v9 = vadd.f32 %v3185_v24, %v2114_v3 }
 0xdc9   :  { %v3116_v7 = vpop.f32.mrf.mxu0  ;;  %v3187_v17 = vpop.f32.mrf.mxu1 }
 0xdca   :  { %v3716_v15 = vmul.f32 -1.442695, %v3190_v38  ;;  %v3191_v4 = vadd.f32 %v3116_v7, %v2003_v61  ;;  %v3193_v63 = vadd.f32 %v3187_v17, %v2116_v26 }
 0xdcc   :  { %3993 = vpow2.f32 %v3716_v15  ;;  %v3717_v5 = vmul.f32 -1.442695, %v3191_v4  ;;  %v3718_v8 = vmul.f32 -1.442695, %v3193_v63 }
 0xdce   :  { %3995 = vpow2.f32 %v3717_v5 }
 0xdcf   :  { %3997 = vtanh.f32 %v3192_v9 }
 0xdd0   :  { %3999 = vpow2.f32 %v3718_v8 }
 0xdd9   :  { %v3994_v58 = vpop.eup %3993 }
 0xdda   :  { %v3197_v42 = vadd.f32 1.0, %v3994_v58 }
 0xddb   :  { %v3996_v13 = vpop.eup %3995 }
 0xddc   :  { %4001 = vrcp.f32 %v3197_v42  ;;  %v3203_v7 = vadd.f32 1.0, %v3996_v13  ;;  %v3998_v4 = vpop.eup %3997 }
 0xddd   :  { %v4000_v61 = vpop.eup %3999 }
 0xdde   :  { %4003 = vrcp.f32 %v3203_v7  ;;  %v3210_v38 = vadd.f32 1.0, %v4000_v61 }
 0xde0   :  { %4005 = vrcp.f32 %v3210_v38 }
 0xde9   :  { %v4002_v15 = vpop.eup %4001 }
 0xdea   :  { %v3214_v5 = vmul.f32 %v4002_v15, %v3998_v4 }
 0xdeb   :  { %v4004_v14 = vpop.eup %4003 }
 0xdec   :  { %v3213_v26 = vmul.f32 %v4004_v14, %v6209_v2 }
 0xded   :  { %v4006_v58 = vpop.eup %4005 }
 0xdee   :  { %v6287_v17 = vadd.f32 %v3214_v5, %v3213_v26 }
 0xdf0   :  { %4007 = vtanh.f32 %v6287_v17 }
 0xdfd   :  { %v4008_v6 = vpop.eup %4007 }
 0xdfe   :  { %v3217_v24 = vmul.f32 %v4008_v6, %v4006_v58  ;;  %v3573_v58 = vld [vmem:[%s6455_s9 + $0x78] sm:$0xff]  ;;  %v3571_v6 = vld [vmem:[%s6455_s9 + $0x68] sm:$0xff] }
 0xe00   :  { %3283 = vmatmul.mubr.f32.vlgmr.msra.gmra.mxu0 %v3217_v24  ;;  %3354 = vmatmul.mubr.f32.vlgmr.msra.gmra.mxu1 %v3217_v24  ;;  %v3570_v24 = vld [vmem:[%s6455_s9 + $0x60] sm:$0xff] }
 0xe01   :  { %3389 = vmatpush1.msra.mxu0 %v5928_v31  ;;  %3460 = vmatpush1.msra.mxu1 %v5931_v21  ;;  %v7060_v31 = vld [vmem:[#allocation19_spill] sm:$0xff]  ;;  %v7061_v21 = vld [vmem:[#allocation17_spill] sm:$0xff] }
 0xe02   :  { %3390 = vmatprep.subr.mxu0 %v5934_v57  ;;  %3461 = vmatprep.subr.mxu1 %v5937_v25  ;;  %v7062_v57 = vld [vmem:[#allocation39_spill] sm:$0xff]  ;;  %v7063_v25 = vld [vmem:[#allocation40_spill] sm:$0xff] }
 0xe03   :  { %3391 = vmatpush1.msra.mxu0 %v5940_v30  ;;  %3462 = vmatpush1.msra.mxu1 %v5943_v29  ;;  %v7064_v30 = vld [vmem:[#allocation38_spill] sm:$0xff]  ;;  %v7065_v29 = vld [vmem:[#allocation41_spill] sm:$0xff] }
 0xe04   :  { %3392 = vmatprep.subr.mxu0 %v5946_v55  ;;  %3463 = vmatprep.subr.mxu1 %v5949_v60  ;;  %v7066_v55 = vld [vmem:[#allocation43_spill] sm:$0xff]  ;;  %v7067_v60 = vld [vmem:[#allocation44_spill] sm:$0xff] }
 0xe05   :  { %3393 = vmatpush1.msra.mxu0 %v5952_v27  ;;  %3464 = vmatpush1.msra.mxu1 %v5955_v53  ;;  %v7068_v27 = vld [vmem:[#allocation42_spill] sm:$0xff] }
 0xe06   :  { %3394 = vmatprep.subr.mxu0 %v5958_v59  ;;  %3465 = vmatprep.subr.mxu1 %v5961_v41  ;;  %v7069_v53 = vld [vmem:[#allocation10_spill] sm:$0xff]  ;;  %v7070_v59 = vld [vmem:[#allocation11_spill] sm:$0xff]  ;;  %v7071_v41 = vld [vmem:[#allocation45_spill] sm:$0xff] }
 0xe07   :  { %3395 = vmatpush1.msra.mxu0 %v6046_v22  ;;  %3466 = vmatpush1.msra.mxu1 %v6049_v1  ;;  %v7072_v22 = vld [vmem:[#allocation47_spill] sm:$0xff]  ;;  %v7073_v1 = vld [vmem:[#allocation48_spill] sm:$0xff] }
 0xe08   :  { %3396 = vmatprep.subr.mxu0 %v6052_v35  ;;  %3467 = vmatprep.subr.mxu1 %v6055_v18  ;;  %v7074_v35 = vld [vmem:[#allocation32_spill] sm:$0xff]  ;;  %v7075_v18 = vld [vmem:[#allocation37_spill] sm:$0xff] }
 0xe09   :  { %3397 = vmatpush1.msra.mxu0 %v6058_v12  ;;  %3468 = vmatpush1.msra.mxu1 %v6061_v11  ;;  %v7076_v12 = vld [vmem:[#allocation20_spill] sm:$0xff]  ;;  %v7077_v11 = vld [vmem:[#allocation22_spill] sm:$0xff] }
 0xe0a   :  { %3398 = vmatprep.subr.mxu0 %v6064_v0  ;;  %3469 = vmatprep.subr.mxu1 %v6067_v19  ;;  %v7078_v0 = vld [vmem:[#allocation23_spill] sm:$0xff]  ;;  %v7079_v19 = vld [vmem:[#allocation21_spill] sm:$0xff] }
 0xe0b   :  { %3399 = vmatpush1.msra.mxu0 %v6070_v44  ;;  %3470 = vmatpush1.msra.mxu1 %v6073_v62  ;;  %v7080_v44 = vmov 0.0   ;;  %v7081_v62 = vld [vmem:[#allocation46_spill] sm:$0xff] }
 0xe0c   :  { %3400 = vmatprep.subr.mxu0 %v6076_v10  ;;  %3471 = vmatprep.subr.mxu1 %v6079_v43  ;;  %v7082_v10 = vld [vmem:[#allocation31_spill] sm:$0xff]  ;;  %v7083_v43 = vld [vmem:[#allocation12_spill] sm:$0xff] }
 0xe0d   :  { %3401 = vmatpush1.msra.mxu0 %v6082_v45  ;;  %3472 = vmatpush1.msra.mxu1 %v6085_v47  ;;  %v2007_v45 = vadd.f32 %v7083_v43, %v7082_v10 }
 0xe0e   :  { %3402 = vmatprep.subr.mxu0 %v6088_v48  ;;  %3473 = vmatprep.subr.mxu1 %v6091_v32  ;;  %v7084_v48 = vld [vmem:[#allocation35_spill] sm:$0xff] }
 0xe0f   :  { %3403 = vmatpush1.msra.mxu0 %v6094_v33  ;;  %3474 = vmatpush1.msra.mxu1 %v6097_v34  ;;  %v2009_v32 = vadd.f32 %v7084_v48, %v5746_v20  ;;  %v7089_v48 = vld [vmem:[#allocation33_spill] sm:$0xff] }
 0xe10   :  { %3404 = vmatprep.subr.mxu0 %v6100_v36  ;;  %3475 = vmatprep.subr.mxu1 %v6103_v37 }
 0xe11   :  { %3405 = vmatpush1.msra.mxu0 %v6106_v39  ;;  %3476 = vmatpush1.msra.mxu1 %v6109_v46 }
 0xe12   :  { %3406 = vmatprep.subr.mxu0 %v6112_v49  ;;  %3477 = vmatprep.subr.mxu1 %v6115_v50  ;;  %v7085_v50 = vld [vmem:[#allocation57_spill] sm:$0xff] }
 0xe13   :  { %3407 = vmatpush1.msra.mxu0 %v6118_v51  ;;  %3478 = vmatpush1.msra.mxu1 %v6121_v52  ;;  %v2122_v51 = vadd.f32 %v7085_v50, %v5758_v56 }
 0xe14   :  { %3408 = vmatprep.subr.mxu0 %v6124_v54  ;;  %3479 = vmatprep.subr.mxu1 %v6127_v16  ;;  %v7086_v54 = vld [vmem:[#allocation15_spill] sm:$0xff] }
 0xe15   :  { %3409 = vmatpush1.msra.mxu0 %v6130_v40  ;;  %3480 = vmatpush1.msra.mxu1 %v7060_v31  ;;  %v2120_v16 = vadd.f32 %v7086_v54, %v5763_v28  ;;  %v3569_v31 = vld [vmem:[%s6455_s9 + $0x58] sm:$0xff] }
 0xe16   :  { %3410 = vmatprep.subr.mxu0 %v7061_v21  ;;  %3481 = vmatprep.subr.mxu1 %v7062_v57  ;;  %v3568_v21 = vld [vmem:[%s6455_s9 + $0x50] sm:$0xff]  ;;  %v3567_v57 = vld [vmem:[%s6455_s9 + $0x48] sm:$0xff] }
 0xe17   :  { %3411 = vmatpush1.msra.mxu0 %v7063_v25  ;;  %3482 = vmatpush1.msra.mxu1 %v7064_v30  ;;  %v3566_v25 = vld [vmem:[%s6455_s9 + $0x40] sm:$0xff]  ;;  %v3565_v30 = vld [vmem:[%s6455_s9 + $0x38] sm:$0xff] }
 0xe18   :  { %3412 = vmatprep.subr.mxu0 %v7065_v29  ;;  %3483 = vmatprep.subr.mxu1 %v7066_v55  ;;  %v3564_v29 = vld [vmem:[%s6455_s9 + $0x30] sm:$0xff]  ;;  %v3563_v55 = vld [vmem:[%s6455_s9 + $0x28] sm:$0xff] }
 0xe19   :  { %3413 = vmatpush1.msra.mxu0 %v7067_v60  ;;  %3484 = vmatpush1.msra.mxu1 %v7068_v27  ;;  %v3562_v60 = vld [vmem:[%s6455_s9 + $0x20] sm:$0xff]  ;;  %v3561_v27 = vld [vmem:[%s6455_s9 + $0x18] sm:$0xff] }
 0xe1a   :  { %3414 = vmatprep.subr.mxu0 %v7069_v53  ;;  %3485 = vmatprep.subr.mxu1 %v7070_v59  ;;  %v3560_v53 = vld [vmem:[%s6455_s9 + $0x10] sm:$0xff]  ;;  %v3559_v59 = vld [vmem:[%s6455_s9 + $0x8] sm:$0xff] }
 0xe1b   :  { %3415 = vmatpush1.msra.mxu0 %v7071_v41  ;;  %3486 = vmatpush1.msra.mxu1 %v7072_v22  ;;  %v3558_v41 = vld [vmem:[%s6455_s9] sm:$0xff]  ;;  %v7087_v22 = vld [vmem:[#allocation59_spill] sm:$0xff] }
 0xe1c   :  { %3416 = vmatprep.subr.mxu0 %v7073_v1  ;;  %3487 = vmatprep.subr.mxu1 %v7074_v35  ;;  %v2013_v1 = vadd.f32 %v7087_v22, %v7082_v10 }
 0xe1d   :  { %3417 = vmatpush1.msra.mxu0 %v7075_v18  ;;  %3488 = vmatpush1.msra.mxu1 %v7076_v12  ;;  %v7088_v18 = vld [vmem:[#allocation58_spill] sm:$0xff] }
 0xe1e   :  { %3418 = vmatprep.subr.mxu0 %v7077_v11  ;;  %3489 = vmatprep.subr.mxu1 %v7078_v0  ;;  %v2015_v12 = vadd.f32 %v7088_v18, %v5746_v20 }
 0xe1f   :  { %3419 = vmatpush1.msra.mxu0 %v7079_v19  ;;  %3452 = vmatprep.mubr.f32.mxu0 %v7080_v44 }
 0xe20   :  { %3490 = vmatpush1.msra.mxu1 %v7081_v62  ;;  %3523 = vmatprep.mubr.f32.mxu1 %v7080_v44 }
 0xe21   :  { %3743 = vmatprep.subr.mxu0 %v7080_v44 }
 0xec0   :  { %v3284_v47 = vpop.f32.mrf.mxu0  ;;  %v3355_v39 = vpop.f32.mrf.mxu1 }
 0xec1   :  { %v3360_v33 = vadd.f32 %v3284_v47, %v2007_v45  ;;  %v3362_v40 = vadd.f32 %v3355_v39, %v2120_v16 }
 0xec2   :  { %v3286_v34 = vpop.f32.mrf.mxu0  ;;  %v3357_v49 = vpop.f32.mrf.mxu1 }
 0xec3   :  { %v3719_v36 = vmul.f32 -1.442695, %v3360_v33  ;;  %v3361_v37 = vadd.f32 %v3286_v34, %v2009_v32  ;;  %v3363_v52 = vadd.f32 %v3357_v49, %v2122_v51  ;;  %v7090_v33 = vld [vmem:[#allocation60_spill] sm:$0xff] }
 0xec4   :  { %v2126_v10 = vadd.f32 %v7090_v33, %v5763_v28 }
 0xec5   :  { %4009 = vpow2.f32 %v3719_v36  ;;  %v3720_v46 = vmul.f32 -1.442695, %v3361_v37  ;;  %v3721_v2 = vmul.f32 -1.442695, %v3363_v52 }
 0xec7   :  { %4011 = vpow2.f32 %v3720_v46 }
 0xec8   :  { %4013 = vtanh.f32 %v3362_v40 }
 0xec9   :  { %4015 = vpow2.f32 %v3721_v2 }
 0xed2   :  { %v4010_v8 = vpop.eup %4009 }
 0xed3   :  { %v3367_v9 = vadd.f32 1.0, %v4010_v8 }
 0xed4   :  { %v4012_v23 = vpop.eup %4011 }
 0xed5   :  { %4017 = vrcp.f32 %v3367_v9  ;;  %v3373_v63 = vadd.f32 1.0, %v4012_v23  ;;  %v4014_v3 = vpop.eup %4013  ;;  %v3725_v9 = vld [vmem:[%s6456_s10] ss:$0 sm:$0xff] }
 0xed6   :  { %v4016_v42 = vpop.eup %4015 }
 0xed7   :  { %4019 = vrcp.f32 %v3373_v63  ;;  %v3380_v61 = vadd.f32 1.0, %v4016_v42 }
 0xed9   :  { %4021 = vrcp.f32 %v3380_v61 }
 0xee2   :  { %v4018_v13 = vpop.eup %4017 }
 0xee3   :  { %v3384_v7 = vmul.f32 %v4018_v13, %v4014_v3 }
 0xee4   :  { %v4020_v4 = vpop.eup %4019 }
 0xee5   :  { %v3383_v15 = vmul.f32 %v4020_v4, %v6287_v17  ;;  %v3572_v17 = vld [vmem:[%s6455_s9 + $0x70] sm:$0xff] }
 0xee6   :  { %v4022_v14 = vpop.eup %4021 }
 0xee7   :  { %v6364_v5 = vadd.f32 %v3384_v7, %v3383_v15 }
 0xee9   :  { %4023 = vtanh.f32 %v6364_v5 }
 0xef6   :  { %v4024_v38 = vpop.eup %4023 }
 0xef7   :  { %v3387_v26 = vmul.f32 %v4024_v38, %v4022_v14 }
 0xef9   :  { %3453 = vmatmul.mubr.f32.vlgmr.msra.gmra.mxu0 %v3387_v26  ;;  %3524 = vmatmul.mubr.f32.vlgmr.msra.gmra.mxu1 %v3387_v26 }
 0xefa   :  { %3744 = vmatpush3.msra.mxu0 %v3573_v58  ;;  %3775 = vmatprep.mubr.msk.f32.mxu0 %vm4239_vm1, %v7080_v44 }
 0xefb   :  { %3745 = vmatprep.subr.mxu0 %v7080_v44 }
 0xefc   :  { %3746 = vmatpush3.msra.mxu0 %v3572_v17 }
 0xefd   :  { %3747 = vmatprep.subr.mxu0 %v7080_v44 }
 0xefe   :  { %3748 = vmatpush3.msra.mxu0 %v3571_v6 }
 0xeff   :  { %3749 = vmatprep.subr.mxu0 %v7080_v44 }
 0xf00   :  { %3750 = vmatpush3.msra.mxu0 %v3570_v24 }
 0xf01   :  { %3751 = vmatprep.subr.mxu0 %v7080_v44 }
 0xf02   :  { %3752 = vmatpush3.msra.mxu0 %v3569_v31 }
 0xf03   :  { %3753 = vmatprep.subr.mxu0 %v7080_v44 }
 0xf04   :  { %3754 = vmatpush3.msra.mxu0 %v3568_v21 }
 0xf05   :  { %3755 = vmatprep.subr.mxu0 %v7080_v44 }
 0xf06   :  { %3756 = vmatpush3.msra.mxu0 %v3567_v57 }
 0xf07   :  { %3757 = vmatprep.subr.mxu0 %v7080_v44 }
 0xf08   :  { %3758 = vmatpush3.msra.mxu0 %v3566_v25 }
 0xf09   :  { %3759 = vmatprep.subr.mxu0 %v7080_v44 }
 0xf0a   :  { %3760 = vmatpush3.msra.mxu0 %v3565_v30 }
 0xf0b   :  { %3761 = vmatprep.subr.mxu0 %v7080_v44 }
 0xf0c   :  { %3762 = vmatpush3.msra.mxu0 %v3564_v29 }
 0xf0d   :  { %3763 = vmatprep.subr.mxu0 %v7080_v44 }
 0xf0e   :  { %3764 = vmatpush3.msra.mxu0 %v3563_v55 }
 0xf0f   :  { %3765 = vmatprep.subr.mxu0 %v7080_v44 }
 0xf10   :  { %3766 = vmatpush3.msra.mxu0 %v3562_v60 }
 0xf11   :  { %3767 = vmatprep.subr.mxu0 %v7080_v44 }
 0xf12   :  { %3768 = vmatpush3.msra.mxu0 %v3561_v27 }
 0xf13   :  { %3769 = vmatprep.subr.mxu0 %v7080_v44 }
 0xf14   :  { %3770 = vmatpush3.msra.mxu0 %v3560_v53 }
 0xf15   :  { %3771 = vmatprep.subr.mxu0 %v7080_v44 }
 0xf16   :  { %3772 = vmatpush3.msra.mxu0 %v3559_v59 }
 0xf17   :  { %3773 = vmatprep.subr.mxu0 %v7080_v44  ;;  %v2128_v44 = vadd.f32 %v7089_v48, %v5758_v56 }
 0xf18   :  { %3774 = vmatpush3.msra.mxu0 %v3558_v41 }
 0xfb9   :  { %v3454_v35 = vpop.f32.mrf.mxu0  ;;  %v3525_v43 = vpop.f32.mrf.mxu1 }
 0xfba   :  { %v3530_v11 = vadd.f32 %v3454_v35, %v2013_v1  ;;  %v3532_v34 = vadd.f32 %v3525_v43, %v2126_v10 }
 0xfbb   :  { %v3456_v0 = vpop.f32.mrf.mxu0  ;;  %v3527_v47 = vpop.f32.mrf.mxu1 }
 0xfbc   :  { %v3722_v19 = vmul.f32 -1.442695, %v3530_v11  ;;  %v3531_v62 = vadd.f32 %v3456_v0, %v2015_v12  ;;  %v3533_v32 = vadd.f32 %v3527_v47, %v2128_v44 }
 0xfbe   :  { %4025 = vpow2.f32 %v3722_v19  ;;  %v3723_v45 = vmul.f32 -1.442695, %v3531_v62  ;;  %v3724_v36 = vmul.f32 -1.442695, %v3533_v32 }
 0xfc0   :  { %4027 = vpow2.f32 %v3723_v45 }
 0xfc1   :  { %4029 = vtanh.f32 %v3532_v34 }
 0xfc2   :  { %4031 = vpow2.f32 %v3724_v36 }
 0xfcb   :  { %v4026_v37 = vpop.eup %4025 }
 0xfcc   :  { %v3537_v20 = vadd.f32 1.0, %v4026_v37 }
 0xfcd   :  { %v4028_v39 = vpop.eup %4027 }
 0xfce   :  { %4033 = vrcp.f32 %v3537_v20  ;;  %v3543_v46 = vadd.f32 1.0, %v4028_v39  ;;  %v4030_v49 = vpop.eup %4029 }
 0xfcf   :  { %v4032_v50 = vpop.eup %4031 }
 0xfd0   :  { %4035 = vrcp.f32 %v3543_v46  ;;  %v3550_v56 = vadd.f32 1.0, %v4032_v50 }
 0xfd2   :  { %4037 = vrcp.f32 %v3550_v56 }
 0xfdb   :  { %v4034_v51 = vpop.eup %4033 }
 0xfdc   :  { %v3554_v52 = vmul.f32 %v4034_v51, %v4030_v49 }
 0xfdd   :  { %v4036_v54 = vpop.eup %4035 }
 0xfde   :  { %v3553_v16 = vmul.f32 %v4036_v54, %v6364_v5 }
 0xfdf   :  { %v4038_v28 = vpop.eup %4037 }
 0xfe0   :  { %v3555_v40 = vadd.f32 %v3554_v52, %v3553_v16 }
 0xfe2   :  { %4039 = vtanh.f32 %v3555_v40 }
 0xfef   :  { %v4040_v2 = vpop.eup %4039 }
 0xff0   :  { %v3557_v8 = vmul.f32 %v4040_v2, %v4038_v28 }
 0xff2   :  { %3776 = vmatmul.mubr.f32.vlgmr.msra.gmra.mxu0 %v3557_v8 }
0x10b2   :  { %v3647_v23 = vpop.f32.mrf.mxu0 }
0x10b3   :  { %v3648_v63 = vadd.f32 %v3725_v9, %v3647_v23 }
0x10b4   :  { %v3777_v3 = vpop.f32.mrf.mxu0 }
0x10b5   :  { %3652 = vst.msk [vmem:[%s6457_s11] sm:$0xff] %vm3651_vm2, %v3648_v63 }
0x10b6   :  { %3657 = vsyncpa [#allocation4], 1 }
0x10b7   :  { %3658 = vsyncpa [#allocation6], 1 }

</bundles_post_ra>
